<compile_context>
chip_gen: v6e
topology: v6e:2x2x1
jax: 0.10.0
libtpu: 0.0.40
codegen_flags: <defaults>
</compile_context>

<pallas_src>
import jax
import jax.numpy as jnp
from jax import lax
from jax.experimental import pallas as pl
from jax.experimental.pallas import tpu as pltpu

KSIZE = 4
BN_EPS = 1e-5
LANE = 128   # pad K / C_out lane dims to multiples of this (256 is marginally better on v6e/v7x)


def _round_up(n, m):
    return ((n + m - 1) // m) * m


# ------------------------------------------------------------------ Pallas kernel
def _gemm_bn_relu_kernel(p_ref, w_ref, b_ref, g_ref, beta_ref, o_ref):
    """Fused (multi-phase) GEMM + bias + BatchNorm2d(train) + ReLU.

    p_ref    : (M, n_phase*Kp) bf16   im2col patches, one Kp block per phase
    w_ref    : (n_phase, Kp, Cp) bf16 per-phase GEMM weights (zero padded)
    b_ref    : (1, Cp) f32            conv bias
    g_ref    : (1, Cp) f32            BN gamma
    beta_ref : (1, Cp) f32            BN beta
    o_ref    : (M, n_phase*Cp) f32    per-phase outputs (same column blocking as p_ref)
    """
    n_phase, kp, cp = w_ref.shape
    m = p_ref.shape[0]
    bias = b_ref[...]

    # Per-phase GEMMs on the MXU (bf16 x bf16 -> f32 accumulation).
    ys = []
    s1 = jnp.zeros((1, cp), jnp.float32)
    for p in range(n_phase):
        y = jnp.dot(p_ref[:, p * kp:(p + 1) * kp], w_ref[p],
                    preferred_element_type=jnp.float32) + bias
        ys.append(y)
        s1 = s1 + jnp.sum(y, axis=0, keepdims=True)

    # BatchNorm2d training-mode batch statistics pooled over all rows and phases
    # (= all N*OH*OW output positions), biased variance, kept strictly in f32.
    inv_cnt = 1.0 / float(m * n_phase)
    mean = s1 * inv_cnt
    s2 = jnp.zeros((1, cp), jnp.float32)
    for y in ys:
        d = y - mean
        s2 = s2 + jnp.sum(d * d, axis=0, keepdims=True)
    var = s2 * inv_cnt
    scale = lax.rsqrt(var + BN_EPS) * g_ref[...]
    shift = beta_ref[...] - mean * scale

    # Normalize + ReLU; stores are 128-lane aligned (Cp is a multiple of 128) -> unmasked vst.
    for p in range(n_phase):
        o_ref[:, p * cp:(p + 1) * cp] = jnp.maximum(ys[p] * scale + shift, 0.0).astype(o_ref.dtype)


def pallas_gemm_bn_relu(P, Wstack, b, gamma, beta):
    M = P.shape[0]
    n_phase, kp, cp = Wstack.shape
    return pl.pallas_call(
        _gemm_bn_relu_kernel,
        out_shape=jax.ShapeDtypeStruct((M, n_phase * cp), jnp.float32),
        grid=(1,),
        in_specs=[
            pl.BlockSpec((M, n_phase * kp), lambda i: (0, 0)),
            pl.BlockSpec((n_phase, kp, cp), lambda i: (0, 0, 0)),
            pl.BlockSpec((1, cp), lambda i: (0, 0)),
            pl.BlockSpec((1, cp), lambda i: (0, 0)),
            pl.BlockSpec((1, cp), lambda i: (0, 0)),
        ],
        out_specs=pl.BlockSpec((M, n_phase * cp), lambda i: (0, 0)),
        compiler_params=pltpu.CompilerParams(dimension_semantics=("arbitrary",)),
    )(P.astype(jnp.bfloat16), Wstack.astype(jnp.bfloat16), b, gamma, beta)


# Pure-jnp versions of exactly the same math (for correctness checks).
def _gemm_bn_relu_math(Pc, Wc, b, gamma, beta, precision=None):
    n_phase, kp, cp = Wc.shape
    M = Pc.shape[0]
    ys = [jnp.dot(Pc[:, p * kp:(p + 1) * kp], Wc[p],
                  preferred_element_type=jnp.float32, precision=precision) + b
          for p in range(n_phase)]
    inv_cnt = 1.0 / float(M * n_phase)
    mean = sum(jnp.sum(y, axis=0, keepdims=True) for y in ys) * inv_cnt
    var = sum(jnp.sum((y - mean) ** 2, axis=0, keepdims=True) for y in ys) * inv_cnt
    scale = lax.rsqrt(var + BN_EPS) * gamma
    shift = beta - mean * scale
    return jnp.concatenate([jnp.maximum(y * scale + shift, 0.0) for y in ys], axis=-1)


def jnp_gemm_bf16(P, Wstack, b, gamma, beta):        # same bf16 GEMM inputs as the Pallas path
    return _gemm_bn_relu_math(P.astype(jnp.bfloat16), Wstack.astype(jnp.bfloat16), b, gamma, beta)


def jnp_gemm_f32(P, Wstack, b, gamma, beta):         # exact f32 (for decomposition validation)
    return _gemm_bn_relu_math(P, Wstack, b, gamma, beta, precision=lax.Precision.HIGHEST)


# ------------------------------------------------------------------ NHWC glue (im2col, phases)
def _im2col_conv_nhwc(h, kpad):
    """4x4 / stride-2 / pad-1 patches from NHWC; columns ordered (kh, kw, ci), zero-padded to kpad."""
    N, H, W, C = h.shape
    OH = (H + 2 - KSIZE) // 2 + 1
    OW = (W + 2 - KSIZE) // 2 + 1
    hp = jnp.pad(h, ((0, 0), (1, 1), (1, 1), (0, 0)))
    cols = [hp[:, kh:kh + 2 * OH:2, kw:kw + 2 * OW:2, :]
            for kh in range(KSIZE) for kw in range(KSIZE)]
    P = jnp.concatenate(cols, axis=-1).reshape(N * OH * OW, KSIZE * KSIZE * C)
    k = KSIZE * KSIZE * C
    if kpad > k:
        P = jnp.pad(P, ((0, 0), (0, kpad - k)))
    return P, OH, OW


def conv_bn_relu(h, layer, m, gemm_fn):
    """Conv2d(k=4,s=2,p=1) + BN(train) + ReLU on NHWC activations."""
    wstack, b, g, bt = layer
    N = h.shape[0]
    P, OH, OW = _im2col_conv_nhwc(h, m["kpad"])
    y = gemm_fn(P, wstack, b, g, bt)                       # (N*OH*OW, cpad)
    return y.reshape(N, OH, OW, m["cpad"])[..., :m["c_out"]]


def convT_bn_relu(h, layer, m, gemm_fn):
    """ConvTranspose2d(k=4,s=2,p=1) + BN(train) + ReLU via sub-pixel phase decomposition.

    Output pixel (2a+r, 2b+s) only depends on a 2x2 input window -> 4 small GEMMs (K = 4*C_in)
    on the un-dilated input instead of one GEMM over a 4x larger zero-dilated grid (K = 16*C_in).
    """
    wstack, b, g, bt = layer
    N, H, W, C = h.shape
    hp = jnp.pad(h, ((0, 0), (1, 1), (1, 1), (0, 0)))
    kphase = 4 * C
    kpad, cpad = m["kpad"], m["cpad"]
    blocks = []
    for r in (0, 1):
        for s in (0, 1):
            cols = [hp[:, r + ti:r + ti + H, s + tj:s + tj + W, :]
                    for ti in range(2) for tj in range(2)]
            Pp = jnp.concatenate(cols, axis=-1).reshape(N * H * W, kphase)
            if kpad > kphase:
                Pp = jnp.pad(Pp, ((0, 0), (0, kpad - kphase)))
            blocks.append(Pp)
    P = jnp.concatenate(blocks, axis=-1)                   # (N*H*W, 4*kpad)
    y = gemm_fn(P, wstack, b, g, bt)                       # (N*H*W, 4*cpad)
    y = y.reshape(N, H, W, 2, 2, cpad)                     # (..., r, s, c)
    y = jnp.transpose(y, (0, 1, 3, 2, 4, 5)).reshape(N, 2 * H, 2 * W, cpad)   # pixel shuffle
    return y[..., :m["c_out"]]


def autoencoder_forward(x_nchw, prep, meta, gemm_fn):
    h = jnp.transpose(x_nchw, (0, 2, 3, 1))                # NCHW -> NHWC, once
    for layer, m in zip(prep["enc"], meta["enc"]):
        h = conv_bn_relu(h, layer, m, gemm_fn)
    enc = h
    for layer, m in zip(prep["dec"], meta["dec"]):
        h = convT_bn_relu(h, layer, m, gemm_fn)
    return jnp.transpose(enc, (0, 3, 1, 2)), jnp.transpose(h, (0, 3, 1, 2))


# ------------------------------------------------------------------ parameters
def init_params(key, total_layers):
    """Raw PyTorch-layout params: Conv2d w=(Cout,Cin,4,4); ConvTranspose2d w=(Cin,Cout,4,4)."""
    params = {"enc": [], "dec": []}
    in_c, out_c = 3, 64
    for _ in range(total_layers):
        key, k1, k2 = jax.random.split(key, 3)
        w = jax.random.normal(k1, (out_c, in_c, KSIZE, KSIZE), jnp.float32) * 0.05
        b = jax.random.normal(k2, (out_c,), jnp.float32) * 0.05
        params["enc"].append((w, b, jnp.ones((out_c,), jnp.float32), jnp.zeros((out_c,), jnp.float32)))
        in_c, out_c = out_c, out_c * 2

    in_c = 64 * 2 ** (total_layers - 1)
    out_c = in_c // 2
    for i in range(total_layers):
        if i == total_layers - 1:
            out_c = 3
        key, k1, k2 = jax.random.split(key, 3)
        w = jax.random.normal(k1, (in_c, out_c, KSIZE, KSIZE), jnp.float32) * 0.05
        b = jax.random.normal(k2, (out_c,), jnp.float32) * 0.05
        params["dec"].append((w, b, jnp.ones((out_c,), jnp.float32), jnp.zeros((out_c,), jnp.float32)))
        in_c = out_c
        out_c = in_c // 2
    return params


def _pad_vec(v, cpad, fill):
    return jnp.pad(v, (0, cpad - v.shape[0]), constant_values=fill).reshape(1, cpad)


def prepare_params(raw):
    """Precompute GEMM-ready (K, C_out) weights once, zero-padded to 128-lane multiples."""
    prep = {"enc": [], "dec": []}
    meta = {"enc": [], "dec": []}

    for (w, b, g, bt) in raw["enc"]:
        c_out, c_in = w.shape[0], w.shape[1]
        k = KSIZE * KSIZE * c_in
        kpad = _round_up(k, LANE)
        cpad = _round_up(c_out, LANE)
        wm = jnp.transpose(w, (2, 3, 1, 0)).reshape(k, c_out)      # columns = (kh, kw, ci)
        wm = jnp.pad(wm, ((0, kpad - k), (0, cpad - c_out)))
        prep["enc"].append((wm[None],                              # (1, kpad, cpad)
                            _pad_vec(b, cpad, 0.0), _pad_vec(g, cpad, 1.0), _pad_vec(bt, cpad, 0.0)))
        meta["enc"].append(dict(c_out=c_out, kpad=kpad, cpad=cpad))

    for (w, b, g, bt) in raw["dec"]:
        c_in, c_out = w.shape[0], w.shape[1]
        kphase = 4 * c_in
        kpad = _round_up(kphase, LANE)
        cpad = _round_up(c_out, LANE)
        phases = []
        for r in (0, 1):
            kh_idx = jnp.array([3, 1] if r == 0 else [2, 0])       # kernel taps hit by this parity
            for s in (0, 1):
                kw_idx = jnp.array([3, 1] if s == 0 else [2, 0])
                wp = jnp.take(jnp.take(w, kh_idx, axis=2), kw_idx, axis=3)   # (Cin, Cout, 2, 2)
                wp = jnp.transpose(wp, (2, 3, 0, 1)).reshape(kphase, c_out)  # rows = (ti, tj, ci)
                wp = jnp.pad(wp, ((0, kpad - kphase), (0, cpad - c_out)))
                phases.append(wp)
        prep["dec"].append((jnp.stack(phases, axis=0),             # (4, kpad, cpad)
                            _pad_vec(b, cpad, 0.0), _pad_vec(g, cpad, 1.0), _pad_vec(bt, cpad, 0.0)))
        meta["dec"].append(dict(c_out=c_out, kpad=kpad, cpad=cpad))
    return prep, meta


# ------------------------------------------------------------------ direct lax reference (PyTorch semantics)
def _bn_relu_nchw(y, gamma, beta):
    mean = jnp.mean(y, axis=(0, 2, 3), keepdims=True)
    var = jnp.mean((y - mean) ** 2, axis=(0, 2, 3), keepdims=True)
    yn = (y - mean) * lax.rsqrt(var + BN_EPS) * gamma[None, :, None, None] + beta[None, :, None, None]
    return jnp.maximum(yn, 0.0)


def lax_reference_forward(x, raw):
    h = x
    for (w, b, g, bt) in raw["enc"]:
        y = lax.conv_general_dilated(h, w, (2, 2), [(1, 1), (1, 1)],
                                     dimension_numbers=("NCHW", "OIHW", "NCHW"),
                                     precision=lax.Precision.HIGHEST)
        h = _bn_relu_nchw(y + b[None, :, None, None], g, bt)
    enc = h
    for (w, b, g, bt) in raw["dec"]:
        w_rot = jnp.flip(w, (2, 3)).transpose(1, 0, 2, 3)          # (Cout, Cin, kh, kw)
        y = lax.conv_general_dilated(h, w_rot, (1, 1), [(2, 2), (2, 2)], lhs_dilation=(2, 2),
                                     dimension_numbers=("NCHW", "OIHW", "NCHW"),
                                     precision=lax.Precision.HIGHEST)
        h = _bn_relu_nchw(y + b[None, :, None, None], g, bt)
    return enc, h


# ------------------------------------------------------------------ main
if __name__ == "__main__":
    TOTAL_LAYERS = 2
    key = jax.random.PRNGKey(0)
    key, kx, kp = jax.random.split(key, 3)

    x = jax.random.normal(kx, (2, 3, 16, 16), jnp.float32)   # NCHW, like the PyTorch module
    raw = init_params(kp, TOTAL_LAYERS)
    prep, meta = prepare_params(raw)

    fwd_pallas = jax.jit(lambda xx, pp: autoencoder_forward(xx, pp, meta, pallas_gemm_bn_relu))
    fwd_ref_bf16 = jax.jit(lambda xx, pp: autoencoder_forward(xx, pp, meta, jnp_gemm_bf16))
    fwd_ref_f32 = jax.jit(lambda xx, pp: autoencoder_forward(xx, pp, meta, jnp_gemm_f32))
    fwd_ref_lax = jax.jit(lax_reference_forward)

    encoded, decoded = fwd_pallas(x, prep)
    jax.block_until_ready((encoded, decoded))

    # Shapes follow PyTorch semantics.
    assert encoded.shape == (2, 64 * 2 ** (TOTAL_LAYERS - 1), 16 // 2 ** TOTAL_LAYERS, 16 // 2 ** TOTAL_LAYERS)
    assert decoded.shape == (2, 3, 16, 16)

    # 1) Pallas kernel vs identical jnp math (same bf16 GEMM inputs) -> validates the kernel.
    enc_r, dec_r = fwd_ref_bf16(x, prep)
    assert jnp.allclose(encoded, enc_r, atol=1e-3, rtol=1e-3)
    assert jnp.allclose(decoded, dec_r, atol=1e-3, rtol=1e-3)

    # 2) f32 sub-pixel decomposition vs direct lax convs (PyTorch semantics) -> validates lowering.
    enc_d, dec_d = fwd_ref_f32(x, prep)
    enc_l, dec_l = fwd_ref_lax(x, raw)
    assert jnp.allclose(enc_d, enc_l, atol=1e-4, rtol=1e-4)
    assert jnp.allclose(dec_d, dec_l, atol=1e-4, rtol=1e-4)

    print("KERNEL_OK")
</pallas_src>

<mosaic_0001>
module attributes {stable_mosaic.version = 11 : i64} {
  func.func @_gemm_bn_relu_kernel(%arg0: i32, %arg1: memref<128x128xbf16, #tpu.memory_space<vmem>>, %arg2: memref<1x128x128xbf16, #tpu.memory_space<vmem>>, %arg3: memref<1x128xf32, #tpu.memory_space<vmem>>, %arg4: memref<1x128xf32, #tpu.memory_space<vmem>>, %arg5: memref<1x128xf32, #tpu.memory_space<vmem>>, %arg6: memref<128x128xf32, #tpu.memory_space<vmem>>) attributes {dimension_semantics = [#tpu.dimension_semantics<arbitrary>], iteration_bounds = array<i64: 1>, scalar_prefetch = 0 : i64, scratch_operands = 0 : i64, tpu.core_type = #tpu.core_type<tc>, window_params = [{pipeline_mode = #tpu.pipeline_mode<synchronous>, transform_indices = @transform_0, window_bounds = array<i64: 128, 128>}, {pipeline_mode = #tpu.pipeline_mode<synchronous>, transform_indices = @transform_1, window_bounds = array<i64: 1, 128, 128>}, {pipeline_mode = #tpu.pipeline_mode<synchronous>, transform_indices = @transform_2, window_bounds = array<i64: 1, 128>}, {pipeline_mode = #tpu.pipeline_mode<synchronous>, transform_indices = @transform_3, window_bounds = array<i64: 1, 128>}, {pipeline_mode = #tpu.pipeline_mode<synchronous>, transform_indices = @transform_4, window_bounds = array<i64: 1, 128>}, {pipeline_mode = #tpu.pipeline_mode<synchronous>, transform_indices = @transform_5, window_bounds = array<i64: 128, 128>}]} {
    %c0 = arith.constant 0 : index
    %c0_0 = arith.constant 0 : index
    %0 = vector.load %arg3[%c0, %c0_0] : memref<1x128xf32, #tpu.memory_space<vmem>>, vector<1x128xf32>
    %cst = arith.constant 0.000000e+00 : f32
    %1 = vector.broadcast %cst : f32 to vector<1x128xf32>
    %c0_1 = arith.constant 0 : index
    %c0_2 = arith.constant 0 : index
    %2 = vector.load %arg1[%c0_1, %c0_2] : memref<128x128xbf16, #tpu.memory_space<vmem>>, vector<128x128xbf16>
    %c0_3 = arith.constant 0 : index
    %c0_4 = arith.constant 0 : index
    %c0_5 = arith.constant 0 : index
    %3 = vector.load %arg2[%c0_3, %c0_4, %c0_5] : memref<1x128x128xbf16, #tpu.memory_space<vmem>>, vector<1x128x128xbf16>
    %4 = vector.shape_cast %3 : vector<1x128x128xbf16> to vector<128x128xbf16>
    %cst_6 = arith.constant dense<0.000000e+00> : vector<128x128xf32>
    %5 = tpu.matmul %2, %4, %cst_6 {dimension_numbers = #tpu.dot_dimension_numbers<[1], [0], [0], [1], [0, 0, 1, 1], [], []>} : vector<128x128xbf16>, vector<128x128xbf16>, vector<128x128xf32> -> vector<128x128xf32>
    %6 = vector.broadcast %0 : vector<1x128xf32> to vector<128x128xf32>
    %7 = arith.addf %5, %6 : vector<128x128xf32>
    %cst_7 = arith.constant dense<0.000000e+00> : vector<128xf32>
    %8 = vector.multi_reduction <add>, %7, %cst_7 [0] : vector<128x128xf32> to vector<128xf32>
    %9 = vector.shape_cast %8 : vector<128xf32> to vector<1x128xf32>
    %10 = arith.addf %1, %9 : vector<1x128xf32>
    %cst_8 = arith.constant 7.812500e-03 : f32
    %11 = vector.broadcast %cst_8 : f32 to vector<1x128xf32>
    %12 = arith.mulf %10, %11 : vector<1x128xf32>
    %cst_9 = arith.constant 0.000000e+00 : f32
    %13 = vector.broadcast %cst_9 : f32 to vector<1x128xf32>
    %14 = vector.broadcast %12 : vector<1x128xf32> to vector<128x128xf32>
    %15 = arith.subf %7, %14 : vector<128x128xf32>
    %16 = arith.mulf %15, %15 : vector<128x128xf32>
    %cst_10 = arith.constant dense<0.000000e+00> : vector<128xf32>
    %17 = vector.multi_reduction <add>, %16, %cst_10 [0] : vector<128x128xf32> to vector<128xf32>
    %18 = vector.shape_cast %17 : vector<128xf32> to vector<1x128xf32>
    %19 = arith.addf %13, %18 : vector<1x128xf32>
    %cst_11 = arith.constant 7.812500e-03 : f32
    %20 = vector.broadcast %cst_11 : f32 to vector<1x128xf32>
    %21 = arith.mulf %19, %20 : vector<1x128xf32>
    %cst_12 = arith.constant 9.99999974E-6 : f32
    %22 = vector.broadcast %cst_12 : f32 to vector<1x128xf32>
    %23 = arith.addf %21, %22 : vector<1x128xf32>
    %24 = math.rsqrt %23 : vector<1x128xf32>
    %c0_13 = arith.constant 0 : index
    %c0_14 = arith.constant 0 : index
    %25 = vector.load %arg4[%c0_13, %c0_14] : memref<1x128xf32, #tpu.memory_space<vmem>>, vector<1x128xf32>
    %26 = arith.mulf %24, %25 : vector<1x128xf32>
    %c0_15 = arith.constant 0 : index
    %c0_16 = arith.constant 0 : index
    %27 = vector.load %arg5[%c0_15, %c0_16] : memref<1x128xf32, #tpu.memory_space<vmem>>, vector<1x128xf32>
    %28 = arith.mulf %12, %26 : vector<1x128xf32>
    %29 = arith.subf %27, %28 : vector<1x128xf32>
    %30 = vector.broadcast %26 : vector<1x128xf32> to vector<128x128xf32>
    %31 = arith.mulf %7, %30 : vector<128x128xf32>
    %32 = vector.broadcast %29 : vector<1x128xf32> to vector<128x128xf32>
    %33 = arith.addf %31, %32 : vector<128x128xf32>
    %cst_17 = arith.constant 0.000000e+00 : f32
    %34 = vector.broadcast %cst_17 : f32 to vector<128x128xf32>
    %35 = arith.maximumf %33, %34 : vector<128x128xf32>
    %c0_18 = arith.constant 0 : index
    %c0_19 = arith.constant 0 : index
    %36 = vector.load %arg6[%c0_18, %c0_19] : memref<128x128xf32, #tpu.memory_space<vmem>>, vector<128x128xf32>
    tpu.vector_store %arg6[%c0_18, %c0_19], %35 {strides = array<i32>} : memref<128x128xf32, #tpu.memory_space<vmem>>, vector<128x128xf32>,
    return
  }
  func.func @transform_0(%arg0: i32) -> (i32, i32) {
    %c0_i32 = arith.constant 0 : i32
    %c0_i32_0 = arith.constant 0 : i32
    %c0_i32_1 = arith.constant 0 : i32
    return %c0_i32, %c0_i32_0 : i32, i32
  }
  func.func @transform_1(%arg0: i32) -> (i32, i32, i32) {
    %c0_i32 = arith.constant 0 : i32
    %c0_i32_0 = arith.constant 0 : i32
    %c0_i32_1 = arith.constant 0 : i32
    %c0_i32_2 = arith.constant 0 : i32
    return %c0_i32, %c0_i32_0, %c0_i32_1 : i32, i32, i32
  }
  func.func @transform_2(%arg0: i32) -> (i32, i32) {
    %c0_i32 = arith.constant 0 : i32
    %c0_i32_0 = arith.constant 0 : i32
    %c0_i32_1 = arith.constant 0 : i32
    return %c0_i32, %c0_i32_0 : i32, i32
  }
  func.func @transform_3(%arg0: i32) -> (i32, i32) {
    %c0_i32 = arith.constant 0 : i32
    %c0_i32_0 = arith.constant 0 : i32
    %c0_i32_1 = arith.constant 0 : i32
    return %c0_i32, %c0_i32_0 : i32, i32
  }
  func.func @transform_4(%arg0: i32) -> (i32, i32) {
    %c0_i32 = arith.constant 0 : i32
    %c0_i32_0 = arith.constant 0 : i32
    %c0_i32_1 = arith.constant 0 : i32
    return %c0_i32, %c0_i32_0 : i32, i32
  }
  func.func @transform_5(%arg0: i32) -> (i32, i32) {
    %c0_i32 = arith.constant 0 : i32
    %c0_i32_0 = arith.constant 0 : i32
    %c0_i32_1 = arith.constant 0 : i32
    return %c0_i32, %c0_i32_0 : i32, i32
  }
}

module attributes {stable_mosaic.version = 11 : i64} {
  func.func @_gemm_bn_relu_kernel(%arg0: i32, %arg1: memref<32x1024xbf16, #tpu.memory_space<vmem>>, %arg2: memref<1x1024x128xbf16, #tpu.memory_space<vmem>>, %arg3: memref<1x128xf32, #tpu.memory_space<vmem>>, %arg4: memref<1x128xf32, #tpu.memory_space<vmem>>, %arg5: memref<1x128xf32, #tpu.memory_space<vmem>>, %arg6: memref<32x128xf32, #tpu.memory_space<vmem>>) attributes {dimension_semantics = [#tpu.dimension_semantics<arbitrary>], iteration_bounds = array<i64: 1>, scalar_prefetch = 0 : i64, scratch_operands = 0 : i64, tpu.core_type = #tpu.core_type<tc>, window_params = [{pipeline_mode = #tpu.pipeline_mode<synchronous>, transform_indices = @transform_0, window_bounds = array<i64: 32, 1024>}, {pipeline_mode = #tpu.pipeline_mode<synchronous>, transform_indices = @transform_1, window_bounds = array<i64: 1, 1024, 128>}, {pipeline_mode = #tpu.pipeline_mode<synchronous>, transform_indices = @transform_2, window_bounds = array<i64: 1, 128>}, {pipeline_mode = #tpu.pipeline_mode<synchronous>, transform_indices = @transform_3, window_bounds = array<i64: 1, 128>}, {pipeline_mode = #tpu.pipeline_mode<synchronous>, transform_indices = @transform_4, window_bounds = array<i64: 1, 128>}, {pipeline_mode = #tpu.pipeline_mode<synchronous>, transform_indices = @transform_5, window_bounds = array<i64: 32, 128>}]} {
    %c0 = arith.constant 0 : index
    %c0_0 = arith.constant 0 : index
    %0 = vector.load %arg3[%c0, %c0_0] : memref<1x128xf32, #tpu.memory_space<vmem>>, vector<1x128xf32>
    %cst = arith.constant 0.000000e+00 : f32
    %1 = vector.broadcast %cst : f32 to vector<1x128xf32>
    %c0_1 = arith.constant 0 : index
    %c0_2 = arith.constant 0 : index
    %2 = vector.load %arg1[%c0_1, %c0_2] : memref<32x1024xbf16, #tpu.memory_space<vmem>>, vector<32x1024xbf16>
    %c0_3 = arith.constant 0 : index
    %c0_4 = arith.constant 0 : index
    %c0_5 = arith.constant 0 : index
    %3 = vector.load %arg2[%c0_3, %c0_4, %c0_5] : memref<1x1024x128xbf16, #tpu.memory_space<vmem>>, vector<1x1024x128xbf16>
    %4 = vector.shape_cast %3 : vector<1x1024x128xbf16> to vector<1024x128xbf16>
    %cst_6 = arith.constant dense<0.000000e+00> : vector<32x128xf32>
    %5 = tpu.matmul %2, %4, %cst_6 {dimension_numbers = #tpu.dot_dimension_numbers<[1], [0], [0], [1], [0, 0, 1, 1], [], []>} : vector<32x1024xbf16>, vector<1024x128xbf16>, vector<32x128xf32> -> vector<32x128xf32>
    %6 = vector.broadcast %0 : vector<1x128xf32> to vector<32x128xf32>
    %7 = arith.addf %5, %6 : vector<32x128xf32>
    %cst_7 = arith.constant dense<0.000000e+00> : vector<128xf32>
    %8 = vector.multi_reduction <add>, %7, %cst_7 [0] : vector<32x128xf32> to vector<128xf32>
    %9 = vector.shape_cast %8 : vector<128xf32> to vector<1x128xf32>
    %10 = arith.addf %1, %9 : vector<1x128xf32>
    %cst_8 = arith.constant 3.125000e-02 : f32
    %11 = vector.broadcast %cst_8 : f32 to vector<1x128xf32>
    %12 = arith.mulf %10, %11 : vector<1x128xf32>
    %cst_9 = arith.constant 0.000000e+00 : f32
    %13 = vector.broadcast %cst_9 : f32 to vector<1x128xf32>
    %14 = vector.broadcast %12 : vector<1x128xf32> to vector<32x128xf32>
    %15 = arith.subf %7, %14 : vector<32x128xf32>
    %16 = arith.mulf %15, %15 : vector<32x128xf32>
    %cst_10 = arith.constant dense<0.000000e+00> : vector<128xf32>
    %17 = vector.multi_reduction <add>, %16, %cst_10 [0] : vector<32x128xf32> to vector<128xf32>
    %18 = vector.shape_cast %17 : vector<128xf32> to vector<1x128xf32>
    %19 = arith.addf %13, %18 : vector<1x128xf32>
    %cst_11 = arith.constant 3.125000e-02 : f32
    %20 = vector.broadcast %cst_11 : f32 to vector<1x128xf32>
    %21 = arith.mulf %19, %20 : vector<1x128xf32>
    %cst_12 = arith.constant 9.99999974E-6 : f32
    %22 = vector.broadcast %cst_12 : f32 to vector<1x128xf32>
    %23 = arith.addf %21, %22 : vector<1x128xf32>
    %24 = math.rsqrt %23 : vector<1x128xf32>
    %c0_13 = arith.constant 0 : index
    %c0_14 = arith.constant 0 : index
    %25 = vector.load %arg4[%c0_13, %c0_14] : memref<1x128xf32, #tpu.memory_space<vmem>>, vector<1x128xf32>
    %26 = arith.mulf %24, %25 : vector<1x128xf32>
    %c0_15 = arith.constant 0 : index
    %c0_16 = arith.constant 0 : index
    %27 = vector.load %arg5[%c0_15, %c0_16] : memref<1x128xf32, #tpu.memory_space<vmem>>, vector<1x128xf32>
    %28 = arith.mulf %12, %26 : vector<1x128xf32>
    %29 = arith.subf %27, %28 : vector<1x128xf32>
    %30 = vector.broadcast %26 : vector<1x128xf32> to vector<32x128xf32>
    %31 = arith.mulf %7, %30 : vector<32x128xf32>
    %32 = vector.broadcast %29 : vector<1x128xf32> to vector<32x128xf32>
    %33 = arith.addf %31, %32 : vector<32x128xf32>
    %cst_17 = arith.constant 0.000000e+00 : f32
    %34 = vector.broadcast %cst_17 : f32 to vector<32x128xf32>
    %35 = arith.maximumf %33, %34 : vector<32x128xf32>
    %c0_18 = arith.constant 0 : index
    %c0_19 = arith.constant 0 : index
    %36 = vector.load %arg6[%c0_18, %c0_19] : memref<32x128xf32, #tpu.memory_space<vmem>>, vector<32x128xf32>
    tpu.vector_store %arg6[%c0_18, %c0_19], %35 {strides = array<i32>} : memref<32x128xf32, #tpu.memory_space<vmem>>, vector<32x128xf32>,
    return
  }
  func.func @transform_0(%arg0: i32) -> (i32, i32) {
    %c0_i32 = arith.constant 0 : i32
    %c0_i32_0 = arith.constant 0 : i32
    %c0_i32_1 = arith.constant 0 : i32
    return %c0_i32, %c0_i32_0 : i32, i32
  }
  func.func @transform_1(%arg0: i32) -> (i32, i32, i32) {
    %c0_i32 = arith.constant 0 : i32
    %c0_i32_0 = arith.constant 0 : i32
    %c0_i32_1 = arith.constant 0 : i32
    %c0_i32_2 = arith.constant 0 : i32
    return %c0_i32, %c0_i32_0, %c0_i32_1 : i32, i32, i32
  }
  func.func @transform_2(%arg0: i32) -> (i32, i32) {
    %c0_i32 = arith.constant 0 : i32
    %c0_i32_0 = arith.constant 0 : i32
    %c0_i32_1 = arith.constant 0 : i32
    return %c0_i32, %c0_i32_0 : i32, i32
  }
  func.func @transform_3(%arg0: i32) -> (i32, i32) {
    %c0_i32 = arith.constant 0 : i32
    %c0_i32_0 = arith.constant 0 : i32
    %c0_i32_1 = arith.constant 0 : i32
    return %c0_i32, %c0_i32_0 : i32, i32
  }
  func.func @transform_4(%arg0: i32) -> (i32, i32) {
    %c0_i32 = arith.constant 0 : i32
    %c0_i32_0 = arith.constant 0 : i32
    %c0_i32_1 = arith.constant 0 : i32
    return %c0_i32, %c0_i32_0 : i32, i32
  }
  func.func @transform_5(%arg0: i32) -> (i32, i32) {
    %c0_i32 = arith.constant 0 : i32
    %c0_i32_0 = arith.constant 0 : i32
    %c0_i32_1 = arith.constant 0 : i32
    return %c0_i32, %c0_i32_0 : i32, i32
  }
}

module attributes {stable_mosaic.version = 11 : i64} {
  func.func @_gemm_bn_relu_kernel(%arg0: i32, %arg1: memref<32x2048xbf16, #tpu.memory_space<vmem>>, %arg2: memref<4x512x128xbf16, #tpu.memory_space<vmem>>, %arg3: memref<1x128xf32, #tpu.memory_space<vmem>>, %arg4: memref<1x128xf32, #tpu.memory_space<vmem>>, %arg5: memref<1x128xf32, #tpu.memory_space<vmem>>, %arg6: memref<32x512xf32, #tpu.memory_space<vmem>>) attributes {dimension_semantics = [#tpu.dimension_semantics<arbitrary>], iteration_bounds = array<i64: 1>, scalar_prefetch = 0 : i64, scratch_operands = 0 : i64, tpu.core_type = #tpu.core_type<tc>, window_params = [{pipeline_mode = #tpu.pipeline_mode<synchronous>, transform_indices = @transform_0, window_bounds = array<i64: 32, 2048>}, {pipeline_mode = #tpu.pipeline_mode<synchronous>, transform_indices = @transform_1, window_bounds = array<i64: 4, 512, 128>}, {pipeline_mode = #tpu.pipeline_mode<synchronous>, transform_indices = @transform_2, window_bounds = array<i64: 1, 128>}, {pipeline_mode = #tpu.pipeline_mode<synchronous>, transform_indices = @transform_3, window_bounds = array<i64: 1, 128>}, {pipeline_mode = #tpu.pipeline_mode<synchronous>, transform_indices = @transform_4, window_bounds = array<i64: 1, 128>}, {pipeline_mode = #tpu.pipeline_mode<synchronous>, transform_indices = @transform_5, window_bounds = array<i64: 32, 512>}]} {
    %c0 = arith.constant 0 : index
    %c0_0 = arith.constant 0 : index
    %0 = vector.load %arg3[%c0, %c0_0] : memref<1x128xf32, #tpu.memory_space<vmem>>, vector<1x128xf32>
    %cst = arith.constant 0.000000e+00 : f32
    %1 = vector.broadcast %cst : f32 to vector<1x128xf32>
    %c0_1 = arith.constant 0 : index
    %c0_2 = arith.constant 0 : index
    %2 = vector.load %arg1[%c0_1, %c0_2] : memref<32x2048xbf16, #tpu.memory_space<vmem>>, vector<32x512xbf16>
    %c0_3 = arith.constant 0 : index
    %c0_4 = arith.constant 0 : index
    %c0_5 = arith.constant 0 : index
    %3 = vector.load %arg2[%c0_3, %c0_4, %c0_5] : memref<4x512x128xbf16, #tpu.memory_space<vmem>>, vector<1x512x128xbf16>
    %4 = vector.shape_cast %3 : vector<1x512x128xbf16> to vector<512x128xbf16>
    %cst_6 = arith.constant dense<0.000000e+00> : vector<32x128xf32>
    %5 = tpu.matmul %2, %4, %cst_6 {dimension_numbers = #tpu.dot_dimension_numbers<[1], [0], [0], [1], [0, 0, 1, 1], [], []>} : vector<32x512xbf16>, vector<512x128xbf16>, vector<32x128xf32> -> vector<32x128xf32>
    %6 = vector.broadcast %0 : vector<1x128xf32> to vector<32x128xf32>
    %7 = arith.addf %5, %6 : vector<32x128xf32>
    %cst_7 = arith.constant dense<0.000000e+00> : vector<128xf32>
    %8 = vector.multi_reduction <add>, %7, %cst_7 [0] : vector<32x128xf32> to vector<128xf32>
    %9 = vector.shape_cast %8 : vector<128xf32> to vector<1x128xf32>
    %10 = arith.addf %1, %9 : vector<1x128xf32>
    %c0_8 = arith.constant 0 : index
    %c512 = arith.constant 512 : index
    %11 = vector.load %arg1[%c0_8, %c512] : memref<32x2048xbf16, #tpu.memory_space<vmem>>, vector<32x512xbf16>
    %c1 = arith.constant 1 : index
    %c0_9 = arith.constant 0 : index
    %c0_10 = arith.constant 0 : index
    %12 = vector.load %arg2[%c1, %c0_9, %c0_10] : memref<4x512x128xbf16, #tpu.memory_space<vmem>>, vector<1x512x128xbf16>
    %13 = vector.shape_cast %12 : vector<1x512x128xbf16> to vector<512x128xbf16>
    %cst_11 = arith.constant dense<0.000000e+00> : vector<32x128xf32>
    %14 = tpu.matmul %11, %13, %cst_11 {dimension_numbers = #tpu.dot_dimension_numbers<[1], [0], [0], [1], [0, 0, 1, 1], [], []>} : vector<32x512xbf16>, vector<512x128xbf16>, vector<32x128xf32> -> vector<32x128xf32>
    %15 = vector.broadcast %0 : vector<1x128xf32> to vector<32x128xf32>
    %16 = arith.addf %14, %15 : vector<32x128xf32>
    %cst_12 = arith.constant dense<0.000000e+00> : vector<128xf32>
    %17 = vector.multi_reduction <add>, %16, %cst_12 [0] : vector<32x128xf32> to vector<128xf32>
    %18 = vector.shape_cast %17 : vector<128xf32> to vector<1x128xf32>
    %19 = arith.addf %10, %18 : vector<1x128xf32>
    %c0_13 = arith.constant 0 : index
    %c1024 = arith.constant 1024 : index
    %20 = vector.load %arg1[%c0_13, %c1024] : memref<32x2048xbf16, #tpu.memory_space<vmem>>, vector<32x512xbf16>
    %c2 = arith.constant 2 : index
    %c0_14 = arith.constant 0 : index
    %c0_15 = arith.constant 0 : index
    %21 = vector.load %arg2[%c2, %c0_14, %c0_15] : memref<4x512x128xbf16, #tpu.memory_space<vmem>>, vector<1x512x128xbf16>
    %22 = vector.shape_cast %21 : vector<1x512x128xbf16> to vector<512x128xbf16>
    %cst_16 = arith.constant dense<0.000000e+00> : vector<32x128xf32>
    %23 = tpu.matmul %20, %22, %cst_16 {dimension_numbers = #tpu.dot_dimension_numbers<[1], [0], [0], [1], [0, 0, 1, 1], [], []>} : vector<32x512xbf16>, vector<512x128xbf16>, vector<32x128xf32> -> vector<32x128xf32>
    %24 = vector.broadcast %0 : vector<1x128xf32> to vector<32x128xf32>
    %25 = arith.addf %23, %24 : vector<32x128xf32>
    %cst_17 = arith.constant dense<0.000000e+00> : vector<128xf32>
    %26 = vector.multi_reduction <add>, %25, %cst_17 [0] : vector<32x128xf32> to vector<128xf32>
    %27 = vector.shape_cast %26 : vector<128xf32> to vector<1x128xf32>
    %28 = arith.addf %19, %27 : vector<1x128xf32>
    %c0_18 = arith.constant 0 : index
    %c1536 = arith.constant 1536 : index
    %29 = vector.load %arg1[%c0_18, %c1536] : memref<32x2048xbf16, #tpu.memory_space<vmem>>, vector<32x512xbf16>
    %c3 = arith.constant 3 : index
    %c0_19 = arith.constant 0 : index
    %c0_20 = arith.constant 0 : index
    %30 = vector.load %arg2[%c3, %c0_19, %c0_20] : memref<4x512x128xbf16, #tpu.memory_space<vmem>>, vector<1x512x128xbf16>
    %31 = vector.shape_cast %30 : vector<1x512x128xbf16> to vector<512x128xbf16>
    %cst_21 = arith.constant dense<0.000000e+00> : vector<32x128xf32>
    %32 = tpu.matmul %29, %31, %cst_21 {dimension_numbers = #tpu.dot_dimension_numbers<[1], [0], [0], [1], [0, 0, 1, 1], [], []>} : vector<32x512xbf16>, vector<512x128xbf16>, vector<32x128xf32> -> vector<32x128xf32>
    %33 = vector.broadcast %0 : vector<1x128xf32> to vector<32x128xf32>
    %34 = arith.addf %32, %33 : vector<32x128xf32>
    %cst_22 = arith.constant dense<0.000000e+00> : vector<128xf32>
    %35 = vector.multi_reduction <add>, %34, %cst_22 [0] : vector<32x128xf32> to vector<128xf32>
    %36 = vector.shape_cast %35 : vector<128xf32> to vector<1x128xf32>
    %37 = arith.addf %28, %36 : vector<1x128xf32>
    %cst_23 = arith.constant 7.812500e-03 : f32
    %38 = vector.broadcast %cst_23 : f32 to vector<1x128xf32>
    %39 = arith.mulf %37, %38 : vector<1x128xf32>
    %cst_24 = arith.constant 0.000000e+00 : f32
    %40 = vector.broadcast %cst_24 : f32 to vector<1x128xf32>
    %41 = vector.broadcast %39 : vector<1x128xf32> to vector<32x128xf32>
    %42 = arith.subf %7, %41 : vector<32x128xf32>
    %43 = arith.mulf %42, %42 : vector<32x128xf32>
    %cst_25 = arith.constant dense<0.000000e+00> : vector<128xf32>
    %44 = vector.multi_reduction <add>, %43, %cst_25 [0] : vector<32x128xf32> to vector<128xf32>
    %45 = vector.shape_cast %44 : vector<128xf32> to vector<1x128xf32>
    %46 = arith.addf %40, %45 : vector<1x128xf32>
    %47 = vector.broadcast %39 : vector<1x128xf32> to vector<32x128xf32>
    %48 = arith.subf %16, %47 : vector<32x128xf32>
    %49 = arith.mulf %48, %48 : vector<32x128xf32>
    %cst_26 = arith.constant dense<0.000000e+00> : vector<128xf32>
    %50 = vector.multi_reduction <add>, %49, %cst_26 [0] : vector<32x128xf32> to vector<128xf32>
    %51 = vector.shape_cast %50 : vector<128xf32> to vector<1x128xf32>
    %52 = arith.addf %46, %51 : vector<1x128xf32>
    %53 = vector.broadcast %39 : vector<1x128xf32> to vector<32x128xf32>
    %54 = arith.subf %25, %53 : vector<32x128xf32>
    %55 = arith.mulf %54, %54 : vector<32x128xf32>
    %cst_27 = arith.constant dense<0.000000e+00> : vector<128xf32>
    %56 = vector.multi_reduction <add>, %55, %cst_27 [0] : vector<32x128xf32> to vector<128xf32>
    %57 = vector.shape_cast %56 : vector<128xf32> to vector<1x128xf32>
    %58 = arith.addf %52, %57 : vector<1x128xf32>
    %59 = vector.broadcast %39 : vector<1x128xf32> to vector<32x128xf32>
    %60 = arith.subf %34, %59 : vector<32x128xf32>
    %61 = arith.mulf %60, %60 : vector<32x128xf32>
    %cst_28 = arith.constant dense<0.000000e+00> : vector<128xf32>
    %62 = vector.multi_reduction <add>, %61, %cst_28 [0] : vector<32x128xf32> to vector<128xf32>
    %63 = vector.shape_cast %62 : vector<128xf32> to vector<1x128xf32>
    %64 = arith.addf %58, %63 : vector<1x128xf32>
    %cst_29 = arith.constant 7.812500e-03 : f32
    %65 = vector.broadcast %cst_29 : f32 to vector<1x128xf32>
    %66 = arith.mulf %64, %65 : vector<1x128xf32>
    %cst_30 = arith.constant 9.99999974E-6 : f32
    %67 = vector.broadcast %cst_30 : f32 to vector<1x128xf32>
    %68 = arith.addf %66, %67 : vector<1x128xf32>
    %69 = math.rsqrt %68 : vector<1x128xf32>
    %c0_31 = arith.constant 0 : index
    %c0_32 = arith.constant 0 : index
    %70 = vector.load %arg4[%c0_31, %c0_32] : memref<1x128xf32, #tpu.memory_space<vmem>>, vector<1x128xf32>
    %71 = arith.mulf %69, %70 : vector<1x128xf32>
    %c0_33 = arith.constant 0 : index
    %c0_34 = arith.constant 0 : index
    %72 = vector.load %arg5[%c0_33, %c0_34] : memref<1x128xf32, #tpu.memory_space<vmem>>, vector<1x128xf32>
    %73 = arith.mulf %39, %71 : vector<1x128xf32>
    %74 = arith.subf %72, %73 : vector<1x128xf32>
    %75 = vector.broadcast %71 : vector<1x128xf32> to vector<32x128xf32>
    %76 = arith.mulf %7, %75 : vector<32x128xf32>
    %77 = vector.broadcast %74 : vector<1x128xf32> to vector<32x128xf32>
    %78 = arith.addf %76, %77 : vector<32x128xf32>
    %cst_35 = arith.constant 0.000000e+00 : f32
    %79 = vector.broadcast %cst_35 : f32 to vector<32x128xf32>
    %80 = arith.maximumf %78, %79 : vector<32x128xf32>
    %c0_36 = arith.constant 0 : index
    %c0_37 = arith.constant 0 : index
    %81 = vector.load %arg6[%c0_36, %c0_37] : memref<32x512xf32, #tpu.memory_space<vmem>>, vector<32x128xf32>
    tpu.vector_store %arg6[%c0_36, %c0_37], %80 {strides = array<i32>} : memref<32x512xf32, #tpu.memory_space<vmem>>, vector<32x128xf32>,
    %82 = vector.broadcast %71 : vector<1x128xf32> to vector<32x128xf32>
    %83 = arith.mulf %16, %82 : vector<32x128xf32>
    %84 = vector.broadcast %74 : vector<1x128xf32> to vector<32x128xf32>
    %85 = arith.addf %83, %84 : vector<32x128xf32>
    %cst_38 = arith.constant 0.000000e+00 : f32
    %86 = vector.broadcast %cst_38 : f32 to vector<32x128xf32>
    %87 = arith.maximumf %85, %86 : vector<32x128xf32>
    %c0_39 = arith.constant 0 : index
    %c128 = arith.constant 128 : index
    %88 = vector.load %arg6[%c0_39, %c128] : memref<32x512xf32, #tpu.memory_space<vmem>>, vector<32x128xf32>
    tpu.vector_store %arg6[%c0_39, %c128], %87 {strides = array<i32>} : memref<32x512xf32, #tpu.memory_space<vmem>>, vector<32x128xf32>,
    %89 = vector.broadcast %71 : vector<1x128xf32> to vector<32x128xf32>
    %90 = arith.mulf %25, %89 : vector<32x128xf32>
    %91 = vector.broadcast %74 : vector<1x128xf32> to vector<32x128xf32>
    %92 = arith.addf %90, %91 : vector<32x128xf32>
    %cst_40 = arith.constant 0.000000e+00 : f32
    %93 = vector.broadcast %cst_40 : f32 to vector<32x128xf32>
    %94 = arith.maximumf %92, %93 : vector<32x128xf32>
    %c0_41 = arith.constant 0 : index
    %c256 = arith.constant 256 : index
    %95 = vector.load %arg6[%c0_41, %c256] : memref<32x512xf32, #tpu.memory_space<vmem>>, vector<32x128xf32>
    tpu.vector_store %arg6[%c0_41, %c256], %94 {strides = array<i32>} : memref<32x512xf32, #tpu.memory_space<vmem>>, vector<32x128xf32>,
    %96 = vector.broadcast %71 : vector<1x128xf32> to vector<32x128xf32>
    %97 = arith.mulf %34, %96 : vector<32x128xf32>
    %98 = vector.broadcast %74 : vector<1x128xf32> to vector<32x128xf32>
    %99 = arith.addf %97, %98 : vector<32x128xf32>
    %cst_42 = arith.constant 0.000000e+00 : f32
    %100 = vector.broadcast %cst_42 : f32 to vector<32x128xf32>
    %101 = arith.maximumf %99, %100 : vector<32x128xf32>
    %c0_43 = arith.constant 0 : index
    %c384 = arith.constant 384 : index
    %102 = vector.load %arg6[%c0_43, %c384] : memref<32x512xf32, #tpu.memory_space<vmem>>, vector<32x128xf32>
    tpu.vector_store %arg6[%c0_43, %c384], %101 {strides = array<i32>} : memref<32x512xf32, #tpu.memory_space<vmem>>, vector<32x128xf32>,
    return
  }
  func.func @transform_0(%arg0: i32) -> (i32, i32) {
    %c0_i32 = arith.constant 0 : i32
    %c0_i32_0 = arith.constant 0 : i32
    %c0_i32_1 = arith.constant 0 : i32
    return %c0_i32, %c0_i32_0 : i32, i32
  }
  func.func @transform_1(%arg0: i32) -> (i32, i32, i32) {
    %c0_i32 = arith.constant 0 : i32
    %c0_i32_0 = arith.constant 0 : i32
    %c0_i32_1 = arith.constant 0 : i32
    %c0_i32_2 = arith.constant 0 : i32
    return %c0_i32, %c0_i32_0, %c0_i32_1 : i32, i32, i32
  }
  func.func @transform_2(%arg0: i32) -> (i32, i32) {
    %c0_i32 = arith.constant 0 : i32
    %c0_i32_0 = arith.constant 0 : i32
    %c0_i32_1 = arith.constant 0 : i32
    return %c0_i32, %c0_i32_0 : i32, i32
  }
  func.func @transform_3(%arg0: i32) -> (i32, i32) {
    %c0_i32 = arith.constant 0 : i32
    %c0_i32_0 = arith.constant 0 : i32
    %c0_i32_1 = arith.constant 0 : i32
    return %c0_i32, %c0_i32_0 : i32, i32
  }
  func.func @transform_4(%arg0: i32) -> (i32, i32) {
    %c0_i32 = arith.constant 0 : i32
    %c0_i32_0 = arith.constant 0 : i32
    %c0_i32_1 = arith.constant 0 : i32
    return %c0_i32, %c0_i32_0 : i32, i32
  }
  func.func @transform_5(%arg0: i32) -> (i32, i32) {
    %c0_i32 = arith.constant 0 : i32
    %c0_i32_0 = arith.constant 0 : i32
    %c0_i32_1 = arith.constant 0 : i32
    return %c0_i32, %c0_i32_0 : i32, i32
  }
}

module attributes {stable_mosaic.version = 11 : i64} {
  func.func @_gemm_bn_relu_kernel(%arg0: i32, %arg1: memref<128x1024xbf16, #tpu.memory_space<vmem>>, %arg2: memref<4x256x128xbf16, #tpu.memory_space<vmem>>, %arg3: memref<1x128xf32, #tpu.memory_space<vmem>>, %arg4: memref<1x128xf32, #tpu.memory_space<vmem>>, %arg5: memref<1x128xf32, #tpu.memory_space<vmem>>, %arg6: memref<128x512xf32, #tpu.memory_space<vmem>>) attributes {dimension_semantics = [#tpu.dimension_semantics<arbitrary>], iteration_bounds = array<i64: 1>, scalar_prefetch = 0 : i64, scratch_operands = 0 : i64, tpu.core_type = #tpu.core_type<tc>, window_params = [{pipeline_mode = #tpu.pipeline_mode<synchronous>, transform_indices = @transform_0, window_bounds = array<i64: 128, 1024>}, {pipeline_mode = #tpu.pipeline_mode<synchronous>, transform_indices = @transform_1, window_bounds = array<i64: 4, 256, 128>}, {pipeline_mode = #tpu.pipeline_mode<synchronous>, transform_indices = @transform_2, window_bounds = array<i64: 1, 128>}, {pipeline_mode = #tpu.pipeline_mode<synchronous>, transform_indices = @transform_3, window_bounds = array<i64: 1, 128>}, {pipeline_mode = #tpu.pipeline_mode<synchronous>, transform_indices = @transform_4, window_bounds = array<i64: 1, 128>}, {pipeline_mode = #tpu.pipeline_mode<synchronous>, transform_indices = @transform_5, window_bounds = array<i64: 128, 512>}]} {
    %c0 = arith.constant 0 : index
    %c0_0 = arith.constant 0 : index
    %0 = vector.load %arg3[%c0, %c0_0] : memref<1x128xf32, #tpu.memory_space<vmem>>, vector<1x128xf32>
    %cst = arith.constant 0.000000e+00 : f32
    %1 = vector.broadcast %cst : f32 to vector<1x128xf32>
    %c0_1 = arith.constant 0 : index
    %c0_2 = arith.constant 0 : index
    %2 = vector.load %arg1[%c0_1, %c0_2] : memref<128x1024xbf16, #tpu.memory_space<vmem>>, vector<128x256xbf16>
    %c0_3 = arith.constant 0 : index
    %c0_4 = arith.constant 0 : index
    %c0_5 = arith.constant 0 : index
    %3 = vector.load %arg2[%c0_3, %c0_4, %c0_5] : memref<4x256x128xbf16, #tpu.memory_space<vmem>>, vector<1x256x128xbf16>
    %4 = vector.shape_cast %3 : vector<1x256x128xbf16> to vector<256x128xbf16>
    %cst_6 = arith.constant dense<0.000000e+00> : vector<128x128xf32>
    %5 = tpu.matmul %2, %4, %cst_6 {dimension_numbers = #tpu.dot_dimension_numbers<[1], [0], [0], [1], [0, 0, 1, 1], [], []>} : vector<128x256xbf16>, vector<256x128xbf16>, vector<128x128xf32> -> vector<128x128xf32>
    %6 = vector.broadcast %0 : vector<1x128xf32> to vector<128x128xf32>
    %7 = arith.addf %5, %6 : vector<128x128xf32>
    %cst_7 = arith.constant dense<0.000000e+00> : vector<128xf32>
    %8 = vector.multi_reduction <add>, %7, %cst_7 [0] : vector<128x128xf32> to vector<128xf32>
    %9 = vector.shape_cast %8 : vector<128xf32> to vector<1x128xf32>
    %10 = arith.addf %1, %9 : vector<1x128xf32>
    %c0_8 = arith.constant 0 : index
    %c256 = arith.constant 256 : index
    %11 = vector.load %arg1[%c0_8, %c256] : memref<128x1024xbf16, #tpu.memory_space<vmem>>, vector<128x256xbf16>
    %c1 = arith.constant 1 : index
    %c0_9 = arith.constant 0 : index
    %c0_10 = arith.constant 0 : index
    %12 = vector.load %arg2[%c1, %c0_9, %c0_10] : memref<4x256x128xbf16, #tpu.memory_space<vmem>>, vector<1x256x128xbf16>
    %13 = vector.shape_cast %12 : vector<1x256x128xbf16> to vector<256x128xbf16>
    %cst_11 = arith.constant dense<0.000000e+00> : vector<128x128xf32>
    %14 = tpu.matmul %11, %13, %cst_11 {dimension_numbers = #tpu.dot_dimension_numbers<[1], [0], [0], [1], [0, 0, 1, 1], [], []>} : vector<128x256xbf16>, vector<256x128xbf16>, vector<128x128xf32> -> vector<128x128xf32>
    %15 = vector.broadcast %0 : vector<1x128xf32> to vector<128x128xf32>
    %16 = arith.addf %14, %15 : vector<128x128xf32>
    %cst_12 = arith.constant dense<0.000000e+00> : vector<128xf32>
    %17 = vector.multi_reduction <add>, %16, %cst_12 [0] : vector<128x128xf32> to vector<128xf32>
    %18 = vector.shape_cast %17 : vector<128xf32> to vector<1x128xf32>
    %19 = arith.addf %10, %18 : vector<1x128xf32>
    %c0_13 = arith.constant 0 : index
    %c512 = arith.constant 512 : index
    %20 = vector.load %arg1[%c0_13, %c512] : memref<128x1024xbf16, #tpu.memory_space<vmem>>, vector<128x256xbf16>
    %c2 = arith.constant 2 : index
    %c0_14 = arith.constant 0 : index
    %c0_15 = arith.constant 0 : index
    %21 = vector.load %arg2[%c2, %c0_14, %c0_15] : memref<4x256x128xbf16, #tpu.memory_space<vmem>>, vector<1x256x128xbf16>
    %22 = vector.shape_cast %21 : vector<1x256x128xbf16> to vector<256x128xbf16>
    %cst_16 = arith.constant dense<0.000000e+00> : vector<128x128xf32>
    %23 = tpu.matmul %20, %22, %cst_16 {dimension_numbers = #tpu.dot_dimension_numbers<[1], [0], [0], [1], [0, 0, 1, 1], [], []>} : vector<128x256xbf16>, vector<256x128xbf16>, vector<128x128xf32> -> vector<128x128xf32>
    %24 = vector.broadcast %0 : vector<1x128xf32> to vector<128x128xf32>
    %25 = arith.addf %23, %24 : vector<128x128xf32>
    %cst_17 = arith.constant dense<0.000000e+00> : vector<128xf32>
    %26 = vector.multi_reduction <add>, %25, %cst_17 [0] : vector<128x128xf32> to vector<128xf32>
    %27 = vector.shape_cast %26 : vector<128xf32> to vector<1x128xf32>
    %28 = arith.addf %19, %27 : vector<1x128xf32>
    %c0_18 = arith.constant 0 : index
    %c768 = arith.constant 768 : index
    %29 = vector.load %arg1[%c0_18, %c768] : memref<128x1024xbf16, #tpu.memory_space<vmem>>, vector<128x256xbf16>
    %c3 = arith.constant 3 : index
    %c0_19 = arith.constant 0 : index
    %c0_20 = arith.constant 0 : index
    %30 = vector.load %arg2[%c3, %c0_19, %c0_20] : memref<4x256x128xbf16, #tpu.memory_space<vmem>>, vector<1x256x128xbf16>
    %31 = vector.shape_cast %30 : vector<1x256x128xbf16> to vector<256x128xbf16>
    %cst_21 = arith.constant dense<0.000000e+00> : vector<128x128xf32>
    %32 = tpu.matmul %29, %31, %cst_21 {dimension_numbers = #tpu.dot_dimension_numbers<[1], [0], [0], [1], [0, 0, 1, 1], [], []>} : vector<128x256xbf16>, vector<256x128xbf16>, vector<128x128xf32> -> vector<128x128xf32>
    %33 = vector.broadcast %0 : vector<1x128xf32> to vector<128x128xf32>
    %34 = arith.addf %32, %33 : vector<128x128xf32>
    %cst_22 = arith.constant dense<0.000000e+00> : vector<128xf32>
    %35 = vector.multi_reduction <add>, %34, %cst_22 [0] : vector<128x128xf32> to vector<128xf32>
    %36 = vector.shape_cast %35 : vector<128xf32> to vector<1x128xf32>
    %37 = arith.addf %28, %36 : vector<1x128xf32>
    %cst_23 = arith.constant 0.001953125 : f32
    %38 = vector.broadcast %cst_23 : f32 to vector<1x128xf32>
    %39 = arith.mulf %37, %38 : vector<1x128xf32>
    %cst_24 = arith.constant 0.000000e+00 : f32
    %40 = vector.broadcast %cst_24 : f32 to vector<1x128xf32>
    %41 = vector.broadcast %39 : vector<1x128xf32> to vector<128x128xf32>
    %42 = arith.subf %7, %41 : vector<128x128xf32>
    %43 = arith.mulf %42, %42 : vector<128x128xf32>
    %cst_25 = arith.constant dense<0.000000e+00> : vector<128xf32>
    %44 = vector.multi_reduction <add>, %43, %cst_25 [0] : vector<128x128xf32> to vector<128xf32>
    %45 = vector.shape_cast %44 : vector<128xf32> to vector<1x128xf32>
    %46 = arith.addf %40, %45 : vector<1x128xf32>
    %47 = vector.broadcast %39 : vector<1x128xf32> to vector<128x128xf32>
    %48 = arith.subf %16, %47 : vector<128x128xf32>
    %49 = arith.mulf %48, %48 : vector<128x128xf32>
    %cst_26 = arith.constant dense<0.000000e+00> : vector<128xf32>
    %50 = vector.multi_reduction <add>, %49, %cst_26 [0] : vector<128x128xf32> to vector<128xf32>
    %51 = vector.shape_cast %50 : vector<128xf32> to vector<1x128xf32>
    %52 = arith.addf %46, %51 : vector<1x128xf32>
    %53 = vector.broadcast %39 : vector<1x128xf32> to vector<128x128xf32>
    %54 = arith.subf %25, %53 : vector<128x128xf32>
    %55 = arith.mulf %54, %54 : vector<128x128xf32>
    %cst_27 = arith.constant dense<0.000000e+00> : vector<128xf32>
    %56 = vector.multi_reduction <add>, %55, %cst_27 [0] : vector<128x128xf32> to vector<128xf32>
    %57 = vector.shape_cast %56 : vector<128xf32> to vector<1x128xf32>
    %58 = arith.addf %52, %57 : vector<1x128xf32>
    %59 = vector.broadcast %39 : vector<1x128xf32> to vector<128x128xf32>
    %60 = arith.subf %34, %59 : vector<128x128xf32>
    %61 = arith.mulf %60, %60 : vector<128x128xf32>
    %cst_28 = arith.constant dense<0.000000e+00> : vector<128xf32>
    %62 = vector.multi_reduction <add>, %61, %cst_28 [0] : vector<128x128xf32> to vector<128xf32>
    %63 = vector.shape_cast %62 : vector<128xf32> to vector<1x128xf32>
    %64 = arith.addf %58, %63 : vector<1x128xf32>
    %cst_29 = arith.constant 0.001953125 : f32
    %65 = vector.broadcast %cst_29 : f32 to vector<1x128xf32>
    %66 = arith.mulf %64, %65 : vector<1x128xf32>
    %cst_30 = arith.constant 9.99999974E-6 : f32
    %67 = vector.broadcast %cst_30 : f32 to vector<1x128xf32>
    %68 = arith.addf %66, %67 : vector<1x128xf32>
    %69 = math.rsqrt %68 : vector<1x128xf32>
    %c0_31 = arith.constant 0 : index
    %c0_32 = arith.constant 0 : index
    %70 = vector.load %arg4[%c0_31, %c0_32] : memref<1x128xf32, #tpu.memory_space<vmem>>, vector<1x128xf32>
    %71 = arith.mulf %69, %70 : vector<1x128xf32>
    %c0_33 = arith.constant 0 : index
    %c0_34 = arith.constant 0 : index
    %72 = vector.load %arg5[%c0_33, %c0_34] : memref<1x128xf32, #tpu.memory_space<vmem>>, vector<1x128xf32>
    %73 = arith.mulf %39, %71 : vector<1x128xf32>
    %74 = arith.subf %72, %73 : vector<1x128xf32>
    %75 = vector.broadcast %71 : vector<1x128xf32> to vector<128x128xf32>
    %76 = arith.mulf %7, %75 : vector<128x128xf32>
    %77 = vector.broadcast %74 : vector<1x128xf32> to vector<128x128xf32>
    %78 = arith.addf %76, %77 : vector<128x128xf32>
    %cst_35 = arith.constant 0.000000e+00 : f32
    %79 = vector.broadcast %cst_35 : f32 to vector<128x128xf32>
    %80 = arith.maximumf %78, %79 : vector<128x128xf32>
    %c0_36 = arith.constant 0 : index
    %c0_37 = arith.constant 0 : index
    %81 = vector.load %arg6[%c0_36, %c0_37] : memref<128x512xf32, #tpu.memory_space<vmem>>, vector<128x128xf32>
    tpu.vector_store %arg6[%c0_36, %c0_37], %80 {strides = array<i32>} : memref<128x512xf32, #tpu.memory_space<vmem>>, vector<128x128xf32>,
    %82 = vector.broadcast %71 : vector<1x128xf32> to vector<128x128xf32>
    %83 = arith.mulf %16, %82 : vector<128x128xf32>
    %84 = vector.broadcast %74 : vector<1x128xf32> to vector<128x128xf32>
    %85 = arith.addf %83, %84 : vector<128x128xf32>
    %cst_38 = arith.constant 0.000000e+00 : f32
    %86 = vector.broadcast %cst_38 : f32 to vector<128x128xf32>
    %87 = arith.maximumf %85, %86 : vector<128x128xf32>
    %c0_39 = arith.constant 0 : index
    %c128 = arith.constant 128 : index
    %88 = vector.load %arg6[%c0_39, %c128] : memref<128x512xf32, #tpu.memory_space<vmem>>, vector<128x128xf32>
    tpu.vector_store %arg6[%c0_39, %c128], %87 {strides = array<i32>} : memref<128x512xf32, #tpu.memory_space<vmem>>, vector<128x128xf32>,
    %89 = vector.broadcast %71 : vector<1x128xf32> to vector<128x128xf32>
    %90 = arith.mulf %25, %89 : vector<128x128xf32>
    %91 = vector.broadcast %74 : vector<1x128xf32> to vector<128x128xf32>
    %92 = arith.addf %90, %91 : vector<128x128xf32>
    %cst_40 = arith.constant 0.000000e+00 : f32
    %93 = vector.broadcast %cst_40 : f32 to vector<128x128xf32>
    %94 = arith.maximumf %92, %93 : vector<128x128xf32>
    %c0_41 = arith.constant 0 : index
    %c256_42 = arith.constant 256 : index
    %95 = vector.load %arg6[%c0_41, %c256_42] : memref<128x512xf32, #tpu.memory_space<vmem>>, vector<128x128xf32>
    tpu.vector_store %arg6[%c0_41, %c256_42], %94 {strides = array<i32>} : memref<128x512xf32, #tpu.memory_space<vmem>>, vector<128x128xf32>,
    %96 = vector.broadcast %71 : vector<1x128xf32> to vector<128x128xf32>
    %97 = arith.mulf %34, %96 : vector<128x128xf32>
    %98 = vector.broadcast %74 : vector<1x128xf32> to vector<128x128xf32>
    %99 = arith.addf %97, %98 : vector<128x128xf32>
    %cst_43 = arith.constant 0.000000e+00 : f32
    %100 = vector.broadcast %cst_43 : f32 to vector<128x128xf32>
    %101 = arith.maximumf %99, %100 : vector<128x128xf32>
    %c0_44 = arith.constant 0 : index
    %c384 = arith.constant 384 : index
    %102 = vector.load %arg6[%c0_44, %c384] : memref<128x512xf32, #tpu.memory_space<vmem>>, vector<128x128xf32>
    tpu.vector_store %arg6[%c0_44, %c384], %101 {strides = array<i32>} : memref<128x512xf32, #tpu.memory_space<vmem>>, vector<128x128xf32>,
    return
  }
  func.func @transform_0(%arg0: i32) -> (i32, i32) {
    %c0_i32 = arith.constant 0 : i32
    %c0_i32_0 = arith.constant 0 : i32
    %c0_i32_1 = arith.constant 0 : i32
    return %c0_i32, %c0_i32_0 : i32, i32
  }
  func.func @transform_1(%arg0: i32) -> (i32, i32, i32) {
    %c0_i32 = arith.constant 0 : i32
    %c0_i32_0 = arith.constant 0 : i32
    %c0_i32_1 = arith.constant 0 : i32
    %c0_i32_2 = arith.constant 0 : i32
    return %c0_i32, %c0_i32_0, %c0_i32_1 : i32, i32, i32
  }
  func.func @transform_2(%arg0: i32) -> (i32, i32) {
    %c0_i32 = arith.constant 0 : i32
    %c0_i32_0 = arith.constant 0 : i32
    %c0_i32_1 = arith.constant 0 : i32
    return %c0_i32, %c0_i32_0 : i32, i32
  }
  func.func @transform_3(%arg0: i32) -> (i32, i32) {
    %c0_i32 = arith.constant 0 : i32
    %c0_i32_0 = arith.constant 0 : i32
    %c0_i32_1 = arith.constant 0 : i32
    return %c0_i32, %c0_i32_0 : i32, i32
  }
  func.func @transform_4(%arg0: i32) -> (i32, i32) {
    %c0_i32 = arith.constant 0 : i32
    %c0_i32_0 = arith.constant 0 : i32
    %c0_i32_1 = arith.constant 0 : i32
    return %c0_i32, %c0_i32_0 : i32, i32
  }
  func.func @transform_5(%arg0: i32) -> (i32, i32) {
    %c0_i32 = arith.constant 0 : i32
    %c0_i32_0 = arith.constant 0 : i32
    %c0_i32_1 = arith.constant 0 : i32
    return %c0_i32, %c0_i32_0 : i32, i32
  }
}

</mosaic_0001>

<bundles_post_ra>
// kernel: _lambda_.4
= control target key start
LH: loop header
LB: loop body
LE: loop exit
PB: predicated region body
PF: predicated region fallthrough
CT: control target
= control target key end

     0   :  { %s749_s1 = inlined_call_operand.vmem [shape: bf16[1,128,128], index: 1, kind: input, shape index: {}]   ;;  %s750_s0 = inlined_call_operand.vmem [shape: bf16[128,128], index: 0, kind: input, shape index: {}]   ;;  %s751_s2 = inlined_call_operand.vmem [shape: f32[1,128], index: 2, kind: input, shape index: {}]   ;;  %s752_s3 = inlined_call_operand.vmem [shape: f32[1,128], index: 3, kind: input, shape index: {}]   ;;  %s753_s4 = inlined_call_operand.vmem [shape: f32[1,128], index: 4, kind: input, shape index: {}]   ;;  %s754_s5 = inlined_call_operand.vmem [shape: f32[128,128], index: 5, kind: output, shape index: {}]  }
   0x1   :  { %v497_v0 = vld [vmem:[%s749_s1 + $0x38] sm:$0xff]   ;;  %v498_v1 = vld [vmem:[%s749_s1 + $0x30] sm:$0xff]   ;;  %v499_v2 = vld [vmem:[%s749_s1 + $0x28] sm:$0xff]  }
   0x2   :  { %449 = vmatprep.subr.bf16.mxu0 %v497_v0  ;;  %481 = vmatprep.subr.bf16.mxu1 %v497_v0  ;;  %v500_v3 = vld [vmem:[%s749_s1 + $0x20] sm:$0xff]   ;;  %v501_v5 = vld [vmem:[%s749_s1 + $0x18] sm:$0xff]   ;;  %v502_v7 = vld [vmem:[%s749_s1 + $0x10] sm:$0xff]  }
   0x3   :  { %450 = vmatpush3.bf16.msra.mxu0 %v497_v0  ;;  %489 = vmatpush3.bf16.msra.mxu1 %v497_v0  ;;  %v505_v4 = vld [vmem:[%s750_s0] sm:$0xff]   ;;  %v503_v8 = vld [vmem:[%s749_s1 + $0x8] sm:$0xff]   ;;  %v507_v12 = vld [vmem:[%s750_s0 + $0x10] sm:$0xff]  }
   0x4   :  { %451 = vmatprep.subr.bf16.mxu0 %v498_v1  ;;  %482 = vmatprep.subr.bf16.mxu1 %v498_v1  ;;  %v509_v6 = vld [vmem:[%s750_s0 + $0x20] sm:$0xff]   ;;  %v506_v10 = vld [vmem:[%s750_s0 + $0x8] sm:$0xff]   ;;  %v511_v13 = vld [vmem:[%s750_s0 + $0x30] sm:$0xff]  }
   0x5   :  { %465 = vmatprep.mubr.bf16.mxu0 %v505_v4  ;;  %473 = vmatprep.mubr.bf16.mxu1 %v509_v6  ;;  %v504_v9 = vld [vmem:[%s749_s1] sm:$0xff]   ;;  %v510_v11 = vld [vmem:[%s750_s0 + $0x28] sm:$0xff]   ;;  %v508_v14 = vld [vmem:[%s750_s0 + $0x18] sm:$0xff]  }
   0x6   :  { %v512_v15 = vld [vmem:[%s750_s0 + $0x38] sm:$0xff]   ;;  %v416_v21 = vld [vmem:[%s751_s2] ss:$0 sm:$0xff] }
   0x7   :  { %452 = vmatpush3.bf16.msra.mxu0 %v498_v1  ;;  %490 = vmatpush3.bf16.msra.mxu1 %v498_v1 }
   0x8   :  { %453 = vmatprep.subr.bf16.mxu0 %v499_v2  ;;  %483 = vmatprep.subr.bf16.mxu1 %v499_v2 }
   0xb   :  { %454 = vmatpush3.bf16.msra.mxu0 %v499_v2  ;;  %491 = vmatpush3.bf16.msra.mxu1 %v499_v2 }
   0xc   :  { %455 = vmatprep.subr.bf16.mxu0 %v500_v3  ;;  %484 = vmatprep.subr.bf16.mxu1 %v500_v3 }
   0xf   :  { %456 = vmatpush3.bf16.msra.mxu0 %v500_v3  ;;  %492 = vmatpush3.bf16.msra.mxu1 %v500_v3 }
  0x10   :  { %457 = vmatprep.subr.bf16.mxu0 %v501_v5  ;;  %485 = vmatprep.subr.bf16.mxu1 %v501_v5 }
  0x13   :  { %458 = vmatpush3.bf16.msra.mxu0 %v501_v5  ;;  %493 = vmatpush3.bf16.msra.mxu1 %v501_v5 }
  0x14   :  { %459 = vmatprep.subr.bf16.mxu0 %v502_v7  ;;  %486 = vmatprep.subr.bf16.mxu1 %v502_v7 }
  0x17   :  { %460 = vmatpush3.bf16.msra.mxu0 %v502_v7  ;;  %494 = vmatpush3.bf16.msra.mxu1 %v502_v7 }
  0x18   :  { %461 = vmatprep.subr.bf16.mxu0 %v503_v8  ;;  %487 = vmatprep.subr.bf16.mxu1 %v503_v8 }
  0x1b   :  { %462 = vmatpush3.bf16.msra.mxu0 %v503_v8  ;;  %495 = vmatpush3.bf16.msra.mxu1 %v503_v8 }
  0x1c   :  { %463 = vmatprep.subr.bf16.mxu0 %v504_v9  ;;  %488 = vmatprep.subr.bf16.mxu1 %v504_v9 }
  0x1f   :  { %464 = vmatpush3.bf16.msra.mxu0 %v504_v9  ;;  %496 = vmatpush3.bf16.msra.mxu1 %v504_v9 }
  0x22   :  { %466 = vmatmul.mubr.bf16.vlgmr.msra.gmra.mxu0 %v506_v10  ;;  %474 = vmatmul.mubr.bf16.vlgmr.msra.gmra.mxu1 %v510_v11 }
  0x23   :  { %469 = vmatprep.mubr.bf16.mxu0 %v507_v12  ;;  %477 = vmatprep.mubr.bf16.mxu1 %v511_v13 }
  0x2a   :  { %470 = vmatmul.mubr.bf16.gmra.mxu0 %v508_v14  ;;  %478 = vmatmul.mubr.bf16.gmra.mxu1 %v512_v15 }
  0xe2   :  { %v467_v16 = vpop.f32.mrf.mxu0  ;;  %v475_v17 = vpop.f32.mrf.mxu1 }
  0xe3   :  { %v600_v27 = vadd.f32 %v467_v16, %v416_v21  ;;  %v625_v50 = vadd.f32 %v475_v17, %v416_v21 }
  0xe4   :  { %v190_v18 = vpop.f32.mrf.mxu0  ;;  %v222_v20 = vpop.f32.mrf.mxu1 }
  0xe5   :  { %v596_v23 = vadd.f32 %v416_v21, %v190_v18  ;;  %v619_v45 = vadd.f32 %v416_v21, %v222_v20 }
  0xe6   :  { %v468_v19 = vpop.f32.mrf.mxu0  ;;  %v476_v26 = vpop.f32.mrf.mxu1 }
  0xe7   :  { %v604_v30 = vadd.f32 %v468_v19, %v416_v21  ;;  %v628_v52 = vadd.f32 %v476_v26, %v416_v21 }
  0xe8   :  { %v193_v22 = vpop.f32.mrf.mxu0  ;;  %v225_v33 = vpop.f32.mrf.mxu1 }
  0xe9   :  { %v598_v24 = vadd.f32 %v416_v21, %v193_v22  ;;  %v622_v47 = vadd.f32 %v416_v21, %v225_v33 }
  0xea   :  { %v471_v25 = vpop.f32.mrf.mxu0  ;;  %v479_v39 = vpop.f32.mrf.mxu1 }
  0xeb   :  { %v253_v28 = vadd.f32 %v598_v24, %v596_v23  ;;  %v613_v40 = vadd.f32 %v471_v25, %v416_v21  ;;  %v637_v59 = vadd.f32 %v479_v39, %v416_v21 }
  0xec   :  { %v206_v29 = vpop.f32.mrf.mxu0  ;;  %v238_v44 = vpop.f32.mrf.mxu1 }
  0xed   :  { %v254_v31 = vadd.f32 %v253_v28, %v600_v27  ;;  %v607_v34 = vadd.f32 %v416_v21, %v206_v29  ;;  %v631_v55 = vadd.f32 %v416_v21, %v238_v44 }
  0xee   :  { %v472_v32 = vpop.f32.mrf.mxu0  ;;  %v480_v49 = vpop.f32.mrf.mxu1 }
  0xef   :  { %v255_v35 = vadd.f32 %v254_v31, %v604_v30  ;;  %v616_v42 = vadd.f32 %v472_v32, %v416_v21  ;;  %v640_v61 = vadd.f32 %v480_v49, %v416_v21 }
  0xf0   :  { %v209_v36 = vpop.f32.mrf.mxu0  ;;  %v241_v54 = vpop.f32.mrf.mxu1 }
  0xf1   :  { %v256_v37 = vadd.f32 %v255_v35, %v607_v34  ;;  %v611_v38 = vadd.f32 %v416_v21, %v209_v36  ;;  %v635_v58 = vadd.f32 %v416_v21, %v241_v54 }
  0xf3   :  { %v257_v41 = vadd.f32 %v256_v37, %v611_v38 }
  0xf5   :  { %v258_v43 = vadd.f32 %v257_v41, %v613_v40 }
  0xf7   :  { %v259_v46 = vadd.f32 %v258_v43, %v616_v42 }
  0xf9   :  { %v260_v48 = vadd.f32 %v259_v46, %v619_v45 }
  0xfb   :  { %v261_v51 = vadd.f32 %v260_v48, %v622_v47 }
  0xfd   :  { %v262_v53 = vadd.f32 %v261_v51, %v625_v50 }
  0xff   :  { %v263_v56 = vadd.f32 %v262_v53, %v628_v52 }
 0x101   :  { %v264_v57 = vadd.f32 %v263_v56, %v631_v55 }
 0x103   :  { %v265_v60 = vadd.f32 %v264_v57, %v635_v58 }
 0x105   :  { %v266_v62 = vadd.f32 %v265_v60, %v637_v59 }
 0x107   :  { %v267_v63 = vadd.f32 %v266_v62, %v640_v61 }
 0x109   :  { %v268_v0 = vrot.slane %v267_v63, 4 }
 0x10b   :  { %v269_v1 = vadd.f32 %v268_v0, %v267_v63 }
 0x10d   :  { %v270_v2 = vrot.slane %v269_v1, 2 }
 0x10f   :  { %v271_v3 = vadd.f32 %v270_v2, %v269_v1 }
 0x111   :  { %v272_v4 = vrot.slane %v271_v3, 1 }
 0x113   :  { %v273_v5 = vadd.f32 %v272_v4, %v271_v3 }
 0x115   :  { %v644_v6 = vmul.f32 0.0078125, %v273_v5 }
 0x117   :  { %v276_v7 = vsub.f32 %v596_v23, %v644_v6  ;;  %v277_v8 = vsub.f32 %v598_v24, %v644_v6  ;;  %v278_v9 = vsub.f32 %v600_v27, %v644_v6  ;;  %v279_v12 = vsub.f32 %v604_v30, %v644_v6 }
 0x118   :  { %v280_v13 = vsub.f32 %v607_v34, %v644_v6  ;;  %v281_v16 = vsub.f32 %v611_v38, %v644_v6  ;;  %v282_v19 = vsub.f32 %v613_v40, %v644_v6  ;;  %v283_v22 = vsub.f32 %v616_v42, %v644_v6 }
 0x119   :  { %v292_v10 = vmul.f32 %v276_v7, %v276_v7  ;;  %v293_v11 = vmul.f32 %v277_v8, %v277_v8  ;;  %v294_v14 = vmul.f32 %v278_v9, %v278_v9  ;;  %v295_v17 = vmul.f32 %v279_v12, %v279_v12 }
 0x11a   :  { %v296_v20 = vmul.f32 %v280_v13, %v280_v13  ;;  %v297_v25 = vmul.f32 %v281_v16, %v281_v16  ;;  %v284_v28 = vsub.f32 %v619_v45, %v644_v6  ;;  %v298_v29 = vmul.f32 %v282_v19, %v282_v19 }
 0x11b   :  { %v308_v15 = vadd.f32 %v293_v11, %v292_v10  ;;  %v285_v32 = vsub.f32 %v622_v47, %v644_v6  ;;  %v299_v33 = vmul.f32 %v283_v22, %v283_v22  ;;  %v286_v36 = vsub.f32 %v625_v50, %v644_v6 }
 0x11c   :  { %v300_v37 = vmul.f32 %v284_v28, %v284_v28  ;;  %v287_v41 = vsub.f32 %v628_v52, %v644_v6  ;;  %v288_v46 = vsub.f32 %v631_v55, %v644_v6  ;;  %v289_v51 = vsub.f32 %v635_v58, %v644_v6 }
 0x11d   :  { %v309_v18 = vadd.f32 %v308_v15, %v294_v14  ;;  %v301_v43 = vmul.f32 %v285_v32, %v285_v32  ;;  %v302_v48 = vmul.f32 %v286_v36, %v286_v36  ;;  %v290_v56 = vsub.f32 %v637_v59, %v644_v6 }
 0x11e   :  { %v303_v53 = vmul.f32 %v287_v41, %v287_v41  ;;  %v304_v57 = vmul.f32 %v288_v46, %v288_v46  ;;  %v291_v62 = vsub.f32 %v640_v61, %v644_v6  ;;  %v305_v63 = vmul.f32 %v289_v51, %v289_v51 }
 0x11f   :  { %v310_v21 = vadd.f32 %v309_v18, %v295_v17  ;;  %v306_v1 = vmul.f32 %v290_v56, %v290_v56  ;;  %v338_v15 = vlaneseq  ;;  %v333_v17 = vld [vmem:[%s752_s3] sm:$0x1] }
 0x120   :  { %v307_v3 = vmul.f32 %v291_v62, %v291_v62 }
 0x121   :  { %v311_v26 = vadd.f32 %v310_v21, %v296_v20  ;;  %v339_v16 = vshrl.u32 %v338_v15, 7  ;;  %v335_v21 = vld [vmem:[%s753_s4] sm:$0x1] }
 0x123   :  { %v312_v31 = vadd.f32 %v311_v26, %v297_v25  ;;  %v340_v18 = vsub.s32 0, %v339_v16 }
 0x125   :  { %v313_v35 = vadd.f32 %v312_v31, %v298_v29 }
 0x127   :  { %v314_v39 = vadd.f32 %v313_v35, %v299_v33 }
 0x129   :  { %v315_v44 = vadd.f32 %v314_v39, %v300_v37 }
 0x12b   :  { %v316_v49 = vadd.f32 %v315_v44, %v301_v43 }
 0x12d   :  { %v317_v54 = vadd.f32 %v316_v49, %v302_v48 }
 0x12f   :  { %v318_v60 = vadd.f32 %v317_v54, %v303_v53 }
 0x131   :  { %v319_v0 = vadd.f32 %v318_v60, %v304_v57 }
 0x133   :  { %v320_v2 = vadd.f32 %v319_v0, %v305_v63 }
 0x135   :  { %v321_v4 = vadd.f32 %v320_v2, %v306_v1 }
 0x137   :  { %v322_v5 = vadd.f32 %v321_v4, %v307_v3 }
 0x139   :  { %v323_v7 = vrot.slane %v322_v5, 4 }
 0x13b   :  { %v324_v8 = vadd.f32 %v323_v7, %v322_v5 }
 0x13d   :  { %v325_v9 = vrot.slane %v324_v8, 2 }
 0x13f   :  { %v326_v10 = vadd.f32 %v325_v9, %v324_v8 }
 0x141   :  { %v327_v11 = vrot.slane %v326_v10, 1 }
 0x143   :  { %v328_v12 = vadd.f32 %v327_v11, %v326_v10 }
 0x145   :  { %v330_v13 = vmul.f32 0.0078125, %v328_v12 }
 0x147   :  { %v331_v14 = vadd.f32 1e-05, %v330_v13 }
 0x149   :  { %513 = vrsqrt.f32 %v331_v14 }
 0x156   :  { %v514_v19 = vpop.eup %513 }
 0x157   :  { %v334_v20 = vmul.f32 %v514_v19, %v333_v17 }
 0x159   :  { %v336_v22 = vmul.f32 %v334_v20, %v644_v6  ;;  %v341_v25 = vrot.slane %v334_v20, %v340_v18 }
 0x15b   :  { %v337_v26 = vsub.f32 %v335_v21, %v336_v22  ;;  %v342_v28 = vmul.f32 %v341_v25, %v596_v23  ;;  %v343_v29 = vmul.f32 %v341_v25, %v598_v24  ;;  %v344_v31 = vmul.f32 %v341_v25, %v600_v27 }
 0x15c   :  { %v345_v32 = vmul.f32 %v341_v25, %v604_v30  ;;  %v346_v33 = vmul.f32 %v341_v25, %v607_v34  ;;  %v347_v35 = vmul.f32 %v341_v25, %v611_v38  ;;  %v348_v36 = vmul.f32 %v341_v25, %v613_v40 }
 0x15d   :  { %v349_v37 = vmul.f32 %v341_v25, %v616_v42  ;;  %v350_v6 = vmul.f32 %v341_v25, %v619_v45  ;;  %v351_v39 = vmul.f32 %v341_v25, %v622_v47  ;;  %v352_v23 = vmul.f32 %v341_v25, %v625_v50 }
 0x15e   :  { %v353_v24 = vmul.f32 %v341_v25, %v628_v52  ;;  %v362_v41 = vrot.slane %v337_v26, %v340_v18  ;;  %v354_v27 = vmul.f32 %v341_v25, %v631_v55  ;;  %v355_v30 = vmul.f32 %v341_v25, %v635_v58 }
 0x15f   :  { %v356_v34 = vmul.f32 %v341_v25, %v637_v59  ;;  %v357_v38 = vmul.f32 %v341_v25, %v640_v61 }
 0x160   :  { %v364_v40 = vadd.f32 %v362_v41, %v342_v28  ;;  %v365_v43 = vadd.f32 %v362_v41, %v343_v29  ;;  %v366_v42 = vadd.f32 %v362_v41, %v344_v31  ;;  %v367_v44 = vadd.f32 %v362_v41, %v345_v32 }
 0x161   :  { %v368_v45 = vadd.f32 %v362_v41, %v346_v33  ;;  %v369_v46 = vadd.f32 %v362_v41, %v347_v35  ;;  %v370_v47 = vadd.f32 %v362_v41, %v348_v36  ;;  %v371_v48 = vadd.f32 %v362_v41, %v349_v37 }
 0x162   :  { %v372_v50 = vadd.f32 %v362_v41, %v350_v6  ;;  %v373_v49 = vadd.f32 %v362_v41, %v351_v39  ;;  %v374_v52 = vadd.f32 %v362_v41, %v352_v23  ;;  %v375_v51 = vadd.f32 %v362_v41, %v353_v24 }
 0x163   :  { %v376_v53 = vadd.f32 %v362_v41, %v354_v27  ;;  %v377_v55 = vadd.f32 %v362_v41, %v355_v30  ;;  %v378_v54 = vadd.f32 %v362_v41, %v356_v34  ;;  %v379_v58 = vadd.f32 %v362_v41, %v357_v38 }
 0x164   :  { %v380_v56 = vmax.f32 %v364_v40, 0.0  ;;  %v381_v59 = vmax.f32 %v365_v43, 0.0  ;;  %v382_v57 = vmax.f32 %v366_v42, 0.0  ;;  %v383_v61 = vmax.f32 %v367_v44, 0.0 }
 0x165   :  { %v384_v60 = vmax.f32 %v368_v45, 0.0  ;;  %v385_v62 = vmax.f32 %v369_v46, 0.0  ;;  %v386_v63 = vmax.f32 %v370_v47, 0.0  ;;  %v387_v0 = vmax.f32 %v371_v48, 0.0 }
 0x166   :  { %v388_v1 = vmax.f32 %v372_v50, 0.0  ;;  %v389_v2 = vmax.f32 %v373_v49, 0.0  ;;  %v390_v3 = vmax.f32 %v374_v52, 0.0  ;;  %v391_v4 = vmax.f32 %v375_v51, 0.0  ;;  %396 = vst [vmem:[%s754_s5] sm:$0xff] %v380_v56  ;;  %397 = vst [vmem:[%s754_s5 + $0x8] sm:$0xff] %v381_v59 }
 0x167   :  { %398 = vst [vmem:[%s754_s5 + $0x10] sm:$0xff] %v382_v57  ;;  %399 = vst [vmem:[%s754_s5 + $0x18] sm:$0xff] %v383_v61  ;;  %v392_v5 = vmax.f32 %v376_v53, 0.0  ;;  %v393_v7 = vmax.f32 %v377_v55, 0.0  ;;  %v394_v8 = vmax.f32 %v378_v54, 0.0  ;;  %v395_v9 = vmax.f32 %v379_v58, 0.0 }
 0x168   :  { %400 = vst [vmem:[%s754_s5 + $0x20] sm:$0xff] %v384_v60  ;;  %401 = vst [vmem:[%s754_s5 + $0x28] sm:$0xff] %v385_v62 }
 0x169   :  { %402 = vst [vmem:[%s754_s5 + $0x30] sm:$0xff] %v386_v63  ;;  %403 = vst [vmem:[%s754_s5 + $0x38] sm:$0xff] %v387_v0 }
 0x16a   :  { %404 = vst [vmem:[%s754_s5 + $0x40] sm:$0xff] %v388_v1  ;;  %405 = vst [vmem:[%s754_s5 + $0x48] sm:$0xff] %v389_v2 }
 0x16b   :  { %406 = vst [vmem:[%s754_s5 + $0x50] sm:$0xff] %v390_v3  ;;  %407 = vst [vmem:[%s754_s5 + $0x58] sm:$0xff] %v391_v4 }
 0x16c   :  { %408 = vst [vmem:[%s754_s5 + $0x60] sm:$0xff] %v392_v5  ;;  %409 = vst [vmem:[%s754_s5 + $0x68] sm:$0xff] %v393_v7 }
 0x16d   :  { %410 = vst [vmem:[%s754_s5 + $0x70] sm:$0xff] %v394_v8  ;;  %411 = vst [vmem:[%s754_s5 + $0x78] sm:$0xff] %v395_v9 }

// kernel: _lambda_.5
= control target key start
LH: loop header
LB: loop body
LE: loop exit
PB: predicated region body
PF: predicated region fallthrough
CT: control target
= control target key end

     0   :  { %s1449_s1 = inlined_call_operand.vmem [shape: bf16[1,1024,128], index: 1, kind: input, shape index: {}]   ;;  %s1450_s0 = inlined_call_operand.vmem [shape: bf16[32,1024], index: 0, kind: input, shape index: {}]   ;;  %s1451_s2 = inlined_call_operand.vmem [shape: f32[1,128], index: 2, kind: input, shape index: {}]   ;;  %s1452_s3 = inlined_call_operand.vmem [shape: f32[1,128], index: 3, kind: input, shape index: {}]   ;;  %s1453_s4 = inlined_call_operand.vmem [shape: f32[1,128], index: 4, kind: input, shape index: {}]   ;;  %s1454_s5 = inlined_call_operand.vmem [shape: f32[32,128], index: 5, kind: output, shape index: {}]  }
   0x1   :  { %v1092_v0 = vld [vmem:[%s1449_s1 + $0x78] sm:$0xff]   ;;  %v1096_v4 = vld [vmem:[%s1449_s1 + $0x70] sm:$0xff]   ;;  %v1100_v8 = vld [vmem:[%s1449_s1 + $0x68] sm:$0xff]  }
   0x2   :  { %v1093_v1 = vld [vmem:[%s1449_s1 + $0xf8] sm:$0xff]   ;;  %980 = vmatprep.subr.bf16.mxu0 %v1092_v0  ;;  %v1097_v5 = vld [vmem:[%s1449_s1 + $0xf0] sm:$0xff]   ;;  %v1101_v9 = vld [vmem:[%s1449_s1 + $0xe8] sm:$0xff]  }
   0x3   :  { %v1094_v2 = vld [vmem:[%s1449_s1 + $0x38] sm:$0xff]   ;;  %1008 = vmatprep.subr.bf16.mxu1 %v1093_v1  ;;  %v1098_v6 = vld [vmem:[%s1449_s1 + $0x30] sm:$0xff]   ;;  %v1102_v10 = vld [vmem:[%s1449_s1 + $0x28] sm:$0xff]  }
   0x4   :  { %v1095_v3 = vld [vmem:[%s1449_s1 + $0xb8] sm:$0xff]   ;;  %981 = vmatpush3.bf16.msra.mxu0 %v1094_v2  ;;  %v1099_v7 = vld [vmem:[%s1449_s1 + $0xb0] sm:$0xff]   ;;  %v1103_v11 = vld [vmem:[%s1449_s1 + $0xa8] sm:$0xff]  }
   0x5   :  { %1009 = vmatpush3.bf16.msra.mxu1 %v1095_v3  ;;  %982 = vmatprep.subr.bf16.mxu0 %v1096_v4  ;;  %v1104_v12 = vld [vmem:[%s1449_s1 + $0x60] sm:$0xff]   ;;  %v1108_v16 = vld [vmem:[%s1449_s1 + $0x58] sm:$0xff]   ;;  %v1112_v20 = vld [vmem:[%s1449_s1 + $0x50] sm:$0xff]  }
   0x6   :  { %1010 = vmatprep.subr.bf16.mxu1 %v1097_v5  ;;  %v1105_v13 = vld [vmem:[%s1449_s1 + $0xe0] sm:$0xff]   ;;  %v1109_v17 = vld [vmem:[%s1449_s1 + $0xd8] sm:$0xff]   ;;  %v1113_v21 = vld [vmem:[%s1449_s1 + $0xd0] sm:$0xff]  }
   0x7   :  { %v1106_v14 = vld [vmem:[%s1449_s1 + $0x20] sm:$0xff]   ;;  %v1110_v18 = vld [vmem:[%s1449_s1 + $0x18] sm:$0xff]   ;;  %v1114_v22 = vld [vmem:[%s1449_s1 + $0x10] sm:$0xff]  }
   0x8   :  { %983 = vmatpush3.bf16.msra.mxu0 %v1098_v6  ;;  %v1107_v15 = vld [vmem:[%s1449_s1 + $0xa0] sm:$0xff]   ;;  %v1111_v19 = vld [vmem:[%s1449_s1 + $0x98] sm:$0xff]   ;;  %v1115_v23 = vld [vmem:[%s1449_s1 + $0x90] sm:$0xff]  }
   0x9   :  { %1011 = vmatpush3.bf16.msra.mxu1 %v1099_v7  ;;  %984 = vmatprep.subr.bf16.mxu0 %v1100_v8  ;;  %v1116_v24 = vld [vmem:[%s1449_s1 + $0x48] sm:$0xff]   ;;  %v1120_v28 = vld [vmem:[%s1449_s1 + $0x40] sm:$0xff]   ;;  %v1124_v40 = vld [vmem:[%s1449_s1 + $0x178] sm:$0xff]  }
   0xa   :  { %1012 = vmatprep.subr.bf16.mxu1 %v1101_v9  ;;  %v1117_v25 = vld [vmem:[%s1449_s1 + $0xc8] sm:$0xff]   ;;  %v1121_v29 = vld [vmem:[%s1449_s1 + $0xc0] sm:$0xff]   ;;  %v1125_v41 = vld [vmem:[%s1449_s1 + $0x1f8] sm:$0xff]  }
   0xb   :  { %v1118_v26 = vld [vmem:[%s1449_s1 + $0x8] sm:$0xff]   ;;  %v1122_v30 = vld [vmem:[%s1449_s1] sm:$0xff]   ;;  %v1126_v42 = vld [vmem:[%s1449_s1 + $0x138] sm:$0xff]  }
   0xc   :  { %985 = vmatpush3.bf16.msra.mxu0 %v1102_v10  ;;  %v1119_v27 = vld [vmem:[%s1449_s1 + $0x88] sm:$0xff]   ;;  %v1123_v31 = vld [vmem:[%s1449_s1 + $0x80] sm:$0xff]   ;;  %v1127_v43 = vld [vmem:[%s1449_s1 + $0x1b8] sm:$0xff]  }
   0xd   :  { %1013 = vmatpush3.bf16.msra.mxu1 %v1103_v11  ;;  %986 = vmatprep.subr.bf16.mxu0 %v1104_v12  ;;  %v22_v32 = vld [vmem:[%s1450_s0] sm:$0xff]  ;;  %v23_v34 = vld [vmem:[%s1450_s0 + $0x8] sm:$0xff]  ;;  %v1128_v44 = vld [vmem:[%s1449_s1 + $0x170] sm:$0xff]  }
   0xe   :  { %1014 = vmatprep.subr.bf16.mxu1 %v1105_v13  ;;  %v26_v33 = vld [vmem:[%s1450_s0 + $0x20] sm:$0xff]  ;;  %v27_v37 = vld [vmem:[%s1450_s0 + $0x28] sm:$0xff]  ;;  %v1129_v45 = vld [vmem:[%s1449_s1 + $0x1f0] sm:$0xff]  }
   0xf   :  { %v900_v35 = vcombine.low %v22_v32, %v26_v33  ;;  %v901_v36 = vcombine.high %v22_v32, %v26_v33  ;;  %v902_v38 = vcombine.low %v23_v34, %v27_v37  ;;  %v903_v39 = vcombine.high %v23_v34, %v27_v37  ;;  %v1130_v46 = vld [vmem:[%s1449_s1 + $0x130] sm:$0xff]   ;;  %v1132_v48 = vld [vmem:[%s1449_s1 + $0x168] sm:$0xff]   ;;  %v1136_v52 = vld [vmem:[%s1449_s1 + $0x160] sm:$0xff]  }
  0x10   :  { %987 = vmatpush3.bf16.msra.mxu0 %v1106_v14  ;;  %v1131_v47 = vld [vmem:[%s1449_s1 + $0x1b0] sm:$0xff]   ;;  %v1133_v49 = vld [vmem:[%s1449_s1 + $0x1e8] sm:$0xff]   ;;  %v1137_v53 = vld [vmem:[%s1449_s1 + $0x1e0] sm:$0xff]  }
  0x11   :  { %1015 = vmatpush3.bf16.msra.mxu1 %v1107_v15  ;;  %988 = vmatprep.subr.bf16.mxu0 %v1108_v16  ;;  %v1134_v50 = vld [vmem:[%s1449_s1 + $0x128] sm:$0xff]   ;;  %v1138_v54 = vld [vmem:[%s1449_s1 + $0x120] sm:$0xff]   ;;  %v1140_v56 = vld [vmem:[%s1449_s1 + $0x158] sm:$0xff]  }
  0x12   :  { %1016 = vmatprep.subr.bf16.mxu1 %v1109_v17  ;;  %668 = vmatprep.mubr.bf16.mxu0 %v901_v36  ;;  %v1135_v51 = vld [vmem:[%s1449_s1 + $0x1a8] sm:$0xff]   ;;  %v1139_v55 = vld [vmem:[%s1449_s1 + $0x1a0] sm:$0xff]   ;;  %v1141_v57 = vld [vmem:[%s1449_s1 + $0x1d8] sm:$0xff]  }
  0x13   :  { %717 = vmatprep.mubr.bf16.mxu1 %v903_v39  ;;  %v30_v58 = vld [vmem:[%s1450_s0 + $0x40] sm:$0xff]  ;;  %v1142_v61 = vld [vmem:[%s1449_s1 + $0x118] sm:$0xff]   ;;  %v31_v0 = vld [vmem:[%s1450_s0 + $0x48] sm:$0xff] }
  0x14   :  { %989 = vmatpush3.bf16.msra.mxu0 %v1110_v18  ;;  %v34_v59 = vld [vmem:[%s1450_s0 + $0x60] sm:$0xff]  ;;  %v1143_v63 = vld [vmem:[%s1449_s1 + $0x198] sm:$0xff]   ;;  %v35_v1 = vld [vmem:[%s1450_s0 + $0x68] sm:$0xff] }
  0x15   :  { %1017 = vmatpush3.bf16.msra.mxu1 %v1111_v19  ;;  %990 = vmatprep.subr.bf16.mxu0 %v1112_v20  ;;  %v909_v60 = vcombine.high %v30_v58, %v34_v59  ;;  %v908_v62 = vcombine.low %v30_v58, %v34_v59  ;;  %v911_v2 = vcombine.high %v31_v0, %v35_v1  ;;  %v1144_v4 = vld [vmem:[%s1449_s1 + $0x150] sm:$0xff]   ;;  %v1148_v8 = vld [vmem:[%s1449_s1 + $0x148] sm:$0xff]   ;;  %v1152_v12 = vld [vmem:[%s1449_s1 + $0x140] sm:$0xff]  }
  0x16   :  { %1018 = vmatprep.subr.bf16.mxu1 %v1113_v21  ;;  %v910_v3 = vcombine.low %v31_v0, %v35_v1  ;;  %v1145_v5 = vld [vmem:[%s1449_s1 + $0x1d0] sm:$0xff]   ;;  %v1149_v9 = vld [vmem:[%s1449_s1 + $0x1c8] sm:$0xff]   ;;  %v1153_v13 = vld [vmem:[%s1449_s1 + $0x1c0] sm:$0xff]  }
  0x17   :  { %v1146_v6 = vld [vmem:[%s1449_s1 + $0x110] sm:$0xff]   ;;  %v1150_v10 = vld [vmem:[%s1449_s1 + $0x108] sm:$0xff]   ;;  %v1154_v14 = vld [vmem:[%s1449_s1 + $0x100] sm:$0xff]  }
  0x18   :  { %991 = vmatpush3.bf16.msra.mxu0 %v1114_v22  ;;  %v1147_v7 = vld [vmem:[%s1449_s1 + $0x190] sm:$0xff]   ;;  %v1151_v11 = vld [vmem:[%s1449_s1 + $0x188] sm:$0xff]   ;;  %v1155_v15 = vld [vmem:[%s1449_s1 + $0x180] sm:$0xff]  }
  0x19   :  { %1019 = vmatpush3.bf16.msra.mxu1 %v1115_v23  ;;  %992 = vmatprep.subr.bf16.mxu0 %v1116_v24  ;;  %v24_v16 = vld [vmem:[%s1450_s0 + $0x10] sm:$0xff]  ;;  %v25_v18 = vld [vmem:[%s1450_s0 + $0x18] sm:$0xff] }
  0x1a   :  { %1020 = vmatprep.subr.bf16.mxu1 %v1117_v25  ;;  %v28_v17 = vld [vmem:[%s1450_s0 + $0x30] sm:$0xff]  ;;  %v29_v19 = vld [vmem:[%s1450_s0 + $0x38] sm:$0xff] }
  0x1b   :  { %v904_v20 = vcombine.low %v24_v16, %v28_v17  ;;  %v905_v21 = vcombine.high %v24_v16, %v28_v17  ;;  %v906_v22 = vcombine.low %v25_v18, %v29_v19  ;;  %v907_v23 = vcombine.high %v25_v18, %v29_v19  ;;  %v32_v24 = vld [vmem:[%s1450_s0 + $0x50] sm:$0xff] }
  0x1c   :  { %993 = vmatpush3.bf16.msra.mxu0 %v1118_v26  ;;  %v36_v25 = vld [vmem:[%s1450_s0 + $0x70] sm:$0xff]  ;;  %v33_v26 = vld [vmem:[%s1450_s0 + $0x58] sm:$0xff] }
  0x1d   :  { %1021 = vmatpush3.bf16.msra.mxu1 %v1119_v27  ;;  %994 = vmatprep.subr.bf16.mxu0 %v1120_v28  ;;  %v913_v27 = vcombine.high %v32_v24, %v36_v25  ;;  %v37_v28 = vld [vmem:[%s1450_s0 + $0x78] sm:$0xff] }
  0x1e   :  { %1022 = vmatprep.subr.bf16.mxu1 %v1121_v29  ;;  %v915_v29 = vcombine.high %v33_v26, %v37_v28 }
  0x20   :  { %995 = vmatpush3.bf16.msra.mxu0 %v1122_v30  ;;  %v912_v30 = vcombine.low %v32_v24, %v36_v25 }
  0x21   :  { %1023 = vmatpush3.bf16.msra.mxu1 %v1123_v31  ;;  %1036 = vmatprep.subr.bf16.mxu0 %v1124_v40  ;;  %v914_v31 = vcombine.low %v33_v26, %v37_v28 }
  0x22   :  { %1064 = vmatprep.subr.bf16.mxu1 %v1125_v41 }
  0x23   :  { %669 = vmatmul.mubr.bf16.vlgmr.msra.gmra.mxu0 %v900_v35 }
  0x24   :  { %718 = vmatmul.mubr.bf16.vlgmr.msra.gmra.mxu1 %v902_v38  ;;  %1037 = vmatpush3.bf16.msra.mxu0 %v1126_v42 }
  0x25   :  { %1065 = vmatpush3.bf16.msra.mxu1 %v1127_v43  ;;  %1038 = vmatprep.subr.bf16.mxu0 %v1128_v44 }
  0x26   :  { %1066 = vmatprep.subr.bf16.mxu1 %v1129_v45  ;;  %676 = vmatprep.mubr.bf16.mxu0 %v909_v60 }
  0x27   :  { %725 = vmatprep.mubr.bf16.mxu1 %v911_v2 }
  0x28   :  { %1039 = vmatpush3.bf16.msra.mxu0 %v1130_v46 }
  0x29   :  { %1067 = vmatpush3.bf16.msra.mxu1 %v1131_v47  ;;  %1040 = vmatprep.subr.bf16.mxu0 %v1132_v48 }
  0x2a   :  { %1068 = vmatprep.subr.bf16.mxu1 %v1133_v49 }
  0x2b   :  { %677 = vmatmul.mubr.bf16.gmra.mxu0 %v908_v62 }
  0x2c   :  { %1041 = vmatpush3.bf16.msra.mxu0 %v1134_v50  ;;  %726 = vmatmul.mubr.bf16.gmra.mxu1 %v910_v3 }
  0x2d   :  { %1069 = vmatpush3.bf16.msra.mxu1 %v1135_v51  ;;  %1042 = vmatprep.subr.bf16.mxu0 %v1136_v52  ;;  %v899_v52 = vld [vmem:[%s1451_s2] ss:$0 sm:$0xff] }
  0x2e   :  { %1070 = vmatprep.subr.bf16.mxu1 %v1137_v53  ;;  %766 = vmatprep.mubr.bf16.mxu0 %v905_v21 }
  0x2f   :  { %815 = vmatprep.mubr.bf16.mxu1 %v907_v23 }
  0x30   :  { %1043 = vmatpush3.bf16.msra.mxu0 %v1138_v54 }
  0x31   :  { %1071 = vmatpush3.bf16.msra.mxu1 %v1139_v55  ;;  %1044 = vmatprep.subr.bf16.mxu0 %v1140_v56 }
  0x32   :  { %1072 = vmatprep.subr.bf16.mxu1 %v1141_v57 }
  0x34   :  { %1045 = vmatpush3.bf16.msra.mxu0 %v1142_v61 }
  0x35   :  { %1073 = vmatpush3.bf16.msra.mxu1 %v1143_v63  ;;  %1046 = vmatprep.subr.bf16.mxu0 %v1144_v4 }
  0x36   :  { %1074 = vmatprep.subr.bf16.mxu1 %v1145_v5 }
  0x38   :  { %1047 = vmatpush3.bf16.msra.mxu0 %v1146_v6 }
  0x39   :  { %1075 = vmatpush3.bf16.msra.mxu1 %v1147_v7  ;;  %1048 = vmatprep.subr.bf16.mxu0 %v1148_v8 }
  0x3a   :  { %1076 = vmatprep.subr.bf16.mxu1 %v1149_v9 }
  0x3c   :  { %1049 = vmatpush3.bf16.msra.mxu0 %v1150_v10 }
  0x3d   :  { %1077 = vmatpush3.bf16.msra.mxu1 %v1151_v11  ;;  %1050 = vmatprep.subr.bf16.mxu0 %v1152_v12 }
  0x3e   :  { %1078 = vmatprep.subr.bf16.mxu1 %v1153_v13 }
  0x40   :  { %1051 = vmatpush3.bf16.msra.mxu0 %v1154_v14 }
  0x41   :  { %1079 = vmatpush3.bf16.msra.mxu1 %v1155_v15 }
  0x43   :  { %767 = vmatmul.mubr.bf16.vlgmr.msra.gmra.mxu0 %v904_v20 }
  0x44   :  { %816 = vmatmul.mubr.bf16.vlgmr.msra.gmra.mxu1 %v906_v22  ;;  %774 = vmatprep.mubr.bf16.mxu0 %v913_v27 }
  0x45   :  { %823 = vmatprep.mubr.bf16.mxu1 %v915_v29 }
  0x4b   :  { %775 = vmatmul.mubr.bf16.gmra.mxu0 %v912_v30 }
  0x4c   :  { %824 = vmatmul.mubr.bf16.gmra.mxu1 %v914_v31 }
  0xe3   :  { %v996_v32 = vpop.f32.mrf.mxu0 }
  0xe4   :  { %v1024_v33 = vpop.f32.mrf.mxu1 }
  0xe5   :  { %v997_v34 = vpop.f32.mrf.mxu0 }
  0xe6   :  { %v1025_v35 = vpop.f32.mrf.mxu1  ;;  %v998_v51 = vadd.f32 %v997_v34, %v996_v32 }
  0xe7   :  { %v999_v36 = vpop.f32.mrf.mxu0  ;;  %v1026_v60 = vadd.f32 %v1025_v35, %v1024_v33 }
  0xe8   :  { %v1027_v37 = vpop.f32.mrf.mxu1  ;;  %v671_v59 = vadd.f32 %v998_v51, %v899_v52 }
  0xe9   :  { %v1000_v38 = vpop.f32.mrf.mxu0 }
  0xea   :  { %v1028_v39 = vpop.f32.mrf.mxu1  ;;  %v1001_v48 = vadd.f32 %v1000_v38, %v999_v36  ;;  %v720_v8 = vadd.f32 %v1026_v60, %v671_v59 }
  0xeb   :  { %v1002_v40 = vpop.f32.mrf.mxu0  ;;  %v1029_v61 = vadd.f32 %v1028_v39, %v1027_v37 }
  0xec   :  { %v1030_v41 = vpop.f32.mrf.mxu1  ;;  %v674_v56 = vadd.f32 %v1001_v48, %v899_v52 }
  0xed   :  { %v1003_v42 = vpop.f32.mrf.mxu0 }
  0xee   :  { %v1031_v43 = vpop.f32.mrf.mxu1  ;;  %v1004_v53 = vadd.f32 %v1003_v42, %v1002_v40  ;;  %v723_v3 = vadd.f32 %v1029_v61, %v674_v56 }
  0xef   :  { %v1005_v44 = vpop.f32.mrf.mxu0  ;;  %v1032_v63 = vadd.f32 %v1031_v43, %v1030_v41 }
  0xf0   :  { %v1033_v45 = vpop.f32.mrf.mxu1  ;;  %v679_v62 = vadd.f32 %v1004_v53, %v899_v52 }
  0xf1   :  { %v1006_v46 = vpop.f32.mrf.mxu0 }
  0xf2   :  { %v1034_v47 = vpop.f32.mrf.mxu1  ;;  %v1007_v0 = vadd.f32 %v1006_v46, %v1005_v44  ;;  %v728_v10 = vadd.f32 %v1032_v63, %v679_v62  ;;  %v869_v62 = vlaneseq }
  0xf3   :  { %v1035_v14 = vadd.f32 %v1034_v47, %v1033_v45 }
  0xf4   :  { %v682_v11 = vadd.f32 %v1007_v0, %v899_v52  ;;  %v870_v63 = vshrl.u32 %v869_v62, 7  ;;  %v864_v0 = vld [vmem:[%s1452_s3] sm:$0x1] }
  0xf6   :  { %v731_v26 = vadd.f32 %v1035_v14, %v682_v11 }
 0x103   :  { %v1052_v49 = vpop.f32.mrf.mxu0 }
 0x104   :  { %v1080_v50 = vpop.f32.mrf.mxu1 }
 0x105   :  { %v1053_v54 = vpop.f32.mrf.mxu0 }
 0x106   :  { %v1081_v55 = vpop.f32.mrf.mxu1  ;;  %v1054_v4 = vadd.f32 %v1053_v54, %v1052_v49 }
 0x107   :  { %v1055_v57 = vpop.f32.mrf.mxu0  ;;  %v1082_v20 = vadd.f32 %v1081_v55, %v1080_v50 }
 0x108   :  { %v1083_v58 = vpop.f32.mrf.mxu1  ;;  %v769_v15 = vadd.f32 %v1054_v4, %v720_v8  ;;  %v866_v4 = vld [vmem:[%s1453_s4] sm:$0x1] }
 0x109   :  { %v1056_v1 = vpop.f32.mrf.mxu0 }
 0x10a   :  { %v1084_v2 = vpop.f32.mrf.mxu1  ;;  %v1057_v5 = vadd.f32 %v1056_v1, %v1055_v57  ;;  %v818_v27 = vadd.f32 %v1082_v20, %v769_v15  ;;  %v871_v1 = vsub.s32 0, %v870_v63 }
 0x10b   :  { %v1058_v6 = vpop.f32.mrf.mxu0  ;;  %v1085_v16 = vadd.f32 %v1084_v2, %v1083_v58 }
 0x10c   :  { %v1086_v7 = vpop.f32.mrf.mxu1  ;;  %v772_v9 = vadd.f32 %v1057_v5, %v723_v3 }
 0x10d   :  { %v1059_v12 = vpop.f32.mrf.mxu0 }
 0x10e   :  { %v1087_v13 = vpop.f32.mrf.mxu1  ;;  %v1060_v17 = vadd.f32 %v1059_v12, %v1058_v6  ;;  %v821_v21 = vadd.f32 %v1085_v16, %v772_v9 }
 0x10f   :  { %v1061_v18 = vpop.f32.mrf.mxu0  ;;  %v1088_v23 = vadd.f32 %v1087_v13, %v1086_v7 }
 0x110   :  { %v1089_v19 = vpop.f32.mrf.mxu1  ;;  %v777_v22 = vadd.f32 %v1060_v17, %v728_v10  ;;  %v832_v30 = vadd.f32 %v821_v21, %v818_v27 }
 0x111   :  { %v1062_v24 = vpop.f32.mrf.mxu0 }
 0x112   :  { %v1090_v25 = vpop.f32.mrf.mxu1  ;;  %v826_v28 = vadd.f32 %v1088_v23, %v777_v22  ;;  %v1063_v29 = vadd.f32 %v1062_v24, %v1061_v18 }
 0x113   :  { %v1091_v32 = vadd.f32 %v1090_v25, %v1089_v19 }
 0x114   :  { %v780_v31 = vadd.f32 %v1063_v29, %v731_v26  ;;  %v833_v33 = vadd.f32 %v832_v30, %v826_v28 }
 0x116   :  { %v829_v34 = vadd.f32 %v1091_v32, %v780_v31 }
 0x118   :  { %v834_v35 = vadd.f32 %v833_v33, %v829_v34 }
 0x11a   :  { %v835_v36 = vrot.slane %v834_v35, 4 }
 0x11c   :  { %v836_v37 = vadd.f32 %v835_v36, %v834_v35 }
 0x11e   :  { %v837_v38 = vrot.slane %v836_v37, 2 }
 0x120   :  { %v838_v39 = vadd.f32 %v837_v38, %v836_v37 }
 0x122   :  { %v839_v40 = vrot.slane %v838_v39, 1 }
 0x124   :  { %v840_v41 = vadd.f32 %v839_v40, %v838_v39 }
 0x126   :  { %v842_v42 = vmul.f32 0.03125, %v840_v41 }
 0x128   :  { %v843_v43 = vsub.f32 %v818_v27, %v842_v42  ;;  %v844_v44 = vsub.f32 %v821_v21, %v842_v42  ;;  %v845_v45 = vsub.f32 %v826_v28, %v842_v42  ;;  %v846_v46 = vsub.f32 %v829_v34, %v842_v42 }
 0x12a   :  { %v847_v47 = vmul.f32 %v843_v43, %v843_v43  ;;  %v848_v48 = vmul.f32 %v844_v44, %v844_v44  ;;  %v849_v49 = vmul.f32 %v845_v45, %v845_v45  ;;  %v850_v51 = vmul.f32 %v846_v46, %v846_v46 }
 0x12c   :  { %v851_v50 = vadd.f32 %v848_v48, %v847_v47 }
 0x12e   :  { %v852_v52 = vadd.f32 %v851_v50, %v849_v49 }
 0x130   :  { %v853_v53 = vadd.f32 %v852_v52, %v850_v51 }
 0x132   :  { %v854_v54 = vrot.slane %v853_v53, 4 }
 0x134   :  { %v855_v55 = vadd.f32 %v854_v54, %v853_v53 }
 0x136   :  { %v856_v56 = vrot.slane %v855_v55, 2 }
 0x138   :  { %v857_v57 = vadd.f32 %v856_v56, %v855_v55 }
 0x13a   :  { %v858_v58 = vrot.slane %v857_v57, 1 }
 0x13c   :  { %v859_v59 = vadd.f32 %v858_v58, %v857_v57 }
 0x13e   :  { %v861_v60 = vmul.f32 0.03125, %v859_v59 }
 0x140   :  { %v862_v61 = vadd.f32 1e-05, %v861_v60 }
 0x142   :  { %1156 = vrsqrt.f32 %v862_v61 }
 0x14f   :  { %v1157_v2 = vpop.eup %1156 }
 0x150   :  { %v865_v3 = vmul.f32 %v1157_v2, %v864_v0 }
 0x152   :  { %v867_v5 = vmul.f32 %v865_v3, %v842_v42  ;;  %v872_v6 = vrot.slane %v865_v3, %v871_v1 }
 0x154   :  { %v868_v7 = vsub.f32 %v866_v4, %v867_v5  ;;  %v873_v8 = vmul.f32 %v872_v6, %v818_v27  ;;  %v874_v9 = vmul.f32 %v872_v6, %v821_v21  ;;  %v875_v10 = vmul.f32 %v872_v6, %v826_v28 }
 0x155   :  { %v876_v11 = vmul.f32 %v872_v6, %v829_v34 }
 0x156   :  { %v881_v12 = vrot.slane %v868_v7, %v871_v1 }
 0x158   :  { %v883_v13 = vadd.f32 %v881_v12, %v873_v8  ;;  %v884_v14 = vadd.f32 %v881_v12, %v874_v9  ;;  %v885_v15 = vadd.f32 %v881_v12, %v875_v10  ;;  %v886_v16 = vadd.f32 %v881_v12, %v876_v11 }
 0x15a   :  { %v887_v17 = vmax.f32 %v883_v13, 0.0  ;;  %v888_v18 = vmax.f32 %v884_v14, 0.0  ;;  %v889_v19 = vmax.f32 %v885_v15, 0.0  ;;  %v890_v20 = vmax.f32 %v886_v16, 0.0 }
 0x15c   :  { %891 = vst [vmem:[%s1454_s5] sm:$0xff] %v887_v17  ;;  %892 = vst [vmem:[%s1454_s5 + $0x8] sm:$0xff] %v888_v18 }
 0x15d   :  { %893 = vst [vmem:[%s1454_s5 + $0x10] sm:$0xff] %v889_v19  ;;  %894 = vst [vmem:[%s1454_s5 + $0x18] sm:$0xff] %v890_v20 }

// kernel: _lambda_.6
= control target key start
LH: loop header
LB: loop body
LE: loop exit
PB: predicated region body
PF: predicated region fallthrough
CT: control target
= control target key end

     0   :  { %s3235_s1 = inlined_call_operand.vmem [shape: bf16[4,512,128], index: 1, kind: input, shape index: {}]   ;;  %s3236_s0 = inlined_call_operand.vmem [shape: bf16[32,2048], index: 0, kind: input, shape index: {}]   ;;  %s3237_s2 = inlined_call_operand.vmem [shape: f32[1,128], index: 2, kind: input, shape index: {}]   ;;  %s3238_s3 = inlined_call_operand.vmem [shape: f32[1,128], index: 3, kind: input, shape index: {}]   ;;  %s3239_s4 = inlined_call_operand.vmem [shape: f32[1,128], index: 4, kind: input, shape index: {}]   ;;  %s3240_s5 = inlined_call_operand.vmem [shape: f32[32,512], index: 5, kind: output, shape index: {}]  }
   0x1   :  { %v2415_v0 = vld [vmem:[%s3235_s1 + $0x78] sm:$0xff]   ;;  %v2419_v4 = vld [vmem:[%s3235_s1 + $0x70] sm:$0xff]   ;;  %v2423_v8 = vld [vmem:[%s3235_s1 + $0x68] sm:$0xff]  }
   0x2   :  { %v2416_v1 = vld [vmem:[%s3235_s1 + $0xf8] sm:$0xff]   ;;  %2191 = vmatprep.subr.bf16.mxu0 %v2415_v0  ;;  %v2420_v5 = vld [vmem:[%s3235_s1 + $0xf0] sm:$0xff]   ;;  %v2424_v9 = vld [vmem:[%s3235_s1 + $0xe8] sm:$0xff]  }
   0x3   :  { %v2417_v2 = vld [vmem:[%s3235_s1 + $0x38] sm:$0xff]   ;;  %2219 = vmatprep.subr.bf16.mxu1 %v2416_v1  ;;  %v2421_v6 = vld [vmem:[%s3235_s1 + $0x30] sm:$0xff]   ;;  %v2425_v10 = vld [vmem:[%s3235_s1 + $0x28] sm:$0xff]  }
   0x4   :  { %v2418_v3 = vld [vmem:[%s3235_s1 + $0xb8] sm:$0xff]   ;;  %2192 = vmatpush3.bf16.msra.mxu0 %v2417_v2  ;;  %v2422_v7 = vld [vmem:[%s3235_s1 + $0xb0] sm:$0xff]   ;;  %v2426_v11 = vld [vmem:[%s3235_s1 + $0xa8] sm:$0xff]  }
   0x5   :  { %2220 = vmatpush3.bf16.msra.mxu1 %v2418_v3  ;;  %2193 = vmatprep.subr.bf16.mxu0 %v2419_v4  ;;  %v2427_v12 = vld [vmem:[%s3235_s1 + $0x60] sm:$0xff]   ;;  %v2431_v16 = vld [vmem:[%s3235_s1 + $0x58] sm:$0xff]   ;;  %v2435_v20 = vld [vmem:[%s3235_s1 + $0x50] sm:$0xff]  }
   0x6   :  { %2221 = vmatprep.subr.bf16.mxu1 %v2420_v5  ;;  %v2428_v13 = vld [vmem:[%s3235_s1 + $0xe0] sm:$0xff]   ;;  %v2432_v17 = vld [vmem:[%s3235_s1 + $0xd8] sm:$0xff]   ;;  %v2436_v21 = vld [vmem:[%s3235_s1 + $0xd0] sm:$0xff]  }
   0x7   :  { %v2429_v14 = vld [vmem:[%s3235_s1 + $0x20] sm:$0xff]   ;;  %v2433_v18 = vld [vmem:[%s3235_s1 + $0x18] sm:$0xff]   ;;  %v2437_v22 = vld [vmem:[%s3235_s1 + $0x10] sm:$0xff]  }
   0x8   :  { %2194 = vmatpush3.bf16.msra.mxu0 %v2421_v6  ;;  %v2430_v15 = vld [vmem:[%s3235_s1 + $0xa0] sm:$0xff]   ;;  %v2434_v19 = vld [vmem:[%s3235_s1 + $0x98] sm:$0xff]   ;;  %v2438_v23 = vld [vmem:[%s3235_s1 + $0x90] sm:$0xff]  }
   0x9   :  { %2222 = vmatpush3.bf16.msra.mxu1 %v2422_v7  ;;  %2195 = vmatprep.subr.bf16.mxu0 %v2423_v8  ;;  %v2439_v24 = vld [vmem:[%s3235_s1 + $0x48] sm:$0xff]   ;;  %v2443_v28 = vld [vmem:[%s3235_s1 + $0x40] sm:$0xff]   ;;  %v2447_v40 = vld [vmem:[%s3235_s1 + $0x178] sm:$0xff]  }
   0xa   :  { %2223 = vmatprep.subr.bf16.mxu1 %v2424_v9  ;;  %v2440_v25 = vld [vmem:[%s3235_s1 + $0xc8] sm:$0xff]   ;;  %v2444_v29 = vld [vmem:[%s3235_s1 + $0xc0] sm:$0xff]   ;;  %v2448_v41 = vld [vmem:[%s3235_s1 + $0x1f8] sm:$0xff]  }
   0xb   :  { %v2441_v26 = vld [vmem:[%s3235_s1 + $0x8] sm:$0xff]   ;;  %v2445_v30 = vld [vmem:[%s3235_s1] sm:$0xff]   ;;  %v2449_v42 = vld [vmem:[%s3235_s1 + $0x138] sm:$0xff]  }
   0xc   :  { %2196 = vmatpush3.bf16.msra.mxu0 %v2425_v10  ;;  %v2442_v27 = vld [vmem:[%s3235_s1 + $0x88] sm:$0xff]   ;;  %v2446_v31 = vld [vmem:[%s3235_s1 + $0x80] sm:$0xff]   ;;  %v2450_v43 = vld [vmem:[%s3235_s1 + $0x1b8] sm:$0xff]  }
   0xd   :  { %2224 = vmatpush3.bf16.msra.mxu1 %v2426_v11  ;;  %2197 = vmatprep.subr.bf16.mxu0 %v2427_v12  ;;  %v22_v32 = vld [vmem:[%s3236_s0] sm:$0xff]  ;;  %v23_v34 = vld [vmem:[%s3236_s0 + $0x8] sm:$0xff]  ;;  %v2451_v44 = vld [vmem:[%s3235_s1 + $0x170] sm:$0xff]  }
   0xe   :  { %2225 = vmatprep.subr.bf16.mxu1 %v2428_v13  ;;  %v24_v33 = vld [vmem:[%s3236_s0 + $0x40] sm:$0xff]  ;;  %v25_v37 = vld [vmem:[%s3236_s0 + $0x48] sm:$0xff]  ;;  %v2452_v45 = vld [vmem:[%s3235_s1 + $0x1f0] sm:$0xff]  }
   0xf   :  { %v1839_v35 = vcombine.low %v22_v32, %v24_v33  ;;  %v1840_v36 = vcombine.high %v22_v32, %v24_v33  ;;  %v1841_v38 = vcombine.low %v23_v34, %v25_v37  ;;  %v1842_v39 = vcombine.high %v23_v34, %v25_v37  ;;  %v2453_v46 = vld [vmem:[%s3235_s1 + $0x130] sm:$0xff]   ;;  %v26_v48 = vld [vmem:[%s3236_s0 + $0x80] sm:$0xff]  ;;  %v2455_v52 = vld [vmem:[%s3235_s1 + $0x168] sm:$0xff]  }
  0x10   :  { %2198 = vmatpush3.bf16.msra.mxu0 %v2429_v14  ;;  %v2454_v47 = vld [vmem:[%s3235_s1 + $0x1b0] sm:$0xff]   ;;  %v28_v49 = vld [vmem:[%s3236_s0 + $0xc0] sm:$0xff]  ;;  %v2456_v53 = vld [vmem:[%s3235_s1 + $0x1e8] sm:$0xff]  }
  0x11   :  { %2226 = vmatpush3.bf16.msra.mxu1 %v2430_v15  ;;  %2199 = vmatprep.subr.bf16.mxu0 %v2431_v16  ;;  %v1844_v50 = vcombine.high %v26_v48, %v28_v49  ;;  %v1843_v51 = vcombine.low %v26_v48, %v28_v49  ;;  %v27_v54 = vld [vmem:[%s3236_s0 + $0x88] sm:$0xff]  ;;  %v2459_v60 = vld [vmem:[%s3235_s1 + $0x160] sm:$0xff]   ;;  %v2463_v0 = vld [vmem:[%s3235_s1 + $0x158] sm:$0xff]  }
  0x12   :  { %2227 = vmatprep.subr.bf16.mxu1 %v2432_v17  ;;  %364 = vmatprep.mubr.bf16.mxu0 %v1840_v36  ;;  %v29_v55 = vld [vmem:[%s3236_s0 + $0xc8] sm:$0xff]  ;;  %v2460_v61 = vld [vmem:[%s3235_s1 + $0x1e0] sm:$0xff]   ;;  %v2464_v1 = vld [vmem:[%s3235_s1 + $0x1d8] sm:$0xff]  }
  0x13   :  { %413 = vmatprep.mubr.bf16.mxu1 %v1842_v39  ;;  %v1846_v56 = vcombine.high %v27_v54, %v29_v55  ;;  %v2457_v57 = vld [vmem:[%s3235_s1 + $0x128] sm:$0xff]   ;;  %v1845_v58 = vcombine.low %v27_v54, %v29_v55  ;;  %v2461_v62 = vld [vmem:[%s3235_s1 + $0x120] sm:$0xff]   ;;  %v2465_v2 = vld [vmem:[%s3235_s1 + $0x118] sm:$0xff]  }
  0x14   :  { %2200 = vmatpush3.bf16.msra.mxu0 %v2433_v18  ;;  %v2458_v59 = vld [vmem:[%s3235_s1 + $0x1a8] sm:$0xff]   ;;  %v2462_v63 = vld [vmem:[%s3235_s1 + $0x1a0] sm:$0xff]   ;;  %v2466_v3 = vld [vmem:[%s3235_s1 + $0x198] sm:$0xff]  }
  0x15   :  { %2228 = vmatpush3.bf16.msra.mxu1 %v2434_v19  ;;  %2201 = vmatprep.subr.bf16.mxu0 %v2435_v20  ;;  %v2467_v4 = vld [vmem:[%s3235_s1 + $0x150] sm:$0xff]   ;;  %v2471_v8 = vld [vmem:[%s3235_s1 + $0x148] sm:$0xff]   ;;  %v2475_v12 = vld [vmem:[%s3235_s1 + $0x140] sm:$0xff]  }
  0x16   :  { %2229 = vmatprep.subr.bf16.mxu1 %v2436_v21  ;;  %v2468_v5 = vld [vmem:[%s3235_s1 + $0x1d0] sm:$0xff]   ;;  %v2472_v9 = vld [vmem:[%s3235_s1 + $0x1c8] sm:$0xff]   ;;  %v2476_v13 = vld [vmem:[%s3235_s1 + $0x1c0] sm:$0xff]  }
  0x17   :  { %v2469_v6 = vld [vmem:[%s3235_s1 + $0x110] sm:$0xff]   ;;  %v2473_v10 = vld [vmem:[%s3235_s1 + $0x108] sm:$0xff]   ;;  %v2477_v14 = vld [vmem:[%s3235_s1 + $0x100] sm:$0xff]  }
  0x18   :  { %2202 = vmatpush3.bf16.msra.mxu0 %v2437_v22  ;;  %v2470_v7 = vld [vmem:[%s3235_s1 + $0x190] sm:$0xff]   ;;  %v2474_v11 = vld [vmem:[%s3235_s1 + $0x188] sm:$0xff]   ;;  %v2478_v15 = vld [vmem:[%s3235_s1 + $0x180] sm:$0xff]  }
  0x19   :  { %2230 = vmatpush3.bf16.msra.mxu1 %v2438_v23  ;;  %2203 = vmatprep.subr.bf16.mxu0 %v2439_v24  ;;  %v440_v16 = vld [vmem:[%s3236_s0 + $0x10] sm:$0xff]  ;;  %v441_v18 = vld [vmem:[%s3236_s0 + $0x18] sm:$0xff]  ;;  %v2487_v36 = vld [vmem:[%s3235_s1 + $0x268] sm:$0xff]  }
  0x1a   :  { %2231 = vmatprep.subr.bf16.mxu1 %v2440_v25  ;;  %v442_v17 = vld [vmem:[%s3236_s0 + $0x50] sm:$0xff]  ;;  %v443_v19 = vld [vmem:[%s3236_s0 + $0x58] sm:$0xff]  ;;  %v2488_v37 = vld [vmem:[%s3235_s1 + $0x2e8] sm:$0xff]  }
  0x1b   :  { %v1943_v20 = vcombine.low %v440_v16, %v442_v17  ;;  %v1944_v21 = vcombine.high %v440_v16, %v442_v17  ;;  %v1945_v22 = vcombine.low %v441_v18, %v443_v19  ;;  %v1946_v23 = vcombine.high %v441_v18, %v443_v19  ;;  %v2479_v24 = vld [vmem:[%s3235_s1 + $0x278] sm:$0xff]   ;;  %v444_v32 = vld [vmem:[%s3236_s0 + $0x90] sm:$0xff]  ;;  %v857_v16 = vld [vmem:[%s3236_s0 + $0xa0] sm:$0xff] }
  0x1c   :  { %2204 = vmatpush3.bf16.msra.mxu0 %v2441_v26  ;;  %v2480_v25 = vld [vmem:[%s3235_s1 + $0x2f8] sm:$0xff]   ;;  %v446_v33 = vld [vmem:[%s3236_s0 + $0xd0] sm:$0xff]  ;;  %v859_v17 = vld [vmem:[%s3236_s0 + $0xe0] sm:$0xff] }
  0x1d   :  { %2232 = vmatpush3.bf16.msra.mxu1 %v2442_v27  ;;  %2205 = vmatprep.subr.bf16.mxu0 %v2443_v28  ;;  %v2481_v26 = vld [vmem:[%s3235_s1 + $0x238] sm:$0xff]   ;;  %v2483_v28 = vld [vmem:[%s3235_s1 + $0x270] sm:$0xff]   ;;  %v1948_v34 = vcombine.high %v444_v32, %v446_v33  ;;  %v2052_v18 = vcombine.high %v857_v16, %v859_v17  ;;  %v2051_v19 = vcombine.low %v857_v16, %v859_v17 }
  0x1e   :  { %2233 = vmatprep.subr.bf16.mxu1 %v2444_v29  ;;  %v2482_v27 = vld [vmem:[%s3235_s1 + $0x2b8] sm:$0xff]   ;;  %v2484_v29 = vld [vmem:[%s3235_s1 + $0x2f0] sm:$0xff]  }
  0x1f   :  { %v447_v39 = vld [vmem:[%s3236_s0 + $0xd8] sm:$0xff]  ;;  %v2501_v54 = vld [vmem:[%s3235_s1 + $0x210] sm:$0xff]  }
  0x20   :  { %2206 = vmatpush3.bf16.msra.mxu0 %v2445_v30  ;;  %v2485_v30 = vld [vmem:[%s3235_s1 + $0x230] sm:$0xff]   ;;  %v2495_v48 = vld [vmem:[%s3235_s1 + $0x258] sm:$0xff]  }
  0x21   :  { %2234 = vmatpush3.bf16.msra.mxu1 %v2446_v31  ;;  %2247 = vmatprep.subr.bf16.mxu0 %v2447_v40  ;;  %v2486_v31 = vld [vmem:[%s3235_s1 + $0x2b0] sm:$0xff]   ;;  %v2496_v49 = vld [vmem:[%s3235_s1 + $0x2d8] sm:$0xff]  }
  0x22   :  { %2275 = vmatprep.subr.bf16.mxu1 %v2448_v41  ;;  %v2489_v41 = vld [vmem:[%s3235_s1 + $0x228] sm:$0xff]   ;;  %v2502_v55 = vld [vmem:[%s3235_s1 + $0x290] sm:$0xff]  }
  0x23   :  { %365 = vmatmul.mubr.bf16.vlgmr.msra.gmra.mxu0 %v1839_v35  ;;  %v1947_v35 = vcombine.low %v444_v32, %v446_v33  ;;  %v2527_v32 = vld [vmem:[%s3235_s1 + $0x358] sm:$0xff]  }
  0x24   :  { %414 = vmatmul.mubr.bf16.vlgmr.msra.gmra.mxu1 %v1841_v38  ;;  %2248 = vmatpush3.bf16.msra.mxu0 %v2449_v42  ;;  %v445_v38 = vld [vmem:[%s3236_s0 + $0x98] sm:$0xff] }
  0x25   :  { %2276 = vmatpush3.bf16.msra.mxu1 %v2450_v43  ;;  %2249 = vmatprep.subr.bf16.mxu0 %v2451_v44  ;;  %v1950_v40 = vcombine.high %v445_v38, %v447_v39  ;;  %v1949_v42 = vcombine.low %v445_v38, %v447_v39  ;;  %v2490_v43 = vld [vmem:[%s3235_s1 + $0x2a8] sm:$0xff]   ;;  %v2491_v44 = vld [vmem:[%s3235_s1 + $0x260] sm:$0xff]   ;;  %v2528_v33 = vld [vmem:[%s3235_s1 + $0x3d8] sm:$0xff]  }
  0x26   :  { %2277 = vmatprep.subr.bf16.mxu1 %v2452_v45  ;;  %372 = vmatprep.mubr.bf16.mxu0 %v1844_v50  ;;  %v2492_v45 = vld [vmem:[%s3235_s1 + $0x2e0] sm:$0xff]   ;;  %v2497_v50 = vld [vmem:[%s3235_s1 + $0x218] sm:$0xff]   ;;  %v2533_v38 = vld [vmem:[%s3235_s1 + $0x310] sm:$0xff]  }
  0x27   :  { %421 = vmatprep.mubr.bf16.mxu1 %v1846_v56  ;;  %v2503_v56 = vld [vmem:[%s3235_s1 + $0x248] sm:$0xff]   ;;  %v2534_v39 = vld [vmem:[%s3235_s1 + $0x390] sm:$0xff]  }
  0x28   :  { %2250 = vmatpush3.bf16.msra.mxu0 %v2453_v46  ;;  %v2493_v46 = vld [vmem:[%s3235_s1 + $0x220] sm:$0xff]  }
  0x29   :  { %2278 = vmatpush3.bf16.msra.mxu1 %v2454_v47  ;;  %2251 = vmatprep.subr.bf16.mxu0 %v2455_v52  ;;  %v2494_v47 = vld [vmem:[%s3235_s1 + $0x2a0] sm:$0xff]   ;;  %v2499_v52 = vld [vmem:[%s3235_s1 + $0x250] sm:$0xff]  }
  0x2a   :  { %2279 = vmatprep.subr.bf16.mxu1 %v2456_v53  ;;  %v2500_v53 = vld [vmem:[%s3235_s1 + $0x2d0] sm:$0xff]  }
  0x2b   :  { %373 = vmatmul.mubr.bf16.gmra.mxu0 %v1843_v51  ;;  %v2498_v51 = vld [vmem:[%s3235_s1 + $0x298] sm:$0xff]  }
  0x2c   :  { %2252 = vmatpush3.bf16.msra.mxu0 %v2457_v57  ;;  %422 = vmatmul.mubr.bf16.gmra.mxu1 %v1845_v58  ;;  %v2504_v57 = vld [vmem:[%s3235_s1 + $0x2c8] sm:$0xff]  }
  0x2d   :  { %2280 = vmatpush3.bf16.msra.mxu1 %v2458_v59  ;;  %2253 = vmatprep.subr.bf16.mxu0 %v2459_v60  ;;  %v2505_v58 = vld [vmem:[%s3235_s1 + $0x208] sm:$0xff]   ;;  %v2507_v60 = vld [vmem:[%s3235_s1 + $0x240] sm:$0xff]  }
  0x2e   :  { %2281 = vmatprep.subr.bf16.mxu1 %v2460_v61  ;;  %777 = vmatprep.mubr.bf16.mxu0 %v1944_v21  ;;  %v2506_v59 = vld [vmem:[%s3235_s1 + $0x288] sm:$0xff]   ;;  %v2508_v61 = vld [vmem:[%s3235_s1 + $0x2c0] sm:$0xff]  }
  0x2f   :  { %826 = vmatprep.mubr.bf16.mxu1 %v1946_v23  ;;  %v2520_v21 = vld [vmem:[%s3235_s1 + $0x3e8] sm:$0xff]  }
  0x30   :  { %2254 = vmatpush3.bf16.msra.mxu0 %v2461_v62  ;;  %v2509_v62 = vld [vmem:[%s3235_s1 + $0x200] sm:$0xff]   ;;  %v860_v23 = vld [vmem:[%s3236_s0 + $0xe8] sm:$0xff] }
  0x31   :  { %2282 = vmatpush3.bf16.msra.mxu1 %v2462_v63  ;;  %2255 = vmatprep.subr.bf16.mxu0 %v2463_v0  ;;  %v2510_v63 = vld [vmem:[%s3235_s1 + $0x280] sm:$0xff]  }
  0x32   :  { %2283 = vmatprep.subr.bf16.mxu1 %v2464_v1  ;;  %v853_v0 = vld [vmem:[%s3236_s0 + $0x20] sm:$0xff] }
  0x33   :  { %v855_v1 = vld [vmem:[%s3236_s0 + $0x60] sm:$0xff] }
  0x34   :  { %2256 = vmatpush3.bf16.msra.mxu0 %v2465_v2  ;;  %v2047_v2 = vcombine.low %v853_v0, %v855_v1 }
  0x35   :  { %2284 = vmatpush3.bf16.msra.mxu1 %v2466_v3  ;;  %2257 = vmatprep.subr.bf16.mxu0 %v2467_v4  ;;  %v2048_v3 = vcombine.high %v853_v0, %v855_v1  ;;  %v854_v4 = vld [vmem:[%s3236_s0 + $0x28] sm:$0xff] }
  0x36   :  { %2285 = vmatprep.subr.bf16.mxu1 %v2468_v5  ;;  %v856_v5 = vld [vmem:[%s3236_s0 + $0x68] sm:$0xff] }
  0x38   :  { %2258 = vmatpush3.bf16.msra.mxu0 %v2469_v6  ;;  %v2049_v6 = vcombine.low %v854_v4, %v856_v5 }
  0x39   :  { %2286 = vmatpush3.bf16.msra.mxu1 %v2470_v7  ;;  %2259 = vmatprep.subr.bf16.mxu0 %v2471_v8  ;;  %v2050_v7 = vcombine.high %v854_v4, %v856_v5  ;;  %v2511_v8 = vld [vmem:[%s3235_s1 + $0x378] sm:$0xff]  }
  0x3a   :  { %2287 = vmatprep.subr.bf16.mxu1 %v2472_v9  ;;  %v2512_v9 = vld [vmem:[%s3235_s1 + $0x3f8] sm:$0xff]  }
  0x3c   :  { %2260 = vmatpush3.bf16.msra.mxu0 %v2473_v10  ;;  %v2513_v10 = vld [vmem:[%s3235_s1 + $0x338] sm:$0xff]  }
  0x3d   :  { %2288 = vmatpush3.bf16.msra.mxu1 %v2474_v11  ;;  %2261 = vmatprep.subr.bf16.mxu0 %v2475_v12  ;;  %v2514_v11 = vld [vmem:[%s3235_s1 + $0x3b8] sm:$0xff]   ;;  %v2515_v12 = vld [vmem:[%s3235_s1 + $0x370] sm:$0xff]  }
  0x3e   :  { %2289 = vmatprep.subr.bf16.mxu1 %v2476_v13  ;;  %v2516_v13 = vld [vmem:[%s3235_s1 + $0x3f0] sm:$0xff]  }
  0x40   :  { %2262 = vmatpush3.bf16.msra.mxu0 %v2477_v14  ;;  %v2517_v14 = vld [vmem:[%s3235_s1 + $0x330] sm:$0xff]  }
  0x41   :  { %2290 = vmatpush3.bf16.msra.mxu1 %v2478_v15  ;;  %2303 = vmatprep.subr.bf16.mxu0 %v2479_v24  ;;  %v2518_v15 = vld [vmem:[%s3235_s1 + $0x3b0] sm:$0xff]  }
  0x42   :  { %2331 = vmatprep.subr.bf16.mxu1 %v2480_v25  ;;  %v2521_v25 = vld [vmem:[%s3235_s1 + $0x328] sm:$0xff]  }
  0x43   :  { %778 = vmatmul.mubr.bf16.vlgmr.msra.gmra.mxu0 %v1943_v20  ;;  %v2519_v20 = vld [vmem:[%s3235_s1 + $0x368] sm:$0xff]  }
  0x44   :  { %827 = vmatmul.mubr.bf16.vlgmr.msra.gmra.mxu1 %v1945_v22  ;;  %2304 = vmatpush3.bf16.msra.mxu0 %v2481_v26  ;;  %v858_v22 = vld [vmem:[%s3236_s0 + $0xa8] sm:$0xff] }
  0x45   :  { %2332 = vmatpush3.bf16.msra.mxu1 %v2482_v27  ;;  %2305 = vmatprep.subr.bf16.mxu0 %v2483_v28  ;;  %v2054_v24 = vcombine.high %v858_v22, %v860_v23  ;;  %v2053_v26 = vcombine.low %v858_v22, %v860_v23  ;;  %v2522_v27 = vld [vmem:[%s3235_s1 + $0x3a8] sm:$0xff]   ;;  %v2523_v28 = vld [vmem:[%s3235_s1 + $0x360] sm:$0xff]  }
  0x46   :  { %2333 = vmatprep.subr.bf16.mxu1 %v2484_v29  ;;  %785 = vmatprep.mubr.bf16.mxu0 %v1948_v34  ;;  %v2524_v29 = vld [vmem:[%s3235_s1 + $0x3e0] sm:$0xff]   ;;  %v2529_v34 = vld [vmem:[%s3235_s1 + $0x318] sm:$0xff]  }
  0x47   :  { %834 = vmatprep.mubr.bf16.mxu1 %v1950_v40  ;;  %v2535_v40 = vld [vmem:[%s3235_s1 + $0x348] sm:$0xff]  }
  0x48   :  { %2306 = vmatpush3.bf16.msra.mxu0 %v2485_v30  ;;  %v2525_v30 = vld [vmem:[%s3235_s1 + $0x320] sm:$0xff]  }
  0x49   :  { %2334 = vmatpush3.bf16.msra.mxu1 %v2486_v31  ;;  %2307 = vmatprep.subr.bf16.mxu0 %v2487_v36  ;;  %v2526_v31 = vld [vmem:[%s3235_s1 + $0x3a0] sm:$0xff]   ;;  %v2531_v36 = vld [vmem:[%s3235_s1 + $0x350] sm:$0xff]  }
  0x4a   :  { %2335 = vmatprep.subr.bf16.mxu1 %v2488_v37  ;;  %v2532_v37 = vld [vmem:[%s3235_s1 + $0x3d0] sm:$0xff]  }
  0x4b   :  { %786 = vmatmul.mubr.bf16.gmra.mxu0 %v1947_v35  ;;  %v2530_v35 = vld [vmem:[%s3235_s1 + $0x398] sm:$0xff]  }
  0x4c   :  { %2308 = vmatpush3.bf16.msra.mxu0 %v2489_v41  ;;  %835 = vmatmul.mubr.bf16.gmra.mxu1 %v1949_v42  ;;  %v2536_v41 = vld [vmem:[%s3235_s1 + $0x3c8] sm:$0xff]  }
  0x4d   :  { %2336 = vmatpush3.bf16.msra.mxu1 %v2490_v43  ;;  %2309 = vmatprep.subr.bf16.mxu0 %v2491_v44  ;;  %v2537_v42 = vld [vmem:[%s3235_s1 + $0x308] sm:$0xff]   ;;  %v2539_v44 = vld [vmem:[%s3235_s1 + $0x340] sm:$0xff]  }
  0x4e   :  { %2337 = vmatprep.subr.bf16.mxu1 %v2492_v45  ;;  %1190 = vmatprep.mubr.bf16.mxu0 %v2048_v3  ;;  %v2538_v43 = vld [vmem:[%s3235_s1 + $0x388] sm:$0xff]   ;;  %v2540_v45 = vld [vmem:[%s3235_s1 + $0x3c0] sm:$0xff]  }
  0x4f   :  { %1239 = vmatprep.mubr.bf16.mxu1 %v2050_v7 }
  0x50   :  { %2310 = vmatpush3.bf16.msra.mxu0 %v2493_v46  ;;  %v2541_v46 = vld [vmem:[%s3235_s1 + $0x300] sm:$0xff]  }
  0x51   :  { %2338 = vmatpush3.bf16.msra.mxu1 %v2494_v47  ;;  %2311 = vmatprep.subr.bf16.mxu0 %v2495_v48  ;;  %v2542_v47 = vld [vmem:[%s3235_s1 + $0x380] sm:$0xff]   ;;  %v1266_v48 = vld [vmem:[%s3236_s0 + $0x30] sm:$0xff] }
  0x52   :  { %2339 = vmatprep.subr.bf16.mxu1 %v2496_v49  ;;  %v1268_v49 = vld [vmem:[%s3236_s0 + $0x70] sm:$0xff] }
  0x54   :  { %2312 = vmatpush3.bf16.msra.mxu0 %v2497_v50  ;;  %v1267_v50 = vld [vmem:[%s3236_s0 + $0x38] sm:$0xff] }
  0x55   :  { %2340 = vmatpush3.bf16.msra.mxu1 %v2498_v51  ;;  %2313 = vmatprep.subr.bf16.mxu0 %v2499_v52  ;;  %v2151_v51 = vcombine.low %v1266_v48, %v1268_v49  ;;  %v2152_v52 = vcombine.high %v1266_v48, %v1268_v49 }
  0x56   :  { %2341 = vmatprep.subr.bf16.mxu1 %v2500_v53  ;;  %v1269_v53 = vld [vmem:[%s3236_s0 + $0x78] sm:$0xff] }
  0x58   :  { %2314 = vmatpush3.bf16.msra.mxu0 %v2501_v54  ;;  %v1270_v54 = vld [vmem:[%s3236_s0 + $0xb0] sm:$0xff] }
  0x59   :  { %2342 = vmatpush3.bf16.msra.mxu1 %v2502_v55  ;;  %2315 = vmatprep.subr.bf16.mxu0 %v2503_v56  ;;  %v1272_v55 = vld [vmem:[%s3236_s0 + $0xf0] sm:$0xff]  ;;  %v2153_v56 = vcombine.low %v1267_v50, %v1269_v53 }
  0x5a   :  { %2343 = vmatprep.subr.bf16.mxu1 %v2504_v57  ;;  %v2154_v57 = vcombine.high %v1267_v50, %v1269_v53 }
  0x5c   :  { %2316 = vmatpush3.bf16.msra.mxu0 %v2505_v58  ;;  %v2156_v58 = vcombine.high %v1270_v54, %v1272_v55 }
  0x5d   :  { %2344 = vmatpush3.bf16.msra.mxu1 %v2506_v59  ;;  %2317 = vmatprep.subr.bf16.mxu0 %v2507_v60  ;;  %v1271_v59 = vld [vmem:[%s3236_s0 + $0xb8] sm:$0xff] }
  0x5e   :  { %2345 = vmatprep.subr.bf16.mxu1 %v2508_v61  ;;  %v1273_v60 = vld [vmem:[%s3236_s0 + $0xf8] sm:$0xff] }
  0x5f   :  { %v2158_v61 = vcombine.high %v1271_v59, %v1273_v60 }
  0x60   :  { %2318 = vmatpush3.bf16.msra.mxu0 %v2509_v62  ;;  %v2155_v62 = vcombine.low %v1270_v54, %v1272_v55 }
  0x61   :  { %2346 = vmatpush3.bf16.msra.mxu1 %v2510_v63  ;;  %2359 = vmatprep.subr.bf16.mxu0 %v2511_v8  ;;  %v2157_v63 = vcombine.low %v1271_v59, %v1273_v60 }
  0x62   :  { %2387 = vmatprep.subr.bf16.mxu1 %v2512_v9 }
  0x63   :  { %1191 = vmatmul.mubr.bf16.vlgmr.msra.gmra.mxu0 %v2047_v2 }
  0x64   :  { %1240 = vmatmul.mubr.bf16.vlgmr.msra.gmra.mxu1 %v2049_v6  ;;  %2360 = vmatpush3.bf16.msra.mxu0 %v2513_v10 }
  0x65   :  { %2388 = vmatpush3.bf16.msra.mxu1 %v2514_v11  ;;  %2361 = vmatprep.subr.bf16.mxu0 %v2515_v12 }
  0x66   :  { %2389 = vmatprep.subr.bf16.mxu1 %v2516_v13  ;;  %1198 = vmatprep.mubr.bf16.mxu0 %v2052_v18 }
  0x67   :  { %1247 = vmatprep.mubr.bf16.mxu1 %v2054_v24 }
  0x68   :  { %2362 = vmatpush3.bf16.msra.mxu0 %v2517_v14 }
  0x69   :  { %2390 = vmatpush3.bf16.msra.mxu1 %v2518_v15  ;;  %2363 = vmatprep.subr.bf16.mxu0 %v2519_v20 }
  0x6a   :  { %2391 = vmatprep.subr.bf16.mxu1 %v2520_v21 }
  0x6b   :  { %1199 = vmatmul.mubr.bf16.gmra.mxu0 %v2051_v19 }
  0x6c   :  { %2364 = vmatpush3.bf16.msra.mxu0 %v2521_v25  ;;  %1248 = vmatmul.mubr.bf16.gmra.mxu1 %v2053_v26 }
  0x6d   :  { %2392 = vmatpush3.bf16.msra.mxu1 %v2522_v27  ;;  %2365 = vmatprep.subr.bf16.mxu0 %v2523_v28 }
  0x6e   :  { %2393 = vmatprep.subr.bf16.mxu1 %v2524_v29  ;;  %1603 = vmatprep.mubr.bf16.mxu0 %v2152_v52 }
  0x6f   :  { %1652 = vmatprep.mubr.bf16.mxu1 %v2154_v57 }
  0x70   :  { %2366 = vmatpush3.bf16.msra.mxu0 %v2525_v30 }
  0x71   :  { %2394 = vmatpush3.bf16.msra.mxu1 %v2526_v31  ;;  %2367 = vmatprep.subr.bf16.mxu0 %v2527_v32 }
  0x72   :  { %2395 = vmatprep.subr.bf16.mxu1 %v2528_v33 }
  0x74   :  { %2368 = vmatpush3.bf16.msra.mxu0 %v2529_v34 }
  0x75   :  { %2396 = vmatpush3.bf16.msra.mxu1 %v2530_v35  ;;  %2369 = vmatprep.subr.bf16.mxu0 %v2531_v36 }
  0x76   :  { %2397 = vmatprep.subr.bf16.mxu1 %v2532_v37 }
  0x78   :  { %2370 = vmatpush3.bf16.msra.mxu0 %v2533_v38 }
  0x79   :  { %2398 = vmatpush3.bf16.msra.mxu1 %v2534_v39  ;;  %2371 = vmatprep.subr.bf16.mxu0 %v2535_v40 }
  0x7a   :  { %2399 = vmatprep.subr.bf16.mxu1 %v2536_v41 }
  0x7c   :  { %2372 = vmatpush3.bf16.msra.mxu0 %v2537_v42 }
  0x7d   :  { %2400 = vmatpush3.bf16.msra.mxu1 %v2538_v43  ;;  %2373 = vmatprep.subr.bf16.mxu0 %v2539_v44  ;;  %v3062_v44 = vld [vmem:[%s3237_s2] ss:$0 sm:$0xff] }
  0x7e   :  { %2401 = vmatprep.subr.bf16.mxu1 %v2540_v45 }
  0x80   :  { %2374 = vmatpush3.bf16.msra.mxu0 %v2541_v46 }
  0x81   :  { %2402 = vmatpush3.bf16.msra.mxu1 %v2542_v47 }
  0x83   :  { %1604 = vmatmul.mubr.bf16.vlgmr.msra.gmra.mxu0 %v2151_v51 }
  0x84   :  { %1653 = vmatmul.mubr.bf16.vlgmr.msra.gmra.mxu1 %v2153_v56  ;;  %1611 = vmatprep.mubr.bf16.mxu0 %v2156_v58 }
  0x85   :  { %1660 = vmatprep.mubr.bf16.mxu1 %v2158_v61 }
  0x8b   :  { %1612 = vmatmul.mubr.bf16.gmra.mxu0 %v2155_v62 }
  0x8c   :  { %1661 = vmatmul.mubr.bf16.gmra.mxu1 %v2157_v63 }
  0xe3   :  { %v2207_v0 = vpop.f32.mrf.mxu0 }
  0xe4   :  { %v2235_v2 = vpop.f32.mrf.mxu1 }
  0xe5   :  { %v2208_v1 = vpop.f32.mrf.mxu0 }
  0xe6   :  { %v2236_v4 = vpop.f32.mrf.mxu1  ;;  %v2209_v45 = vadd.f32 %v2208_v1, %v2207_v0 }
  0xe7   :  { %v2210_v3 = vpop.f32.mrf.mxu0  ;;  %v2237_v55 = vadd.f32 %v2236_v4, %v2235_v2 }
  0xe8   :  { %v2238_v6 = vpop.f32.mrf.mxu1  ;;  %v367_v54 = vadd.f32 %v2209_v45, %v3062_v44 }
  0xe9   :  { %v2211_v5 = vpop.f32.mrf.mxu0 }
  0xea   :  { %v2239_v8 = vpop.f32.mrf.mxu1  ;;  %v2212_v43 = vadd.f32 %v2211_v5, %v2210_v3 }
  0xeb   :  { %v2213_v7 = vpop.f32.mrf.mxu0  ;;  %v2240_v51 = vadd.f32 %v2239_v8, %v2238_v6 }
  0xec   :  { %v2241_v10 = vpop.f32.mrf.mxu1  ;;  %v370_v48 = vadd.f32 %v2212_v43, %v3062_v44 }
  0xed   :  { %v2214_v9 = vpop.f32.mrf.mxu0 }
  0xee   :  { %v2242_v12 = vpop.f32.mrf.mxu1  ;;  %v2215_v49 = vadd.f32 %v2214_v9, %v2213_v7  ;;  %v3066_v59 = vadd.f32 %v2240_v51, %v370_v48 }
  0xef   :  { %v2216_v11 = vpop.f32.mrf.mxu0  ;;  %v2243_v63 = vadd.f32 %v2242_v12, %v2241_v10 }
  0xf0   :  { %v3055_v14 = vpop.f32.mrf.mxu1  ;;  %v375_v60 = vadd.f32 %v2215_v49, %v3062_v44 }
  0xf1   :  { %v2217_v13 = vpop.f32.mrf.mxu0 }
  0xf2   :  { %v3057_v16 = vpop.f32.mrf.mxu1  ;;  %v2218_v0 = vadd.f32 %v2217_v13, %v2216_v11 }
  0xf4   :  { %v378_v12 = vadd.f32 %v2218_v0, %v3062_v44 }
 0x103   :  { %v2263_v15 = vpop.f32.mrf.mxu0 }
 0x104   :  { %v2291_v17 = vpop.f32.mrf.mxu1 }
 0x105   :  { %v2264_v18 = vpop.f32.mrf.mxu0 }
 0x106   :  { %v2292_v19 = vpop.f32.mrf.mxu1  ;;  %v2265_v52 = vadd.f32 %v2264_v18, %v2263_v15 }
 0x107   :  { %v2266_v20 = vpop.f32.mrf.mxu0  ;;  %v2293_v6 = vadd.f32 %v2292_v19, %v2291_v17 }
 0x108   :  { %v2294_v21 = vpop.f32.mrf.mxu1  ;;  %v780_v5 = vadd.f32 %v2265_v52, %v3062_v44 }
 0x109   :  { %v2267_v22 = vpop.f32.mrf.mxu0 }
 0x10a   :  { %v2295_v23 = vpop.f32.mrf.mxu1  ;;  %v2268_v50 = vadd.f32 %v2267_v22, %v2266_v20 }
 0x10b   :  { %v2269_v24 = vpop.f32.mrf.mxu0  ;;  %v2296_v4 = vadd.f32 %v2295_v23, %v2294_v21  ;;  %v2246_v21 = vadd.f32 %v3057_v16, %v3055_v14 }
 0x10c   :  { %v2297_v25 = vpop.f32.mrf.mxu1  ;;  %v783_v1 = vadd.f32 %v2268_v50, %v3062_v44 }
 0x10d   :  { %v2270_v26 = vpop.f32.mrf.mxu0 }
 0x10e   :  { %v2298_v27 = vpop.f32.mrf.mxu1  ;;  %v2271_v56 = vadd.f32 %v2270_v26, %v2269_v24  ;;  %v3076_v13 = vadd.f32 %v2296_v4, %v783_v1  ;;  %v3084_v26 = vadd.f32 %v2293_v6, %v780_v5 }
 0x10f   :  { %v2272_v28 = vpop.f32.mrf.mxu0  ;;  %v2299_v9 = vadd.f32 %v2298_v27, %v2297_v25 }
 0x110   :  { %v2300_v29 = vpop.f32.mrf.mxu1  ;;  %v788_v8 = vadd.f32 %v2271_v56, %v3062_v44  ;;  %v843_v14 = vadd.f32 %v3076_v13, %v3084_v26 }
 0x111   :  { %v2273_v30 = vpop.f32.mrf.mxu0 }
 0x112   :  { %v2301_v31 = vpop.f32.mrf.mxu1  ;;  %v2274_v3 = vadd.f32 %v2273_v30, %v2272_v28  ;;  %v3086_v27 = vadd.f32 %v2299_v9, %v788_v8  ;;  %v3088_v28 = vadd.f32 %v2237_v55, %v367_v54  ;;  %v3090_v30 = vadd.f32 %v2243_v63, %v375_v60 }
 0x113   :  { %v2302_v19 = vadd.f32 %v2301_v31, %v2300_v29  ;;  %v3102_v31 = vadd.f32 %v2246_v21, %v378_v12 }
 0x114   :  { %v791_v17 = vadd.f32 %v2274_v3, %v3062_v44  ;;  %v430_v29 = vadd.f32 %v3066_v59, %v3088_v28 }
 0x116   :  { %v3098_v16 = vadd.f32 %v2302_v19, %v791_v17 }
 0x123   :  { %v2319_v32 = vpop.f32.mrf.mxu0 }
 0x124   :  { %v2347_v33 = vpop.f32.mrf.mxu1 }
 0x125   :  { %v2320_v34 = vpop.f32.mrf.mxu0 }
 0x126   :  { %v2348_v36 = vpop.f32.mrf.mxu1  ;;  %v2321_v61 = vadd.f32 %v2320_v34, %v2319_v32 }
 0x127   :  { %v2322_v35 = vpop.f32.mrf.mxu0  ;;  %v2349_v15 = vadd.f32 %v2348_v36, %v2347_v33 }
 0x128   :  { %v2350_v38 = vpop.f32.mrf.mxu1  ;;  %v1193_v20 = vadd.f32 %v2321_v61, %v3062_v44 }
 0x129   :  { %v2323_v37 = vpop.f32.mrf.mxu0 }
 0x12a   :  { %v2351_v40 = vpop.f32.mrf.mxu1  ;;  %v2324_v53 = vadd.f32 %v2323_v37, %v2322_v35  ;;  %v3092_v32 = vadd.f32 %v2349_v15, %v1193_v20  ;;  %v844_v37 = vadd.f32 %v843_v14, %v3086_v27 }
 0x12b   :  { %v2325_v39 = vpop.f32.mrf.mxu0  ;;  %v2352_v22 = vadd.f32 %v2351_v40, %v2350_v38 }
 0x12c   :  { %v2353_v42 = vpop.f32.mrf.mxu1  ;;  %v1196_v7 = vadd.f32 %v2324_v53, %v3062_v44 }
 0x12d   :  { %v2326_v41 = vpop.f32.mrf.mxu0 }
 0x12e   :  { %v2354_v47 = vpop.f32.mrf.mxu1  ;;  %v2327_v62 = vadd.f32 %v2326_v41, %v2325_v39  ;;  %v3081_v23 = vadd.f32 %v2352_v22, %v1196_v7  ;;  %v431_v39 = vadd.f32 %v430_v29, %v3090_v30 }
 0x12f   :  { %v2328_v46 = vpop.f32.mrf.mxu0  ;;  %v2355_v11 = vadd.f32 %v2354_v47, %v2353_v42  ;;  %v845_v42 = vadd.f32 %v844_v37, %v3098_v16 }
 0x130   :  { %v2356_v58 = vpop.f32.mrf.mxu1  ;;  %v1201_v10 = vadd.f32 %v2327_v62, %v3062_v44  ;;  %v1256_v34 = vadd.f32 %v3081_v23, %v3092_v32  ;;  %v432_v45 = vadd.f32 %v431_v39, %v3102_v31 }
 0x131   :  { %v2329_v57 = vpop.f32.mrf.mxu0  ;;  %v846_v50 = vrot.slane %v845_v42, 4 }
 0x132   :  { %v2330_v2 = vadd.f32 %v2329_v57, %v2328_v46  ;;  %v2357_v18 = vpop.f32.mrf.mxu1  ;;  %v3094_v33 = vadd.f32 %v2355_v11, %v1201_v10  ;;  %v433_v54 = vrot.slane %v432_v45, 4 }
 0x133   :  { %v2358_v25 = vadd.f32 %v2357_v18, %v2356_v58  ;;  %v847_v61 = vadd.f32 %v846_v50, %v845_v42 }
 0x134   :  { %v1204_v24 = vadd.f32 %v2330_v2, %v3062_v44  ;;  %v1257_v40 = vadd.f32 %v1256_v34, %v3094_v33  ;;  %v434_v3 = vadd.f32 %v433_v54, %v432_v45 }
 0x135   :  { %v848_v18 = vrot.slane %v847_v61, 2 }
 0x136   :  { %v3106_v35 = vadd.f32 %v2358_v25, %v1204_v24  ;;  %v435_v12 = vrot.slane %v434_v3, 2 }
 0x137   :  { %v849_v25 = vadd.f32 %v848_v18, %v847_v61 }
 0x138   :  { %v1258_v46 = vadd.f32 %v1257_v40, %v3106_v35  ;;  %v436_v34 = vadd.f32 %v435_v12, %v434_v3 }
 0x13a   :  { %v1259_v55 = vrot.slane %v1258_v46, 4  ;;  %v437_v40 = vrot.slane %v436_v34, 1 }
 0x13c   :  { %v1260_v5 = vadd.f32 %v1259_v55, %v1258_v46  ;;  %v438_v46 = vadd.f32 %v437_v40, %v436_v34 }
 0x13e   :  { %v1261_v17 = vrot.slane %v1260_v5, 2 }
 0x143   :  { %v2375_v36 = vpop.f32.mrf.mxu0 }
 0x144   :  { %v2403_v38 = vpop.f32.mrf.mxu1 }
 0x145   :  { %v2376_v41 = vpop.f32.mrf.mxu0 }
 0x146   :  { %v2404_v43 = vpop.f32.mrf.mxu1  ;;  %v2377_v51 = vadd.f32 %v2376_v41, %v2375_v36  ;;  %v1262_v36 = vadd.f32 %v1261_v17, %v1260_v5 }
 0x147   :  { %v2378_v47 = vpop.f32.mrf.mxu0  ;;  %v2405_v7 = vadd.f32 %v2404_v43, %v2403_v38  ;;  %v850_v38 = vrot.slane %v849_v25, 1 }
 0x148   :  { %v2406_v48 = vpop.f32.mrf.mxu1  ;;  %v1606_v62 = vadd.f32 %v2377_v51, %v3062_v44  ;;  %v1263_v41 = vrot.slane %v1262_v36, 1 }
 0x149   :  { %v2379_v49 = vpop.f32.mrf.mxu0  ;;  %v851_v43 = vadd.f32 %v850_v38, %v849_v25 }
 0x14a   :  { %v2380_v52 = vadd.f32 %v2379_v49, %v2378_v47  ;;  %v2407_v53 = vpop.f32.mrf.mxu1  ;;  %v3119_v20 = vadd.f32 %v2405_v7, %v1606_v62  ;;  %v1264_v47 = vadd.f32 %v1263_v41, %v1262_v36 }
 0x14b   :  { %v2381_v56 = vpop.f32.mrf.mxu0  ;;  %v2408_v63 = vadd.f32 %v2407_v53, %v2406_v48  ;;  %v852_v48 = vadd.f32 %v851_v43, %v438_v46 }
 0x14c   :  { %v1609_v57 = vadd.f32 %v2380_v52, %v3062_v44  ;;  %v2409_v58 = vpop.f32.mrf.mxu1 }
 0x14d   :  { %v2382_v60 = vpop.f32.mrf.mxu0  ;;  %v1265_v50 = vadd.f32 %v1264_v47, %v852_v48 }
 0x14e   :  { %v2383_v0 = vadd.f32 %v2382_v60, %v2381_v56  ;;  %v2410_v1 = vpop.f32.mrf.mxu1  ;;  %v3116_v2 = vadd.f32 %v2408_v63, %v1609_v57 }
 0x14f   :  { %v2384_v6 = vpop.f32.mrf.mxu0  ;;  %v2411_v8 = vadd.f32 %v2410_v1, %v2409_v58 }
 0x150   :  { %v1614_v4 = vadd.f32 %v2383_v0, %v3062_v44  ;;  %v2412_v9 = vpop.f32.mrf.mxu1  ;;  %v1669_v19 = vadd.f32 %v3116_v2, %v3119_v20 }
 0x151   :  { %v2385_v15 = vpop.f32.mrf.mxu0 }
 0x152   :  { %v3121_v22 = vadd.f32 %v2411_v8, %v1614_v4  ;;  %v2386_v10 = vadd.f32 %v2385_v15, %v2384_v6  ;;  %v2413_v11 = vpop.f32.mrf.mxu1 }
 0x153   :  { %v2414_v24 = vadd.f32 %v2413_v11, %v2412_v9 }
 0x154   :  { %v1617_v21 = vadd.f32 %v2386_v10, %v3062_v44  ;;  %v1670_v14 = vadd.f32 %v1669_v19, %v3121_v22 }
 0x156   :  { %v3127_v29 = vadd.f32 %v2414_v24, %v1617_v21 }
 0x158   :  { %v1671_v37 = vadd.f32 %v1670_v14, %v3127_v29 }
 0x15a   :  { %v1672_v39 = vrot.slane %v1671_v37, 4 }
 0x15c   :  { %v1673_v42 = vadd.f32 %v1672_v39, %v1671_v37 }
 0x15e   :  { %v1674_v45 = vrot.slane %v1673_v42, 2 }
 0x160   :  { %v1675_v44 = vadd.f32 %v1674_v45, %v1673_v42 }
 0x162   :  { %v1676_v49 = vrot.slane %v1675_v44, 1 }
 0x164   :  { %v1677_v51 = vadd.f32 %v1676_v49, %v1675_v44 }
 0x166   :  { %v1678_v52 = vadd.f32 %v1677_v51, %v1265_v50 }
 0x168   :  { %v3130_v53 = vmul.f32 0.0078125, %v1678_v52 }
 0x16a   :  { %v1680_v54 = vsub.f32 %v3088_v28, %v3130_v53  ;;  %v1681_v55 = vsub.f32 %v3066_v59, %v3130_v53  ;;  %v1682_v56 = vsub.f32 %v3090_v30, %v3130_v53  ;;  %v1683_v57 = vsub.f32 %v3102_v31, %v3130_v53 }
 0x16b   :  { %v1698_v58 = vsub.f32 %v3084_v26, %v3130_v53  ;;  %v1699_v60 = vsub.f32 %v3076_v13, %v3130_v53  ;;  %v1700_v61 = vsub.f32 %v3086_v27, %v3130_v53  ;;  %v1701_v1 = vsub.f32 %v3098_v16, %v3130_v53 }
 0x16c   :  { %v1684_v62 = vmul.f32 %v1680_v54, %v1680_v54  ;;  %v1685_v63 = vmul.f32 %v1681_v55, %v1681_v55  ;;  %v1686_v0 = vmul.f32 %v1682_v56, %v1682_v56  ;;  %v1687_v3 = vmul.f32 %v1683_v57, %v1683_v57 }
 0x16d   :  { %v1702_v5 = vmul.f32 %v1698_v58, %v1698_v58  ;;  %v1703_v6 = vmul.f32 %v1699_v60, %v1699_v60  ;;  %v1704_v7 = vmul.f32 %v1700_v61, %v1700_v61  ;;  %v1716_v8 = vsub.f32 %v3092_v32, %v3130_v53 }
 0x16e   :  { %v1688_v4 = vadd.f32 %v1685_v63, %v1684_v62  ;;  %v1717_v9 = vsub.f32 %v3081_v23, %v3130_v53  ;;  %v1718_v15 = vsub.f32 %v3094_v33, %v3130_v53  ;;  %v1719_v10 = vsub.f32 %v3106_v35, %v3130_v53 }
 0x16f   :  { %v1706_v18 = vadd.f32 %v1703_v6, %v1702_v5  ;;  %v1734_v11 = vsub.f32 %v3119_v20, %v3130_v53  ;;  %v1735_v12 = vsub.f32 %v3116_v2, %v3130_v53  ;;  %v1705_v19 = vmul.f32 %v1701_v1, %v1701_v1 }
 0x170   :  { %v1689_v17 = vadd.f32 %v1688_v4, %v1686_v0  ;;  %v1720_v21 = vmul.f32 %v1716_v8, %v1716_v8  ;;  %v1721_v24 = vmul.f32 %v1717_v9, %v1717_v9  ;;  %v1722_v14 = vmul.f32 %v1718_v15, %v1718_v15 }
 0x171   :  { %v1707_v25 = vadd.f32 %v1706_v18, %v1704_v7  ;;  %v1736_v34 = vsub.f32 %v3121_v22, %v3130_v53  ;;  %v1737_v36 = vsub.f32 %v3127_v29, %v3130_v53  ;;  %v1738_v39 = vmul.f32 %v1734_v11, %v1734_v11 }
 0x172   :  { %v1690_v37 = vadd.f32 %v1689_v17, %v1687_v3  ;;  %v1724_v38 = vadd.f32 %v1721_v24, %v1720_v21  ;;  %v1739_v40 = vmul.f32 %v1735_v12, %v1735_v12  ;;  %v1723_v42 = vmul.f32 %v1719_v10, %v1719_v10 }
 0x173   :  { %v1708_v41 = vadd.f32 %v1707_v25, %v1705_v19  ;;  %v1740_v46 = vmul.f32 %v1736_v34, %v1736_v34  ;;  %v1741_v50 = vmul.f32 %v1737_v36, %v1737_v36  ;;  %v1760_v24 = vlaneseq }
 0x174   :  { %v1691_v43 = vrot.slane %v1690_v37, 4  ;;  %v1725_v45 = vadd.f32 %v1724_v38, %v1722_v14  ;;  %v1742_v47 = vadd.f32 %v1739_v40, %v1738_v39  ;;  %v1755_v14 = vld [vmem:[%s3238_s3] sm:$0x1] }
 0x175   :  { %v1709_v44 = vrot.slane %v1708_v41, 4  ;;  %v1761_v25 = vshrl.u32 %v1760_v24, 7  ;;  %v1757_v38 = vld [vmem:[%s3239_s4] sm:$0x1] }
 0x176   :  { %v1692_v48 = vadd.f32 %v1691_v43, %v1690_v37  ;;  %v1726_v49 = vadd.f32 %v1725_v45, %v1723_v42  ;;  %v1743_v51 = vadd.f32 %v1742_v47, %v1740_v46 }
 0x177   :  { %v1710_v52 = vadd.f32 %v1709_v44, %v1708_v41  ;;  %v1762_v34 = vsub.s32 0, %v1761_v25 }
 0x178   :  { %v1693_v54 = vrot.slane %v1692_v48, 2  ;;  %v1727_v55 = vrot.slane %v1726_v49, 4  ;;  %v1744_v56 = vadd.f32 %v1743_v51, %v1741_v50 }
 0x179   :  { %v1711_v57 = vrot.slane %v1710_v52, 2 }
 0x17a   :  { %v1694_v58 = vadd.f32 %v1693_v54, %v1692_v48  ;;  %v1728_v60 = vadd.f32 %v1727_v55, %v1726_v49  ;;  %v1745_v61 = vrot.slane %v1744_v56, 4 }
 0x17b   :  { %v1712_v62 = vadd.f32 %v1711_v57, %v1710_v52 }
 0x17c   :  { %v1695_v63 = vrot.slane %v1694_v58, 1  ;;  %v1729_v0 = vrot.slane %v1728_v60, 2  ;;  %v1746_v1 = vadd.f32 %v1745_v61, %v1744_v56 }
 0x17d   :  { %v1713_v3 = vrot.slane %v1712_v62, 1 }
 0x17e   :  { %v1696_v5 = vadd.f32 %v1695_v63, %v1694_v58  ;;  %v1730_v6 = vadd.f32 %v1729_v0, %v1728_v60  ;;  %v1747_v7 = vrot.slane %v1746_v1, 2 }
 0x17f   :  { %v1714_v4 = vadd.f32 %v1713_v3, %v1712_v62 }
 0x180   :  { %v1731_v8 = vrot.slane %v1730_v6, 1  ;;  %v1748_v9 = vadd.f32 %v1747_v7, %v1746_v1 }
 0x181   :  { %v1715_v15 = vadd.f32 %v1714_v4, %v1696_v5 }
 0x182   :  { %v1732_v18 = vadd.f32 %v1731_v8, %v1730_v6  ;;  %v1749_v10 = vrot.slane %v1748_v9, 1 }
 0x184   :  { %v1733_v11 = vadd.f32 %v1732_v18, %v1715_v15  ;;  %v1750_v12 = vadd.f32 %v1749_v10, %v1748_v9 }
 0x186   :  { %v1751_v17 = vadd.f32 %v1750_v12, %v1733_v11 }
 0x188   :  { %v1752_v19 = vmul.f32 0.0078125, %v1751_v17 }
 0x18a   :  { %v1753_v21 = vadd.f32 1e-05, %v1752_v19 }
 0x18c   :  { %2543 = vrsqrt.f32 %v1753_v21 }
 0x199   :  { %v2544_v36 = vpop.eup %2543 }
 0x19a   :  { %v1756_v37 = vmul.f32 %v2544_v36, %v1755_v14 }
 0x19c   :  { %v1758_v39 = vmul.f32 %v1756_v37, %v3130_v53  ;;  %v1763_v40 = vrot.slane %v1756_v37, %v1762_v34 }
 0x19e   :  { %v1759_v41 = vsub.f32 %v1757_v38, %v1758_v39  ;;  %v1764_v42 = vmul.f32 %v1763_v40, %v3088_v28  ;;  %v1765_v43 = vmul.f32 %v1763_v40, %v3066_v59  ;;  %v1766_v45 = vmul.f32 %v1763_v40, %v3090_v30 }
 0x19f   :  { %v1767_v46 = vmul.f32 %v1763_v40, %v3102_v31  ;;  %v1786_v47 = vmul.f32 %v1763_v40, %v3084_v26  ;;  %v1787_v44 = vmul.f32 %v1763_v40, %v3076_v13  ;;  %v1788_v48 = vmul.f32 %v1763_v40, %v3086_v27 }
 0x1a0   :  { %v1772_v49 = vrot.slane %v1759_v41, %v1762_v34  ;;  %v1789_v50 = vmul.f32 %v1763_v40, %v3098_v16  ;;  %v1802_v53 = vmul.f32 %v1763_v40, %v3092_v32  ;;  %v1803_v51 = vmul.f32 %v1763_v40, %v3081_v23 }
 0x1a1   :  { %v1804_v28 = vmul.f32 %v1763_v40, %v3094_v33  ;;  %v1805_v59 = vmul.f32 %v1763_v40, %v3106_v35  ;;  %v1818_v30 = vmul.f32 %v1763_v40, %v3119_v20  ;;  %v1819_v31 = vmul.f32 %v1763_v40, %v3116_v2 }
 0x1a2   :  { %v1774_v26 = vadd.f32 %v1772_v49, %v1764_v42  ;;  %v1775_v52 = vadd.f32 %v1772_v49, %v1765_v43  ;;  %v1776_v13 = vadd.f32 %v1772_v49, %v1766_v45  ;;  %v1777_v54 = vadd.f32 %v1772_v49, %v1767_v46 }
 0x1a3   :  { %v1790_v27 = vadd.f32 %v1786_v47, %v1772_v49  ;;  %v1791_v55 = vadd.f32 %v1787_v44, %v1772_v49  ;;  %v1792_v56 = vadd.f32 %v1788_v48, %v1772_v49  ;;  %v1793_v16 = vadd.f32 %v1789_v50, %v1772_v49 }
 0x1a4   :  { %v1778_v57 = vmax.f32 %v1774_v26, 0.0  ;;  %v1779_v32 = vmax.f32 %v1775_v52, 0.0  ;;  %v1780_v58 = vmax.f32 %v1776_v13, 0.0  ;;  %v1781_v23 = vmax.f32 %v1777_v54, 0.0 }
 0x1a5   :  { %v1794_v60 = vmax.f32 %v1790_v27, 0.0  ;;  %v1795_v33 = vmax.f32 %v1791_v55, 0.0  ;;  %v1796_v61 = vmax.f32 %v1792_v56, 0.0  ;;  %v1797_v35 = vmax.f32 %v1793_v16, 0.0 }
 0x1a6   :  { %1782 = vst [vmem:[%s3240_s5] sm:$0xff] %v1778_v57  ;;  %1783 = vst [vmem:[%s3240_s5 + $0x20] sm:$0xff] %v1779_v32  ;;  %v1806_v2 = vadd.f32 %v1802_v53, %v1772_v49  ;;  %v1807_v20 = vadd.f32 %v1803_v51, %v1772_v49  ;;  %v1808_v62 = vadd.f32 %v1804_v28, %v1772_v49 }
 0x1a7   :  { %1784 = vst [vmem:[%s3240_s5 + $0x40] sm:$0xff] %v1780_v58  ;;  %1785 = vst [vmem:[%s3240_s5 + $0x60] sm:$0xff] %v1781_v23  ;;  %v1809_v63 = vadd.f32 %v1805_v59, %v1772_v49  ;;  %v1820_v0 = vmul.f32 %v1763_v40, %v3121_v22  ;;  %v1821_v1 = vmul.f32 %v1763_v40, %v3127_v29 }
 0x1a8   :  { %1798 = vst [vmem:[%s3240_s5 + $0x8] sm:$0xff] %v1794_v60  ;;  %1799 = vst [vmem:[%s3240_s5 + $0x28] sm:$0xff] %v1795_v33  ;;  %v1822_v3 = vadd.f32 %v1818_v30, %v1772_v49  ;;  %v1823_v5 = vadd.f32 %v1819_v31, %v1772_v49  ;;  %v1810_v6 = vmax.f32 %v1806_v2, 0.0  ;;  %v1811_v7 = vmax.f32 %v1807_v20, 0.0 }
 0x1a9   :  { %1800 = vst [vmem:[%s3240_s5 + $0x48] sm:$0xff] %v1796_v61  ;;  %1801 = vst [vmem:[%s3240_s5 + $0x68] sm:$0xff] %v1797_v35  ;;  %v1812_v4 = vmax.f32 %v1808_v62, 0.0  ;;  %v1813_v8 = vmax.f32 %v1809_v63, 0.0  ;;  %v1824_v9 = vadd.f32 %v1820_v0, %v1772_v49  ;;  %v1825_v15 = vadd.f32 %v1821_v1, %v1772_v49 }
 0x1aa   :  { %v1826_v18 = vmax.f32 %v1822_v3, 0.0  ;;  %v1827_v10 = vmax.f32 %v1823_v5, 0.0  ;;  %1814 = vst [vmem:[%s3240_s5 + $0x10] sm:$0xff] %v1810_v6  ;;  %1815 = vst [vmem:[%s3240_s5 + $0x30] sm:$0xff] %v1811_v7 }
 0x1ab   :  { %1816 = vst [vmem:[%s3240_s5 + $0x50] sm:$0xff] %v1812_v4  ;;  %1817 = vst [vmem:[%s3240_s5 + $0x70] sm:$0xff] %v1813_v8  ;;  %v1828_v22 = vmax.f32 %v1824_v9, 0.0  ;;  %v1829_v29 = vmax.f32 %v1825_v15, 0.0 }
 0x1ac   :  { %1830 = vst [vmem:[%s3240_s5 + $0x18] sm:$0xff] %v1826_v18  ;;  %1831 = vst [vmem:[%s3240_s5 + $0x38] sm:$0xff] %v1827_v10 }
 0x1ad   :  { %1832 = vst [vmem:[%s3240_s5 + $0x58] sm:$0xff] %v1828_v22  ;;  %1833 = vst [vmem:[%s3240_s5 + $0x78] sm:$0xff] %v1829_v29 }

// kernel: _lambda_.7
= control target key start
LH: loop header
LB: loop body
LE: loop exit
PB: predicated region body
PF: predicated region fallthrough
CT: control target
= control target key end

     0   :  { %s3871_s1 = inlined_call_operand.vmem [shape: bf16[4,256,128], index: 1, kind: input, shape index: {}]   ;;  %s3872_s0 = inlined_call_operand.vmem [shape: bf16[128,1024], index: 0, kind: input, shape index: {}]   ;;  %s3873_s2 = inlined_call_operand.vmem [shape: f32[1,128], index: 2, kind: input, shape index: {}]   ;;  %s3874_s3 = inlined_call_operand.vmem [shape: f32[1,128], index: 3, kind: input, shape index: {}]   ;;  %s3875_s4 = inlined_call_operand.vmem [shape: f32[1,128], index: 4, kind: input, shape index: {}]   ;;  %s3876_s5 = inlined_call_operand.vmem [shape: f32[128,512], index: 5, kind: output, shape index: {}]  }
   0x1   :  { %v2379_v0 = vld [vmem:[%s3871_s1 + $0x78] sm:$0xff]   ;;  %v2383_v4 = vld [vmem:[%s3871_s1 + $0x70] sm:$0xff]   ;;  %v2387_v8 = vld [vmem:[%s3871_s1 + $0x68] sm:$0xff]  }
   0x2   :  { %v2380_v1 = vld [vmem:[%s3871_s1 + $0xf8] sm:$0xff]   ;;  %2123 = vmatprep.subr.bf16.mxu0 %v2379_v0  ;;  %v2384_v5 = vld [vmem:[%s3871_s1 + $0xf0] sm:$0xff]   ;;  %v2388_v9 = vld [vmem:[%s3871_s1 + $0xe8] sm:$0xff]  }
   0x3   :  { %v2381_v2 = vld [vmem:[%s3871_s1 + $0x38] sm:$0xff]   ;;  %2187 = vmatprep.subr.bf16.mxu1 %v2380_v1  ;;  %v2385_v6 = vld [vmem:[%s3871_s1 + $0x30] sm:$0xff]   ;;  %v2389_v10 = vld [vmem:[%s3871_s1 + $0x28] sm:$0xff]  }
   0x4   :  { %v2382_v3 = vld [vmem:[%s3871_s1 + $0xb8] sm:$0xff]   ;;  %2124 = vmatpush3.bf16.msra.mxu0 %v2381_v2  ;;  %v2386_v7 = vld [vmem:[%s3871_s1 + $0xb0] sm:$0xff]   ;;  %v2390_v11 = vld [vmem:[%s3871_s1 + $0xa8] sm:$0xff]  }
   0x5   :  { %2188 = vmatpush3.bf16.msra.mxu1 %v2382_v3  ;;  %2125 = vmatprep.subr.bf16.mxu0 %v2383_v4  ;;  %v2391_v12 = vld [vmem:[%s3871_s1 + $0x60] sm:$0xff]   ;;  %v2395_v16 = vld [vmem:[%s3871_s1 + $0x58] sm:$0xff]   ;;  %v2399_v20 = vld [vmem:[%s3871_s1 + $0x50] sm:$0xff]  }
   0x6   :  { %2189 = vmatprep.subr.bf16.mxu1 %v2384_v5  ;;  %v2392_v13 = vld [vmem:[%s3871_s1 + $0xe0] sm:$0xff]   ;;  %v2396_v17 = vld [vmem:[%s3871_s1 + $0xd8] sm:$0xff]   ;;  %v2400_v21 = vld [vmem:[%s3871_s1 + $0xd0] sm:$0xff]  }
   0x7   :  { %v2393_v14 = vld [vmem:[%s3871_s1 + $0x20] sm:$0xff]   ;;  %v2397_v18 = vld [vmem:[%s3871_s1 + $0x18] sm:$0xff]   ;;  %v2401_v22 = vld [vmem:[%s3871_s1 + $0x10] sm:$0xff]  }
   0x8   :  { %2126 = vmatpush3.bf16.msra.mxu0 %v2385_v6  ;;  %v2394_v15 = vld [vmem:[%s3871_s1 + $0xa0] sm:$0xff]   ;;  %v2398_v19 = vld [vmem:[%s3871_s1 + $0x98] sm:$0xff]   ;;  %v2402_v23 = vld [vmem:[%s3871_s1 + $0x90] sm:$0xff]  }
   0x9   :  { %2190 = vmatpush3.bf16.msra.mxu1 %v2386_v7  ;;  %2127 = vmatprep.subr.bf16.mxu0 %v2387_v8  ;;  %v2403_v24 = vld [vmem:[%s3871_s1 + $0x48] sm:$0xff]   ;;  %v2407_v28 = vld [vmem:[%s3871_s1 + $0x40] sm:$0xff]   ;;  %v2411_v40 = vld [vmem:[%s3871_s1 + $0x178] sm:$0xff]  }
   0xa   :  { %2191 = vmatprep.subr.bf16.mxu1 %v2388_v9  ;;  %v2404_v25 = vld [vmem:[%s3871_s1 + $0xc8] sm:$0xff]   ;;  %v2408_v29 = vld [vmem:[%s3871_s1 + $0xc0] sm:$0xff]   ;;  %v2412_v41 = vld [vmem:[%s3871_s1 + $0x138] sm:$0xff]  }
   0xb   :  { %v2405_v26 = vld [vmem:[%s3871_s1 + $0x8] sm:$0xff]   ;;  %v2409_v30 = vld [vmem:[%s3871_s1] sm:$0xff]   ;;  %v2413_v42 = vld [vmem:[%s3871_s1 + $0x1f8] sm:$0xff]  }
   0xc   :  { %2128 = vmatpush3.bf16.msra.mxu0 %v2389_v10  ;;  %v2406_v27 = vld [vmem:[%s3871_s1 + $0x88] sm:$0xff]   ;;  %v2410_v31 = vld [vmem:[%s3871_s1 + $0x80] sm:$0xff]   ;;  %v2414_v43 = vld [vmem:[%s3871_s1 + $0x1b8] sm:$0xff]  }
   0xd   :  { %2192 = vmatpush3.bf16.msra.mxu1 %v2390_v11  ;;  %2129 = vmatprep.subr.bf16.mxu0 %v2391_v12  ;;  %v22_v32 = vld [vmem:[%s3872_s0] sm:$0xff]  ;;  %v371_v34 = vld [vmem:[%s3872_s0 + $0x8] sm:$0xff]  ;;  %v2415_v50 = vld [vmem:[%s3871_s1 + $0x170] sm:$0xff]  }
   0xe   :  { %2193 = vmatprep.subr.bf16.mxu1 %v2392_v13  ;;  %v23_v33 = vld [vmem:[%s3872_s0 + $0x20] sm:$0xff]  ;;  %v372_v37 = vld [vmem:[%s3872_s0 + $0x28] sm:$0xff]  ;;  %v2416_v52 = vld [vmem:[%s3871_s1 + $0x130] sm:$0xff]  }
   0xf   :  { %v1899_v35 = vcombine.low %v22_v32, %v23_v33  ;;  %v1900_v36 = vcombine.high %v22_v32, %v23_v33  ;;  %v1963_v38 = vcombine.low %v371_v34, %v372_v37  ;;  %v1964_v39 = vcombine.high %v371_v34, %v372_v37  ;;  %v24_v44 = vld [vmem:[%s3872_s0 + $0x40] sm:$0xff]  ;;  %v373_v47 = vld [vmem:[%s3872_s0 + $0x48] sm:$0xff]  ;;  %v2417_v54 = vld [vmem:[%s3871_s1 + $0x1f0] sm:$0xff]  }
  0x10   :  { %2130 = vmatpush3.bf16.msra.mxu0 %v2393_v14  ;;  %v25_v45 = vld [vmem:[%s3872_s0 + $0x60] sm:$0xff]  ;;  %v374_v48 = vld [vmem:[%s3872_s0 + $0x68] sm:$0xff]  ;;  %v2418_v55 = vld [vmem:[%s3871_s1 + $0x1b0] sm:$0xff]  }
  0x11   :  { %2194 = vmatpush3.bf16.msra.mxu1 %v2394_v15  ;;  %2131 = vmatprep.subr.bf16.mxu0 %v2395_v16  ;;  %v1902_v46 = vcombine.high %v24_v44, %v25_v45  ;;  %v1966_v49 = vcombine.high %v373_v47, %v374_v48  ;;  %v1901_v51 = vcombine.low %v24_v44, %v25_v45  ;;  %v26_v56 = vld [vmem:[%s3872_s0 + $0x80] sm:$0xff]  ;;  %v375_v58 = vld [vmem:[%s3872_s0 + $0x88] sm:$0xff]  ;;  %v2433_v32 = vld [vmem:[%s3871_s1 + $0x1d0] sm:$0xff]  }
  0x12   :  { %2195 = vmatprep.subr.bf16.mxu1 %v2396_v17  ;;  %284 = vmatprep.mubr.bf16.mxu0 %v1900_v36  ;;  %v1965_v53 = vcombine.low %v373_v47, %v374_v48  ;;  %v27_v57 = vld [vmem:[%s3872_s0 + $0xa0] sm:$0xff]  ;;  %v376_v59 = vld [vmem:[%s3872_s0 + $0xa8] sm:$0xff]  ;;  %v2434_v33 = vld [vmem:[%s3871_s1 + $0x190] sm:$0xff]  }
  0x13   :  { %628 = vmatprep.mubr.bf16.mxu1 %v1964_v39  ;;  %v1904_v60 = vcombine.high %v26_v56, %v27_v57  ;;  %v1968_v61 = vcombine.high %v375_v58, %v376_v59  ;;  %v2419_v62 = vld [vmem:[%s3871_s1 + $0x168] sm:$0xff]   ;;  %v1903_v2 = vcombine.low %v26_v56, %v27_v57  ;;  %v28_v3 = vld [vmem:[%s3872_s0 + $0xc0] sm:$0xff]  ;;  %v1967_v6 = vcombine.low %v375_v58, %v376_v59 }
  0x14   :  { %2132 = vmatpush3.bf16.msra.mxu0 %v2397_v18  ;;  %v2420_v63 = vld [vmem:[%s3871_s1 + $0x128] sm:$0xff]   ;;  %v29_v4 = vld [vmem:[%s3872_s0 + $0xe0] sm:$0xff]  ;;  %v2427_v18 = vld [vmem:[%s3871_s1 + $0x158] sm:$0xff]  }
  0x15   :  { %2196 = vmatpush3.bf16.msra.mxu1 %v2398_v19  ;;  %2133 = vmatprep.subr.bf16.mxu0 %v2399_v20  ;;  %v2421_v0 = vld [vmem:[%s3871_s1 + $0x1e8] sm:$0xff]   ;;  %v1906_v7 = vcombine.high %v28_v3, %v29_v4  ;;  %v2423_v10 = vld [vmem:[%s3871_s1 + $0x160] sm:$0xff]   ;;  %v1905_v19 = vcombine.low %v28_v3, %v29_v4  ;;  %v2428_v20 = vld [vmem:[%s3871_s1 + $0x118] sm:$0xff]  }
  0x16   :  { %2197 = vmatprep.subr.bf16.mxu1 %v2400_v21  ;;  %v2422_v1 = vld [vmem:[%s3871_s1 + $0x1a8] sm:$0xff]   ;;  %v2424_v11 = vld [vmem:[%s3871_s1 + $0x120] sm:$0xff]  }
  0x17   :  { %v377_v5 = vld [vmem:[%s3872_s0 + $0xc8] sm:$0xff]  ;;  %v2425_v12 = vld [vmem:[%s3871_s1 + $0x1e0] sm:$0xff]  }
  0x18   :  { %2134 = vmatpush3.bf16.msra.mxu0 %v2401_v22  ;;  %v378_v8 = vld [vmem:[%s3872_s0 + $0xe8] sm:$0xff]  ;;  %v2426_v13 = vld [vmem:[%s3871_s1 + $0x1a0] sm:$0xff]  }
  0x19   :  { %2198 = vmatpush3.bf16.msra.mxu1 %v2402_v23  ;;  %2135 = vmatprep.subr.bf16.mxu0 %v2403_v24  ;;  %v1970_v9 = vcombine.high %v377_v5, %v378_v8  ;;  %v30_v14 = vld [vmem:[%s3872_s0 + $0x100] sm:$0xff]  ;;  %v379_v16 = vld [vmem:[%s3872_s0 + $0x108] sm:$0xff]  ;;  %v1969_v21 = vcombine.low %v377_v5, %v378_v8  ;;  %v2429_v23 = vld [vmem:[%s3871_s1 + $0x1d8] sm:$0xff]  }
  0x1a   :  { %2199 = vmatprep.subr.bf16.mxu1 %v2404_v25  ;;  %v31_v15 = vld [vmem:[%s3872_s0 + $0x120] sm:$0xff]  ;;  %v380_v17 = vld [vmem:[%s3872_s0 + $0x128] sm:$0xff]  ;;  %v2430_v25 = vld [vmem:[%s3871_s1 + $0x198] sm:$0xff]  }
  0x1b   :  { %v1908_v22 = vcombine.high %v30_v14, %v31_v15  ;;  %v1972_v24 = vcombine.high %v379_v16, %v380_v17  ;;  %v1907_v34 = vcombine.low %v30_v14, %v31_v15  ;;  %v2436_v39 = vld [vmem:[%s3871_s1 + $0x108] sm:$0xff]   ;;  %v2440_v48 = vld [vmem:[%s3871_s1 + $0x100] sm:$0xff]   ;;  %v1061_v8 = vld [vmem:[%s3872_s0 + $0x58] sm:$0xff] }
  0x1c   :  { %2136 = vmatpush3.bf16.msra.mxu0 %v2405_v26  ;;  %v32_v26 = vld [vmem:[%s3872_s0 + $0x140] sm:$0xff]  ;;  %v383_v44 = vld [vmem:[%s3872_s0 + $0x188] sm:$0xff]  ;;  %v719_v14 = vld [vmem:[%s3872_s0 + $0x90] sm:$0xff] }
  0x1d   :  { %2200 = vmatpush3.bf16.msra.mxu1 %v2406_v27  ;;  %2137 = vmatprep.subr.bf16.mxu0 %v2407_v28  ;;  %v33_v27 = vld [vmem:[%s3872_s0 + $0x160] sm:$0xff]  ;;  %v2431_v28 = vld [vmem:[%s3871_s1 + $0x150] sm:$0xff]   ;;  %v384_v45 = vld [vmem:[%s3872_s0 + $0x1a8] sm:$0xff] }
  0x1e   :  { %2201 = vmatprep.subr.bf16.mxu1 %v2408_v29  ;;  %v381_v29 = vld [vmem:[%s3872_s0 + $0x148] sm:$0xff]  ;;  %v1910_v36 = vcombine.high %v32_v26, %v33_v27  ;;  %v1909_v47 = vcombine.low %v32_v26, %v33_v27  ;;  %v1975_v59 = vcombine.low %v383_v44, %v384_v45  ;;  %v720_v15 = vld [vmem:[%s3872_s0 + $0xb0] sm:$0xff] }
  0x1f   :  { %v385_v56 = vld [vmem:[%s3872_s0 + $0x1c8] sm:$0xff]  ;;  %v2031_v26 = vcombine.low %v719_v14, %v720_v15 }
  0x20   :  { %2138 = vmatpush3.bf16.msra.mxu0 %v2409_v30  ;;  %v382_v30 = vld [vmem:[%s3872_s0 + $0x168] sm:$0xff] }
  0x21   :  { %2202 = vmatpush3.bf16.msra.mxu1 %v2410_v31  ;;  %2251 = vmatprep.subr.bf16.mxu0 %v2411_v40  ;;  %v2432_v31 = vld [vmem:[%s3871_s1 + $0x110] sm:$0xff]   ;;  %v1974_v37 = vcombine.high %v381_v29, %v382_v30  ;;  %v2437_v40 = vld [vmem:[%s3871_s1 + $0x1c8] sm:$0xff]  }
  0x22   :  { %2315 = vmatprep.subr.bf16.mxu1 %v2413_v42  ;;  %v35_v42 = vld [vmem:[%s3872_s0 + $0x1a0] sm:$0xff]  ;;  %v386_v57 = vld [vmem:[%s3872_s0 + $0x1e8] sm:$0xff] }
  0x23   :  { %285 = vmatmul.mubr.bf16.vlgmr.msra.gmra.mxu0 %v1899_v35  ;;  %v1971_v35 = vcombine.low %v379_v16, %v380_v17  ;;  %v1977_v3 = vcombine.low %v385_v56, %v386_v57  ;;  %v1063_v16 = vld [vmem:[%s3872_s0 + $0x98] sm:$0xff] }
  0x24   :  { %629 = vmatmul.mubr.bf16.vlgmr.msra.gmra.mxu1 %v1963_v38  ;;  %2252 = vmatpush3.bf16.msra.mxu0 %v2412_v41  ;;  %v2435_v38 = vld [vmem:[%s3871_s1 + $0x148] sm:$0xff]   ;;  %v34_v41 = vld [vmem:[%s3872_s0 + $0x180] sm:$0xff]  ;;  %v1064_v17 = vld [vmem:[%s3872_s0 + $0xb8] sm:$0xff] }
  0x25   :  { %2316 = vmatpush3.bf16.msra.mxu1 %v2414_v43  ;;  %292 = vmatprep.mubr.bf16.mxu0 %v1902_v46  ;;  %v2438_v43 = vld [vmem:[%s3871_s1 + $0x188] sm:$0xff]   ;;  %v2439_v46 = vld [vmem:[%s3871_s1 + $0x140] sm:$0xff]   ;;  %v1911_v58 = vcombine.low %v34_v41, %v35_v42  ;;  %v2095_v27 = vcombine.low %v1063_v16, %v1064_v17 }
  0x26   :  { %636 = vmatprep.mubr.bf16.mxu1 %v1966_v49  ;;  %2253 = vmatprep.subr.bf16.mxu0 %v2415_v50  ;;  %v1973_v49 = vcombine.low %v381_v29, %v382_v30  ;;  %v1912_v50 = vcombine.high %v34_v41, %v35_v42  ;;  %v723_v30 = vld [vmem:[%s3872_s0 + $0x110] sm:$0xff]  ;;  %v1070_v41 = vld [vmem:[%s3872_s0 + $0x178] sm:$0xff] }
  0x27   :  { %2317 = vmatprep.subr.bf16.mxu1 %v2417_v54  ;;  %v36_v54 = vld [vmem:[%s3872_s0 + $0x1c0] sm:$0xff] }
  0x28   :  { %2254 = vmatpush3.bf16.msra.mxu0 %v2416_v52  ;;  %v1976_v52 = vcombine.high %v383_v44, %v384_v45 }
  0x29   :  { %2318 = vmatpush3.bf16.msra.mxu1 %v2418_v55  ;;  %2255 = vmatprep.subr.bf16.mxu0 %v2419_v62  ;;  %v37_v55 = vld [vmem:[%s3872_s0 + $0x1e0] sm:$0xff]  ;;  %v715_v62 = vld [vmem:[%s3872_s0 + $0x10] sm:$0xff] }
  0x2a   :  { %2319 = vmatprep.subr.bf16.mxu1 %v2421_v0  ;;  %v1059_v0 = vld [vmem:[%s3872_s0 + $0x18] sm:$0xff] }
  0x2b   :  { %293 = vmatmul.mubr.bf16.gmra.mxu0 %v1901_v51  ;;  %v2441_v51 = vld [vmem:[%s3871_s1 + $0x1c0] sm:$0xff]  }
  0x2c   :  { %637 = vmatmul.mubr.bf16.gmra.mxu1 %v1965_v53  ;;  %300 = vmatprep.mubr.bf16.mxu0 %v1904_v60  ;;  %v2442_v53 = vld [vmem:[%s3871_s1 + $0x180] sm:$0xff]   ;;  %v1914_v60 = vcombine.high %v36_v54, %v37_v55 }
  0x2d   :  { %644 = vmatprep.mubr.bf16.mxu1 %v1968_v61  ;;  %2256 = vmatpush3.bf16.msra.mxu0 %v2420_v63  ;;  %v1978_v61 = vcombine.high %v385_v56, %v386_v57  ;;  %v716_v63 = vld [vmem:[%s3872_s0 + $0x30] sm:$0xff]  ;;  %v1073_v56 = vld [vmem:[%s3872_s0 + $0x1d8] sm:$0xff] }
  0x2e   :  { %2320 = vmatpush3.bf16.msra.mxu1 %v2422_v1  ;;  %2257 = vmatprep.subr.bf16.mxu0 %v2423_v10  ;;  %v1060_v1 = vld [vmem:[%s3872_s0 + $0x38] sm:$0xff]  ;;  %v2028_v4 = vcombine.high %v715_v62, %v716_v63  ;;  %v2027_v10 = vcombine.low %v715_v62, %v716_v63 }
  0x2f   :  { %2321 = vmatprep.subr.bf16.mxu1 %v2425_v12  ;;  %v2092_v5 = vcombine.high %v1059_v0, %v1060_v1  ;;  %v1074_v57 = vld [vmem:[%s3872_s0 + $0x1f8] sm:$0xff] }
  0x30   :  { %v2105_v63 = vcombine.low %v1073_v56, %v1074_v57 }
  0x31   :  { %2258 = vmatpush3.bf16.msra.mxu0 %v2424_v11  ;;  %v2091_v11 = vcombine.low %v1059_v0, %v1060_v1 }
  0x32   :  { %2322 = vmatpush3.bf16.msra.mxu1 %v2426_v13  ;;  %2259 = vmatprep.subr.bf16.mxu0 %v2427_v18 }
  0x33   :  { %301 = vmatmul.mubr.bf16.gmra.mxu0 %v1903_v2  ;;  %2323 = vmatprep.subr.bf16.mxu1 %v2429_v23  ;;  %v1913_v2 = vcombine.low %v36_v54, %v37_v55  ;;  %v722_v23 = vld [vmem:[%s3872_s0 + $0xf0] sm:$0xff] }
  0x34   :  { %645 = vmatmul.mubr.bf16.gmra.mxu1 %v1967_v6  ;;  %308 = vmatprep.mubr.bf16.mxu0 %v1906_v7  ;;  %v717_v6 = vld [vmem:[%s3872_s0 + $0x50] sm:$0xff] }
  0x35   :  { %652 = vmatprep.mubr.bf16.mxu1 %v1970_v9  ;;  %2260 = vmatpush3.bf16.msra.mxu0 %v2428_v20  ;;  %v718_v7 = vld [vmem:[%s3872_s0 + $0x70] sm:$0xff]  ;;  %v1062_v9 = vld [vmem:[%s3872_s0 + $0x78] sm:$0xff]  ;;  %v2032_v20 = vcombine.high %v719_v14, %v720_v15 }
  0x36   :  { %2324 = vmatpush3.bf16.msra.mxu1 %v2430_v25  ;;  %2261 = vmatprep.subr.bf16.mxu0 %v2431_v28  ;;  %v2030_v12 = vcombine.high %v717_v6, %v718_v7  ;;  %v2094_v13 = vcombine.high %v1061_v8, %v1062_v9  ;;  %v2029_v18 = vcombine.low %v717_v6, %v718_v7  ;;  %v1066_v25 = vld [vmem:[%s3872_s0 + $0xf8] sm:$0xff]  ;;  %v729_v54 = vld [vmem:[%s3872_s0 + $0x1d0] sm:$0xff] }
  0x37   :  { %2325 = vmatprep.subr.bf16.mxu1 %v2433_v32  ;;  %v1067_v32 = vld [vmem:[%s3872_s0 + $0x118] sm:$0xff]  ;;  %v730_v55 = vld [vmem:[%s3872_s0 + $0x1f0] sm:$0xff] }
  0x38   :  { %v2041_v62 = vcombine.low %v729_v54, %v730_v55 }
  0x39   :  { %2262 = vmatpush3.bf16.msra.mxu0 %v2432_v31  ;;  %v724_v31 = vld [vmem:[%s3872_s0 + $0x130] sm:$0xff] }
  0x3a   :  { %2326 = vmatpush3.bf16.msra.mxu1 %v2434_v33  ;;  %2263 = vmatprep.subr.bf16.mxu0 %v2435_v38  ;;  %v1068_v33 = vld [vmem:[%s3872_s0 + $0x138] sm:$0xff]  ;;  %v725_v38 = vld [vmem:[%s3872_s0 + $0x150] sm:$0xff]  ;;  %v2035_v42 = vcombine.low %v723_v30, %v724_v31 }
  0x3b   :  { %309 = vmatmul.mubr.bf16.gmra.mxu0 %v1905_v19  ;;  %2327 = vmatprep.subr.bf16.mxu1 %v2437_v40  ;;  %v2093_v19 = vcombine.low %v1061_v8, %v1062_v9  ;;  %v1069_v40 = vld [vmem:[%s3872_s0 + $0x158] sm:$0xff] }
  0x3c   :  { %653 = vmatmul.mubr.bf16.gmra.mxu1 %v1969_v21  ;;  %316 = vmatprep.mubr.bf16.mxu0 %v1908_v22  ;;  %v2096_v21 = vcombine.high %v1063_v16, %v1064_v17  ;;  %v721_v22 = vld [vmem:[%s3872_s0 + $0xd0] sm:$0xff]  ;;  %v2102_v45 = vcombine.high %v1069_v40, %v1070_v41 }
  0x3d   :  { %660 = vmatprep.mubr.bf16.mxu1 %v1972_v24  ;;  %2264 = vmatpush3.bf16.msra.mxu0 %v2436_v39  ;;  %v1065_v24 = vld [vmem:[%s3872_s0 + $0xd8] sm:$0xff]  ;;  %v2034_v28 = vcombine.high %v721_v22, %v722_v23  ;;  %v726_v39 = vld [vmem:[%s3872_s0 + $0x170] sm:$0xff] }
  0x3e   :  { %2328 = vmatpush3.bf16.msra.mxu1 %v2438_v43  ;;  %2265 = vmatprep.subr.bf16.mxu0 %v2439_v46  ;;  %v2098_v29 = vcombine.high %v1065_v24, %v1066_v25  ;;  %v2099_v43 = vcombine.low %v1067_v32, %v1068_v33  ;;  %v2038_v44 = vcombine.high %v725_v38, %v726_v39  ;;  %v727_v46 = vld [vmem:[%s3872_s0 + $0x190] sm:$0xff] }
  0x3f   :  { %2329 = vmatprep.subr.bf16.mxu1 %v2441_v51  ;;  %v2101_v51 = vcombine.low %v1069_v40, %v1070_v41 }
  0x41   :  { %2266 = vmatpush3.bf16.msra.mxu0 %v2440_v48  ;;  %v1071_v48 = vld [vmem:[%s3872_s0 + $0x198] sm:$0xff] }
  0x42   :  { %2330 = vmatpush3.bf16.msra.mxu1 %v2442_v53 }
  0x43   :  { %317 = vmatmul.mubr.bf16.gmra.mxu0 %v1907_v34  ;;  %v2033_v34 = vcombine.low %v721_v22, %v722_v23 }
  0x44   :  { %661 = vmatmul.mubr.bf16.gmra.mxu1 %v1971_v35  ;;  %324 = vmatprep.mubr.bf16.mxu0 %v1910_v36  ;;  %v2097_v35 = vcombine.low %v1065_v24, %v1066_v25  ;;  %v2036_v36 = vcombine.high %v723_v30, %v724_v31 }
  0x45   :  { %668 = vmatprep.mubr.bf16.mxu1 %v1974_v37  ;;  %v2100_v37 = vcombine.high %v1067_v32, %v1068_v33 }
  0x4b   :  { %325 = vmatmul.mubr.bf16.gmra.mxu0 %v1909_v47  ;;  %v728_v47 = vld [vmem:[%s3872_s0 + $0x1b0] sm:$0xff] }
  0x4c   :  { %669 = vmatmul.mubr.bf16.gmra.mxu1 %v1973_v49  ;;  %332 = vmatprep.mubr.bf16.mxu0 %v1912_v50  ;;  %v1072_v49 = vld [vmem:[%s3872_s0 + $0x1b8] sm:$0xff]  ;;  %v2037_v50 = vcombine.low %v725_v38, %v726_v39 }
  0x4d   :  { %676 = vmatprep.mubr.bf16.mxu1 %v1976_v52  ;;  %v2040_v52 = vcombine.high %v727_v46, %v728_v47  ;;  %v2104_v53 = vcombine.high %v1071_v48, %v1072_v49 }
  0x53   :  { %333 = vmatmul.mubr.bf16.gmra.mxu0 %v1911_v58  ;;  %v2039_v58 = vcombine.low %v727_v46, %v728_v47 }
  0x54   :  { %677 = vmatmul.mubr.bf16.gmra.mxu1 %v1975_v59  ;;  %340 = vmatprep.mubr.bf16.mxu0 %v1914_v60  ;;  %v2103_v59 = vcombine.low %v1071_v48, %v1072_v49  ;;  %v2042_v60 = vcombine.high %v729_v54, %v730_v55 }
  0x55   :  { %684 = vmatprep.mubr.bf16.mxu1 %v1978_v61  ;;  %v2106_v61 = vcombine.high %v1073_v56, %v1074_v57 }
  0x5b   :  { %341 = vmatmul.mubr.bf16.gmra.mxu0 %v1913_v2 }
  0x5c   :  { %685 = vmatmul.mubr.bf16.gmra.mxu1 %v1977_v3  ;;  %972 = vmatprep.mubr.bf16.mxu0 %v2028_v4 }
  0x5d   :  { %1316 = vmatprep.mubr.bf16.mxu1 %v2092_v5 }
  0x63   :  { %973 = vmatmul.mubr.bf16.vlgmr.msra.gmra.mxu0 %v2027_v10 }
  0x64   :  { %1317 = vmatmul.mubr.bf16.vlgmr.msra.gmra.mxu1 %v2091_v11  ;;  %980 = vmatprep.mubr.bf16.mxu0 %v2030_v12 }
  0x65   :  { %1324 = vmatprep.mubr.bf16.mxu1 %v2094_v13 }
  0x6b   :  { %981 = vmatmul.mubr.bf16.gmra.mxu0 %v2029_v18 }
  0x6c   :  { %1325 = vmatmul.mubr.bf16.gmra.mxu1 %v2093_v19  ;;  %988 = vmatprep.mubr.bf16.mxu0 %v2032_v20 }
  0x6d   :  { %1332 = vmatprep.mubr.bf16.mxu1 %v2096_v21 }
  0x73   :  { %989 = vmatmul.mubr.bf16.gmra.mxu0 %v2031_v26 }
  0x74   :  { %1333 = vmatmul.mubr.bf16.gmra.mxu1 %v2095_v27  ;;  %996 = vmatprep.mubr.bf16.mxu0 %v2034_v28 }
  0x75   :  { %1340 = vmatprep.mubr.bf16.mxu1 %v2098_v29 }
  0x7b   :  { %997 = vmatmul.mubr.bf16.gmra.mxu0 %v2033_v34 }
  0x7c   :  { %1341 = vmatmul.mubr.bf16.gmra.mxu1 %v2097_v35  ;;  %1004 = vmatprep.mubr.bf16.mxu0 %v2036_v36 }
  0x7d   :  { %1348 = vmatprep.mubr.bf16.mxu1 %v2100_v37 }
  0x83   :  { %1005 = vmatmul.mubr.bf16.gmra.mxu0 %v2035_v42 }
  0x84   :  { %1349 = vmatmul.mubr.bf16.gmra.mxu1 %v2099_v43  ;;  %1012 = vmatprep.mubr.bf16.mxu0 %v2038_v44 }
  0x85   :  { %1356 = vmatprep.mubr.bf16.mxu1 %v2102_v45 }
  0x8b   :  { %1013 = vmatmul.mubr.bf16.gmra.mxu0 %v2037_v50 }
  0x8c   :  { %1357 = vmatmul.mubr.bf16.gmra.mxu1 %v2101_v51  ;;  %1020 = vmatprep.mubr.bf16.mxu0 %v2040_v52 }
  0x8d   :  { %1364 = vmatprep.mubr.bf16.mxu1 %v2104_v53 }
  0x93   :  { %1021 = vmatmul.mubr.bf16.gmra.mxu0 %v2039_v58 }
  0x94   :  { %1365 = vmatmul.mubr.bf16.gmra.mxu1 %v2103_v59  ;;  %1028 = vmatprep.mubr.bf16.mxu0 %v2042_v60 }
  0x95   :  { %1372 = vmatprep.mubr.bf16.mxu1 %v2106_v61 }
  0x9b   :  { %1029 = vmatmul.mubr.bf16.gmra.mxu0 %v2041_v62 }
  0x9c   :  { %1373 = vmatmul.mubr.bf16.gmra.mxu1 %v2105_v63 }
  0xe3   :  { %v2139_v0 = vpop.f32.mrf.mxu0 }
  0xe4   :  { %v2203_v1 = vpop.f32.mrf.mxu1 }
  0xe5   :  { %v2140_v2 = vpop.f32.mrf.mxu0 }
  0xe6   :  { %v2859_v3 = vadd.f32 %v2140_v2, %v2139_v0  ;;  %v2204_v4 = vpop.f32.mrf.mxu1 }
  0xe7   :  { %v2861_v5 = vadd.f32 %v2204_v4, %v2203_v1  ;;  %v2142_v6 = vpop.f32.mrf.mxu0 }
  0xe8   :  { %v2206_v7 = vpop.f32.mrf.mxu1 }
  0xe9   :  { %v2143_v8 = vpop.f32.mrf.mxu0 }
  0xea   :  { %v2863_v9 = vadd.f32 %v2143_v8, %v2142_v6  ;;  %v2207_v10 = vpop.f32.mrf.mxu1 }
  0xeb   :  { %v2865_v11 = vadd.f32 %v2207_v10, %v2206_v7  ;;  %v2145_v12 = vpop.f32.mrf.mxu0 }
  0xec   :  { %v2209_v13 = vpop.f32.mrf.mxu1 }
  0xed   :  { %v2146_v14 = vpop.f32.mrf.mxu0 }
  0xee   :  { %v2867_v15 = vadd.f32 %v2146_v14, %v2145_v12  ;;  %v2210_v16 = vpop.f32.mrf.mxu1 }
  0xef   :  { %v2869_v17 = vadd.f32 %v2210_v16, %v2209_v13  ;;  %v2148_v18 = vpop.f32.mrf.mxu0 }
  0xf0   :  { %v2212_v19 = vpop.f32.mrf.mxu1 }
  0xf1   :  { %v2149_v20 = vpop.f32.mrf.mxu0 }
  0xf2   :  { %v2871_v21 = vadd.f32 %v2149_v20, %v2148_v18  ;;  %v2213_v22 = vpop.f32.mrf.mxu1 }
  0xf3   :  { %v2873_v23 = vadd.f32 %v2213_v22, %v2212_v19  ;;  %v2151_v24 = vpop.f32.mrf.mxu0 }
  0xf4   :  { %v2215_v25 = vpop.f32.mrf.mxu1 }
  0xf5   :  { %v2152_v26 = vpop.f32.mrf.mxu0 }
  0xf6   :  { %v2875_v27 = vadd.f32 %v2152_v26, %v2151_v24  ;;  %v2216_v28 = vpop.f32.mrf.mxu1 }
  0xf7   :  { %v2877_v29 = vadd.f32 %v2216_v28, %v2215_v25  ;;  %v2154_v30 = vpop.f32.mrf.mxu0 }
  0xf8   :  { %v2218_v31 = vpop.f32.mrf.mxu1 }
  0xf9   :  { %v2155_v32 = vpop.f32.mrf.mxu0 }
  0xfa   :  { %v2879_v33 = vadd.f32 %v2155_v32, %v2154_v30  ;;  %v2219_v34 = vpop.f32.mrf.mxu1 }
  0xfb   :  { %v2881_v35 = vadd.f32 %v2219_v34, %v2218_v31  ;;  %v2157_v36 = vpop.f32.mrf.mxu0 }
  0xfc   :  { %v2221_v37 = vpop.f32.mrf.mxu1 }
  0xfd   :  { %v2158_v38 = vpop.f32.mrf.mxu0 }
  0xfe   :  { %v2883_v39 = vadd.f32 %v2158_v38, %v2157_v36  ;;  %v2222_v40 = vpop.f32.mrf.mxu1 }
  0xff   :  { %v2885_v41 = vadd.f32 %v2222_v40, %v2221_v37  ;;  %v2160_v42 = vpop.f32.mrf.mxu0 }
 0x100   :  { %v2224_v43 = vpop.f32.mrf.mxu1 }
 0x101   :  { %v2161_v44 = vpop.f32.mrf.mxu0 }
 0x102   :  { %v2887_v45 = vadd.f32 %v2161_v44, %v2160_v42  ;;  %v2225_v46 = vpop.f32.mrf.mxu1 }
 0x103   :  { %v2889_v47 = vadd.f32 %v2225_v46, %v2224_v43  ;;  %v2163_v48 = vpop.f32.mrf.mxu0 }
 0x104   :  { %v2227_v49 = vpop.f32.mrf.mxu1 }
 0x105   :  { %v2164_v50 = vpop.f32.mrf.mxu0 }
 0x106   :  { %v2891_v51 = vadd.f32 %v2164_v50, %v2163_v48  ;;  %v2228_v52 = vpop.f32.mrf.mxu1 }
 0x107   :  { %v2893_v53 = vadd.f32 %v2228_v52, %v2227_v49  ;;  %v2166_v54 = vpop.f32.mrf.mxu0 }
 0x108   :  { %v2230_v55 = vpop.f32.mrf.mxu1 }
 0x109   :  { %v2167_v56 = vpop.f32.mrf.mxu0 }
 0x10a   :  { %v2895_v57 = vadd.f32 %v2167_v56, %v2166_v54  ;;  %v2231_v58 = vpop.f32.mrf.mxu1 }
 0x10b   :  { %v2897_v59 = vadd.f32 %v2231_v58, %v2230_v55  ;;  %v2169_v60 = vpop.f32.mrf.mxu0  ;;  %v2952_v58 = vld [vmem:[%s3873_s2] ss:$0 sm:$0xff] }
 0x10c   :  { %v2233_v61 = vpop.f32.mrf.mxu1 }
 0x10d   :  { %v2170_v62 = vpop.f32.mrf.mxu0 }
 0x10e   :  { %v2899_v63 = vadd.f32 %v2170_v62, %v2169_v60  ;;  %v2234_v0 = vpop.f32.mrf.mxu1 }
 0x10f   :  { %v2901_v1 = vadd.f32 %v2234_v0, %v2233_v61  ;;  %v2172_v2 = vpop.f32.mrf.mxu0  ;;  %v2958_v61 = vadd.f32 %v2863_v9, %v2952_v58  ;;  %v2964_v0 = vadd.f32 %v2865_v11, %v2952_v58  ;;  %v2980_v9 = vadd.f32 %v2861_v5, %v2952_v58 }
 0x110   :  { %v2236_v4 = vpop.f32.mrf.mxu1  ;;  %v2984_v11 = vadd.f32 %v2869_v17, %v2952_v58  ;;  %v3000_v5 = vadd.f32 %v2873_v23, %v2952_v58 }
 0x111   :  { %v2173_v6 = vpop.f32.mrf.mxu0  ;;  %3937 = vst [vmem:[#allocation2_spill] sm:$0xff] %v2964_v0  ;;  %3938 = vst [vmem:[#allocation3_spill] sm:$0xff] %v2980_v9 }
 0x112   :  { %v2903_v7 = vadd.f32 %v2173_v6, %v2172_v2  ;;  %v2237_v8 = vpop.f32.mrf.mxu1  ;;  %v2974_v6 = vadd.f32 %v2867_v15, %v2952_v58  ;;  %3939 = vst [vmem:[#allocation4_spill] sm:$0xff] %v2984_v11  ;;  %3940 = vst [vmem:[#allocation5_spill] sm:$0xff] %v3000_v5 }
 0x113   :  { %v2905_v10 = vadd.f32 %v2237_v8, %v2236_v4  ;;  %v2175_v12 = vpop.f32.mrf.mxu0  ;;  %v2970_v4 = vadd.f32 %v2859_v3, %v2952_v58 }
 0x114   :  { %v2239_v13 = vpop.f32.mrf.mxu1 }
 0x115   :  { %v2176_v14 = vpop.f32.mrf.mxu0  ;;  %v349_v3 = vadd.f32 %v2958_v61, %v2970_v4 }
 0x116   :  { %v2907_v16 = vadd.f32 %v2176_v14, %v2175_v12  ;;  %v2240_v18 = vpop.f32.mrf.mxu1  ;;  %v693_v14 = vadd.f32 %v2964_v0, %v2980_v9  ;;  %v3042_v0 = vadd.f32 %v2885_v41, %v2952_v58  ;;  %v3056_v9 = vadd.f32 %v2889_v47, %v2952_v58 }
 0x117   :  { %v2909_v19 = vadd.f32 %v2240_v18, %v2239_v13  ;;  %v2178_v20 = vpop.f32.mrf.mxu0  ;;  %v2992_v13 = vadd.f32 %v2871_v21, %v2952_v58  ;;  %v350_v18 = vadd.f32 %v349_v3, %v2974_v6  ;;  %v3028_v3 = vadd.f32 %v2881_v35, %v2952_v58 }
 0x118   :  { %v2242_v22 = vpop.f32.mrf.mxu1  ;;  %v694_v21 = vadd.f32 %v693_v14, %v2984_v11  ;;  %v3035_v11 = vadd.f32 %v2883_v39, %v2952_v58  ;;  %3946 = vst [vmem:[#allocation11_spill] sm:$0xff] %v3042_v0  ;;  %3948 = vst [vmem:[#allocation13_spill] sm:$0xff] %v3056_v9 }
 0x119   :  { %v2179_v24 = vpop.f32.mrf.mxu0  ;;  %v351_v23 = vadd.f32 %v350_v18, %v2992_v13  ;;  %3944 = vst [vmem:[#allocation9_spill] sm:$0xff] %v3028_v3 }
 0x11a   :  { %v2911_v25 = vadd.f32 %v2179_v24, %v2178_v20  ;;  %v2243_v26 = vpop.f32.mrf.mxu1  ;;  %v3007_v20 = vadd.f32 %v2875_v27, %v2952_v58  ;;  %v3014_v24 = vadd.f32 %v2877_v29, %v2952_v58  ;;  %v695_v27 = vadd.f32 %v694_v21, %v3000_v5  ;;  %3945 = vst [vmem:[#allocation10_spill] sm:$0xff] %v3035_v11 }
 0x11b   :  { %v2913_v28 = vadd.f32 %v2243_v26, %v2242_v22  ;;  %v2181_v30 = vpop.f32.mrf.mxu0  ;;  %v3049_v5 = vadd.f32 %v2887_v45, %v2952_v58 }
 0x11c   :  { %v2915_v31 = vpop.f32.mrf.mxu1  ;;  %3941 = vst [vmem:[#allocation6_spill] sm:$0xff] %v3007_v20  ;;  %3942 = vst [vmem:[#allocation7_spill] sm:$0xff] %v3014_v24  ;;  %v352_v29 = vadd.f32 %v351_v23, %v3007_v20 }
 0x11d   :  { %v2182_v32 = vpop.f32.mrf.mxu0  ;;  %3947 = vst [vmem:[#allocation12_spill] sm:$0xff] %v3049_v5 }
 0x11e   :  { %v2917_v34 = vadd.f32 %v2182_v32, %v2181_v30  ;;  %v2919_v36 = vpop.f32.mrf.mxu1  ;;  %v3021_v30 = vadd.f32 %v2879_v33, %v2952_v58  ;;  %v696_v33 = vadd.f32 %v695_v27, %v3014_v24  ;;  %v3063_v24 = vadd.f32 %v2891_v51, %v2952_v58 }
 0x11f   :  { %v2921_v37 = vpop.f32.mrf.mxu0 }
 0x120   :  { %v2923_v38 = vpop.f32.mrf.mxu1  ;;  %3943 = vst [vmem:[#allocation8_spill] sm:$0xff] %v3021_v30  ;;  %v353_v35 = vadd.f32 %v352_v29, %v3021_v30  ;;  %v697_v39 = vadd.f32 %v696_v33, %v3028_v3  ;;  %3949 = vst [vmem:[#allocation14_spill] sm:$0xff] %v3063_v24  ;;  %v3070_v30 = vadd.f32 %v2893_v53, %v2952_v58 }
 0x121   :  { %v2925_v40 = vpop.f32.mrf.mxu0  ;;  %v3077_v3 = vadd.f32 %v2895_v57, %v2952_v58 }
 0x122   :  { %v2927_v42 = vpop.f32.mrf.mxu1  ;;  %v354_v41 = vadd.f32 %v353_v35, %v3035_v11  ;;  %v698_v45 = vadd.f32 %v697_v39, %v3042_v0  ;;  %3950 = vst [vmem:[#allocation15_spill] sm:$0xff] %v3070_v30  ;;  %v3084_v11 = vadd.f32 %v2897_v59, %v2952_v58  ;;  %v3091_v0 = vadd.f32 %v2899_v63, %v2952_v58 }
 0x123   :  { %v2929_v43 = vpop.f32.mrf.mxu0 }
 0x124   :  { %v2931_v44 = vpop.f32.mrf.mxu1  ;;  %v355_v47 = vadd.f32 %v354_v41, %v3049_v5  ;;  %v699_v51 = vadd.f32 %v698_v45, %v3056_v9  ;;  %v3098_v5 = vadd.f32 %v2901_v1, %v2952_v58  ;;  %v3103_v9 = vadd.f32 %v2903_v7, %v2952_v58 }
 0x125   :  { %v2933_v46 = vpop.f32.mrf.mxu0  ;;  %v3121_v7 = vadd.f32 %v2907_v16, %v2952_v58 }
 0x126   :  { %v2935_v48 = vpop.f32.mrf.mxu1  ;;  %v356_v53 = vadd.f32 %v355_v47, %v3063_v24  ;;  %v700_v57 = vadd.f32 %v699_v51, %v3070_v30  ;;  %v3112_v51 = vadd.f32 %v2905_v10, %v2952_v58 }
 0x127   :  { %v2937_v49 = vpop.f32.mrf.mxu0 }
 0x128   :  { %v2939_v50 = vpop.f32.mrf.mxu1  ;;  %v357_v59 = vadd.f32 %v356_v53, %v3077_v3  ;;  %v701_v24 = vadd.f32 %v700_v57, %v3084_v11 }
 0x129   :  { %v2941_v52 = vpop.f32.mrf.mxu0 }
 0x12a   :  { %v2943_v54 = vpop.f32.mrf.mxu1  ;;  %v2272_v47 = vadd.f32 %v2941_v52, %v2937_v49  ;;  %v358_v53 = vadd.f32 %v357_v59, %v3091_v0  ;;  %v2269_v49 = vadd.f32 %v2933_v46, %v2929_v43  ;;  %v702_v10 = vadd.f32 %v701_v24, %v3098_v5 }
 0x12b   :  { %v2945_v55 = vpop.f32.mrf.mxu0  ;;  %v2336_v1 = vadd.f32 %v2943_v54, %v2939_v50  ;;  %v3132_v50 = vadd.f32 %v2909_v19, %v2952_v58  ;;  %v2333_v54 = vadd.f32 %v2935_v48, %v2931_v44  ;;  %v3141_v46 = vadd.f32 %v2911_v25, %v2952_v58 }
 0x12c   :  { %v2947_v56 = vpop.f32.mrf.mxu1  ;;  %v359_v43 = vadd.f32 %v358_v53, %v3103_v9  ;;  %v703_v24 = vadd.f32 %v702_v10, %v3112_v51  ;;  %v3151_v44 = vadd.f32 %v2913_v28, %v2952_v58 }
 0x12d   :  { %v2954_v60 = vpop.f32.mrf.mxu0  ;;  %v3154_v48 = vadd.f32 %v2336_v1, %v2952_v58  ;;  %v3169_v1 = vadd.f32 %v2333_v54, %v2952_v58 }
 0x12e   :  { %v2960_v62 = vpop.f32.mrf.mxu1  ;;  %v2275_v52 = vadd.f32 %v2954_v60, %v2945_v55  ;;  %v3144_v55 = vadd.f32 %v2272_v47, %v2952_v58  ;;  %3952 = vst [vmem:[#allocation17_spill] sm:$0xff] %v3151_v44  ;;  %v3160_v47 = vadd.f32 %v2269_v49, %v2952_v58  ;;  %v704_v53 = vadd.f32 %v703_v24, %v3132_v50 }
 0x12f   :  { %v2966_v2 = vpop.f32.mrf.mxu0  ;;  %v2339_v16 = vadd.f32 %v2960_v62, %v2947_v56  ;;  %3953 = vst [vmem:[#allocation18_spill] sm:$0xff] %v3154_v48  ;;  %v360_v62 = vadd.f32 %v359_v43, %v3121_v7  ;;  %3956 = vst [vmem:[#allocation21_spill] sm:$0xff] %v3169_v1 }
 0x130   :  { %v2976_v8 = vpop.f32.mrf.mxu1  ;;  %3951 = vst [vmem:[#allocation16_spill] sm:$0xff] %v3144_v55  ;;  %3954 = vst [vmem:[#allocation19_spill] sm:$0xff] %v3160_v47  ;;  %v705_v43 = vadd.f32 %v704_v53, %v3151_v44 }
 0x131   :  { %v2986_v12 = vpop.f32.mrf.mxu0  ;;  %v361_v10 = vadd.f32 %v360_v62, %v3141_v46 }
 0x132   :  { %v2994_v15 = vpop.f32.mrf.mxu1  ;;  %v2278_v19 = vadd.f32 %v2986_v12, %v2966_v2  ;;  %v3163_v2 = vadd.f32 %v2275_v52, %v2952_v58  ;;  %v1037_v52 = vadd.f32 %v3144_v55, %v3160_v47 }
 0x133   :  { %v3002_v17 = vpop.f32.mrf.mxu0  ;;  %v2342_v25 = vadd.f32 %v2994_v15, %v2976_v8  ;;  %v3172_v8 = vadd.f32 %v2339_v16, %v2952_v58  ;;  %v1381_v16 = vadd.f32 %v3154_v48, %v3169_v1 }
 0x134   :  { %v3009_v22 = vpop.f32.mrf.mxu1  ;;  %3955 = vst [vmem:[#allocation20_spill] sm:$0xff] %v3163_v2  ;;  %v1038_v62 = vadd.f32 %v1037_v52, %v3163_v2 }
 0x135   :  { %v3016_v26 = vpop.f32.mrf.mxu0  ;;  %v1382_v44 = vadd.f32 %v1381_v16, %v3172_v8 }
 0x136   :  { %v3023_v32 = vpop.f32.mrf.mxu1  ;;  %v2281_v12 = vadd.f32 %v3016_v26, %v3002_v17  ;;  %v3180_v17 = vadd.f32 %v2278_v19, %v2952_v58  ;;  %v2247_v19 = vadd.f32 %v2919_v36, %v2915_v31 }
 0x137   :  { %v3030_v14 = vpop.f32.mrf.mxu0  ;;  %v2345_v15 = vadd.f32 %v3023_v32, %v3009_v22  ;;  %v3188_v22 = vadd.f32 %v2342_v25, %v2952_v58  ;;  %v2186_v25 = vadd.f32 %v2925_v40, %v2921_v37  ;;  %v3217_v40 = vadd.f32 %v2917_v34, %v2952_v58 }
 0x138   :  { %v3037_v18 = vpop.f32.mrf.mxu1  ;;  %3957 = vst [vmem:[#allocation22_spill] sm:$0xff] %v3180_v17 }
 0x139   :  { %v3044_v21 = vpop.f32.mrf.mxu0 }
 0x13a   :  { %v3051_v23 = vpop.f32.mrf.mxu1  ;;  %v2284_v26 = vadd.f32 %v3044_v21, %v3030_v14  ;;  %v3196_v14 = vadd.f32 %v2281_v12, %v2952_v58  ;;  %v1039_v12 = vadd.f32 %v1038_v62, %v3180_v17 }
 0x13b   :  { %v3058_v27 = vpop.f32.mrf.mxu0  ;;  %v2348_v32 = vadd.f32 %v3051_v23, %v3037_v18  ;;  %v3204_v18 = vadd.f32 %v2345_v15, %v2952_v58  ;;  %v2250_v23 = vadd.f32 %v2927_v42, %v2923_v38  ;;  %v1383_v15 = vadd.f32 %v1382_v44, %v3188_v22 }
 0x13c   :  { %v3065_v29 = vpop.f32.mrf.mxu1  ;;  %v1040_v52 = vadd.f32 %v1039_v12, %v3196_v14  ;;  %v3234_v44 = vadd.f32 %v2186_v25, %v2952_v58 }
 0x13d   :  { %v3072_v33 = vpop.f32.mrf.mxu0 }
 0x13e   :  { %v3079_v35 = vpop.f32.mrf.mxu1  ;;  %v2287_v21 = vadd.f32 %v3072_v33, %v3058_v27  ;;  %v3212_v27 = vadd.f32 %v2284_v26, %v2952_v58  ;;  %3958 = vst [vmem:[#allocation23_spill] sm:$0xff] %v3234_v44  ;;  %v1384_v26 = vadd.f32 %v1383_v15, %v3204_v18 }
 0x13f   :  { %v3086_v39 = vpop.f32.mrf.mxu0  ;;  %v2351_v31 = vadd.f32 %v3079_v35, %v3065_v29  ;;  %v3221_v29 = vadd.f32 %v2348_v32, %v2952_v58  ;;  %v3226_v35 = vadd.f32 %v2247_v19, %v2952_v58  ;;  %v3242_v32 = vadd.f32 %v2250_v23, %v2952_v58 }
 0x140   :  { %v3093_v41 = vpop.f32.mrf.mxu1  ;;  %v1041_v19 = vadd.f32 %v1040_v52, %v3212_v27 }
 0x141   :  { %v2289_v45 = vpop.f32.mrf.mxu0  ;;  %v3238_v16 = vadd.f32 %v2351_v31, %v2952_v58  ;;  %v1385_v25 = vadd.f32 %v1384_v26, %v3221_v29 }
 0x142   :  { %v3107_v63 = vpop.f32.mrf.mxu1  ;;  %v2290_v33 = vadd.f32 %v2289_v45, %v3086_v39  ;;  %v3230_v39 = vadd.f32 %v2287_v21, %v2952_v58  ;;  %v362_v21 = vadd.f32 %v361_v10, %v3217_v40 }
 0x143   :  { %v3116_v30 = vpop.f32.mrf.mxu0  ;;  %v2354_v38 = vadd.f32 %v3107_v63, %v3093_v41  ;;  %3959 = vst [vmem:[#allocation24_spill] sm:$0xff] %v3238_v16 }
 0x144   :  { %v3127_v57 = vpop.f32.mrf.mxu1  ;;  %v3246_v62 = vadd.f32 %v2290_v33, %v2952_v58  ;;  %v1042_v23 = vadd.f32 %v1041_v19, %v3230_v39 }
 0x145   :  { %v2292_v59 = vpop.f32.mrf.mxu0  ;;  %v3251_v31 = vadd.f32 %v2354_v38, %v2952_v58 }
 0x146   :  { %v2356_v60 = vpop.f32.mrf.mxu1  ;;  %v2293_v34 = vadd.f32 %v2292_v59, %v3116_v30  ;;  %3960 = vst [vmem:[#allocation25_spill] sm:$0xff] %v3246_v62 }
 0x147   :  { %v2294_v56 = vpop.f32.mrf.mxu0  ;;  %v2357_v41 = vadd.f32 %v2356_v60, %v3127_v57  ;;  %3961 = vst [vmem:[#allocation26_spill] sm:$0xff] %v3251_v31  ;;  %v706_v60 = vadd.f32 %v705_v43, %v3226_v35 }
 0x148   :  { %v2358_v28 = vpop.f32.mrf.mxu1  ;;  %v3256_v15 = vadd.f32 %v2293_v34, %v2952_v58 }
 0x149   :  { %v2295_v49 = vpop.f32.mrf.mxu0  ;;  %v3261_v10 = vadd.f32 %v2357_v41, %v2952_v58 }
 0x14a   :  { %v2359_v54 = vpop.f32.mrf.mxu1  ;;  %v2296_v30 = vadd.f32 %v2295_v49, %v2294_v56  ;;  %v363_v56 = vadd.f32 %v362_v21, %v3234_v44  ;;  %v1386_v49 = vadd.f32 %v1385_v25, %v3238_v16 }
 0x14b   :  { %v2297_v24 = vpop.f32.mrf.mxu0  ;;  %v2360_v12 = vadd.f32 %v2359_v54, %v2358_v28  ;;  %3962 = vst [vmem:[#allocation27_spill] sm:$0xff] %v3261_v10  ;;  %v707_v28 = vadd.f32 %v706_v60, %v3242_v32  ;;  %v1043_v54 = vadd.f32 %v1042_v23, %v3246_v62 }
 0x14c   :  { %v2361_v53 = vpop.f32.mrf.mxu1  ;;  %v3266_v43 = vadd.f32 %v2296_v30, %v2952_v58  ;;  %v364_v23 = vrot.slane %v363_v56, 4 }
 0x14d   :  { %v2298_v36 = vpop.f32.mrf.mxu0  ;;  %v1044_v41 = vadd.f32 %v1043_v54, %v3256_v15 }
 0x14e   :  { %v2362_v37 = vpop.f32.mrf.mxu1  ;;  %v2299_v33 = vadd.f32 %v2298_v36, %v2297_v24  ;;  %v1387_v24 = vadd.f32 %v1386_v49, %v3251_v31  ;;  %v3270_v36 = vadd.f32 %v2360_v12, %v2952_v58  ;;  %v708_v31 = vrot.slane %v707_v28, 4 }
 0x14f   :  { %v2300_v42 = vpop.f32.mrf.mxu0  ;;  %v2363_v38 = vadd.f32 %v2362_v37, %v2361_v53  ;;  %v1045_v12 = vadd.f32 %v1044_v41, %v3266_v43 }
 0x150   :  { %v2364_v45 = vpop.f32.mrf.mxu1  ;;  %3963 = vst [vmem:[#allocation28_spill] sm:$0xff] %v3270_v36  ;;  %v3274_v53 = vadd.f32 %v2299_v33, %v2952_v58  ;;  %v1388_v30 = vadd.f32 %v1387_v24, %v3261_v10  ;;  %v365_v10 = vadd.f32 %v364_v23, %v363_v56 }
 0x151   :  { %v2301_v63 = vpop.f32.mrf.mxu0 }
 0x152   :  { %v2365_v59 = vpop.f32.mrf.mxu1  ;;  %v2302_v34 = vadd.f32 %v2301_v63, %v2300_v42  ;;  %v3278_v42 = vadd.f32 %v2363_v38, %v2952_v58  ;;  %v1389_v33 = vadd.f32 %v1388_v30, %v3270_v36  ;;  %v1046_v38 = vadd.f32 %v1045_v12, %v3274_v53 }
 0x153   :  { %v2303_v57 = vpop.f32.mrf.mxu0  ;;  %v2366_v21 = vadd.f32 %v2365_v59, %v2364_v45 }
 0x154   :  { %v2367_v52 = vpop.f32.mrf.mxu1  ;;  %3964 = vst [vmem:[#allocation29_spill] sm:$0xff] %v3278_v42  ;;  %v3282_v45 = vadd.f32 %v2302_v34, %v2952_v58  ;;  %v1390_v41 = vadd.f32 %v1389_v33, %v3278_v42 }
 0x155   :  { %v2304_v26 = vpop.f32.mrf.mxu0 }
 0x156   :  { %v2368_v19 = vpop.f32.mrf.mxu1  ;;  %v2305_v37 = vadd.f32 %v2304_v26, %v2303_v57  ;;  %v3286_v57 = vadd.f32 %v2366_v21, %v2952_v58  ;;  %v1047_v30 = vadd.f32 %v1046_v38, %v3282_v45  ;;  %v366_v38 = vrot.slane %v365_v10, 2 }
 0x157   :  { %v2306_v25 = vpop.f32.mrf.mxu0  ;;  %v2369_v63 = vadd.f32 %v2368_v19, %v2367_v52 }
 0x158   :  { %v2370_v60 = vpop.f32.mrf.mxu1  ;;  %3965 = vst [vmem:[#allocation30_spill] sm:$0xff] %v3286_v57  ;;  %v3290_v52 = vadd.f32 %v2305_v37, %v2952_v58  ;;  %v1391_v12 = vadd.f32 %v1390_v41, %v3286_v57 }
 0x159   :  { %v2307_v49 = vpop.f32.mrf.mxu0  ;;  %v3294_v34 = vadd.f32 %v2369_v63, %v2952_v58 }
 0x15a   :  { %v2308_v59 = vadd.f32 %v2307_v49, %v2306_v25  ;;  %v2371_v54 = vpop.f32.mrf.mxu1  ;;  %v709_v49 = vadd.f32 %v708_v31, %v707_v28  ;;  %v1048_v33 = vadd.f32 %v1047_v30, %v3290_v52 }
 0x15b   :  { %v2372_v26 = vadd.f32 %v2371_v54, %v2370_v60  ;;  %v2309_v24 = vpop.f32.mrf.mxu0  ;;  %3966 = vst [vmem:[#allocation31_spill] sm:$0xff] %v3294_v34  ;;  %v1392_v28 = vadd.f32 %v1391_v12, %v3294_v34  ;;  %v367_v34 = vadd.f32 %v366_v38, %v365_v10 }
 0x15c   :  { %v2373_v19 = vpop.f32.mrf.mxu1  ;;  %v3298_v21 = vadd.f32 %v2308_v59, %v2952_v58 }
 0x15d   :  { %v2310_v25 = vpop.f32.mrf.mxu0  ;;  %v3302_v37 = vadd.f32 %v2372_v26, %v2952_v58 }
 0x15e   :  { %3967 = vst [vmem:[#allocation32_spill] sm:$0xff] %v3298_v21  ;;  %v2311_v60 = vadd.f32 %v2310_v25, %v2309_v24  ;;  %v2374_v54 = vpop.f32.mrf.mxu1  ;;  %v710_v25 = vrot.slane %v709_v49, 2  ;;  %v1049_v41 = vadd.f32 %v1048_v33, %v3298_v21 }
 0x15f   :  { %3968 = vst [vmem:[#allocation33_spill] sm:$0xff] %v3302_v37  ;;  %v2375_v56 = vadd.f32 %v2374_v54, %v2373_v19  ;;  %v2312_v23 = vpop.f32.mrf.mxu0  ;;  %v1393_v19 = vadd.f32 %v1392_v28, %v3302_v37  ;;  %v368_v28 = vrot.slane %v367_v34, 1 }
 0x160   :  { %v3306_v63 = vadd.f32 %v2311_v60, %v2952_v58  ;;  %v2376_v31 = vpop.f32.mrf.mxu1  ;;  %v711_v42 = vadd.f32 %v710_v25, %v709_v49 }
 0x161   :  { %v3310_v59 = vadd.f32 %v2375_v56, %v2952_v58  ;;  %v2313_v24 = vpop.f32.mrf.mxu0 }
 0x162   :  { %3969 = vst [vmem:[#allocation34_spill] sm:$0xff] %v3306_v63  ;;  %v2314_v26 = vadd.f32 %v2313_v24, %v2312_v23  ;;  %v2377_v57 = vpop.f32.mrf.mxu1  ;;  %v1050_v30 = vadd.f32 %v1049_v41, %v3306_v63  ;;  %v369_v63 = vadd.f32 %v368_v28, %v367_v34  ;;  %v3973_v28 = vld [vmem:[#allocation2_spill] sm:$0xff] }
 0x163   :  { %3970 = vst [vmem:[#allocation35_spill] sm:$0xff] %v3310_v59  ;;  %v2378_v54 = vadd.f32 %v2377_v57, %v2376_v31  ;;  %v1394_v12 = vadd.f32 %v1393_v19, %v3310_v59  ;;  %v712_v57 = vrot.slane %v711_v42, 1 }
 0x164   :  { %v3316_v60 = vadd.f32 %v2314_v26, %v2952_v58 }
 0x165   :  { %v3320_v56 = vadd.f32 %v2378_v54, %v2952_v58  ;;  %v713_v21 = vadd.f32 %v712_v57, %v711_v42 }
 0x166   :  { %v1051_v36 = vadd.f32 %v1050_v30, %v3316_v60 }
 0x167   :  { %3971 = vst [vmem:[#allocation36_spill] sm:$0xff] %v3320_v56  ;;  %v1395_v23 = vadd.f32 %v1394_v12, %v3320_v56  ;;  %v714_v10 = vadd.f32 %v713_v21, %v369_v63 }
 0x168   :  { %v1052_v33 = vrot.slane %v1051_v36, 4 }
 0x169   :  { %v1396_v24 = vrot.slane %v1395_v23, 4 }
 0x16a   :  { %v1053_v31 = vadd.f32 %v1052_v33, %v1051_v36  ;;  %v3972_v33 = vld [vmem:[#allocation3_spill] sm:$0xff] }
 0x16b   :  { %v1397_v41 = vadd.f32 %v1396_v24, %v1395_v23 }
 0x16c   :  { %v1054_v37 = vrot.slane %v1053_v31, 2 }
 0x16d   :  { %v1398_v26 = vrot.slane %v1397_v41, 2 }
 0x16e   :  { %v1055_v19 = vadd.f32 %v1054_v37, %v1053_v31  ;;  %v3974_v31 = vld [vmem:[#allocation8_spill] sm:$0xff] }
 0x16f   :  { %v1399_v59 = vadd.f32 %v1398_v26, %v1397_v41 }
 0x170   :  { %v1056_v58 = vrot.slane %v1055_v19, 1 }
 0x171   :  { %v1400_v54 = vrot.slane %v1399_v59, 1 }
 0x172   :  { %v1057_v49 = vadd.f32 %v1056_v58, %v1055_v19  ;;  %v3975_v19 = vld [vmem:[#allocation10_spill] sm:$0xff] }
 0x173   :  { %v1401_v25 = vadd.f32 %v1400_v54, %v1399_v59 }
 0x174   :  { %v1058_v38 = vadd.f32 %v1057_v49, %v714_v10  ;;  %v3976_v49 = vld [vmem:[#allocation4_spill] sm:$0xff] }
 0x176   :  { %v1402_v30 = vadd.f32 %v1401_v25, %v1058_v38 }
 0x178   :  { %v3324_v12 = vmul.f32 0.001953125, %v1402_v30 }
 0x17a   :  { %v1404_v56 = vsub.f32 %v2970_v4, %v3324_v12  ;;  %v1405_v36 = vsub.f32 %v2958_v61, %v3324_v12  ;;  %v1406_v42 = vsub.f32 %v2974_v6, %v3324_v12  ;;  %v1407_v21 = vsub.f32 %v2992_v13, %v3324_v12 }
 0x17b   :  { %v1408_v63 = vsub.f32 %v3007_v20, %v3324_v12  ;;  %v1458_v24 = vsub.f32 %v3972_v33, %v3324_v12  ;;  %v1459_v57 = vsub.f32 %v3973_v28, %v3324_v12  ;;  %v1409_v41 = vsub.f32 %v3974_v31, %v3324_v12  ;;  %v3978_v28 = vld [vmem:[#allocation5_spill] sm:$0xff] }
 0x17c   :  { %v1420_v34 = vmul.f32 %v1404_v56, %v1404_v56  ;;  %v1421_v37 = vmul.f32 %v1405_v36, %v1405_v36  ;;  %v1422_v59 = vmul.f32 %v1406_v42, %v1406_v42  ;;  %v1423_v26 = vmul.f32 %v1407_v21, %v1407_v21  ;;  %v3977_v36 = vld [vmem:[#allocation12_spill] sm:$0xff]  ;;  %v3979_v21 = vld [vmem:[#allocation14_spill] sm:$0xff] }
 0x17d   :  { %v1410_v58 = vsub.f32 %v3975_v19, %v3324_v12  ;;  %v1424_v54 = vmul.f32 %v1408_v63, %v1408_v63  ;;  %v1460_v38 = vsub.f32 %v3976_v49, %v3324_v12  ;;  %v1474_v25 = vmul.f32 %v1458_v24, %v1458_v24  ;;  %v3980_v63 = vld [vmem:[#allocation7_spill] sm:$0xff] }
 0x17e   :  { %v1436_v23 = vadd.f32 %v1421_v37, %v1420_v34  ;;  %v1475_v30 = vmul.f32 %v1459_v57, %v1459_v57  ;;  %v1411_v42 = vsub.f32 %v3977_v36, %v3324_v12  ;;  %v1425_v34 = vmul.f32 %v1409_v41, %v1409_v41  ;;  %v3981_v41 = vld [vmem:[#allocation9_spill] sm:$0xff] }
 0x17f   :  { %v1461_v33 = vsub.f32 %v3978_v28, %v3324_v12  ;;  %v1413_v24 = vsub.f32 %v3077_v3, %v3324_v12 }
 0x180   :  { %v1437_v56 = vadd.f32 %v1436_v23, %v1422_v59  ;;  %v1412_v59 = vsub.f32 %v3979_v21, %v3324_v12  ;;  %v1426_v23 = vmul.f32 %v1410_v58, %v1410_v58  ;;  %v1490_v49 = vadd.f32 %v1475_v30, %v1474_v25  ;;  %v3982_v25 = vld [vmem:[#allocation11_spill] sm:$0xff] }
 0x181   :  { %v1427_v57 = vmul.f32 %v1411_v42, %v1411_v42  ;;  %v1512_v58 = vsub.f32 %v3160_v47, %v3324_v12  ;;  %v1464_v30 = vsub.f32 %v3982_v25, %v3324_v12 }
 0x182   :  { %v1438_v10 = vadd.f32 %v1437_v56, %v1423_v26  ;;  %v1462_v26 = vsub.f32 %v3980_v63, %v3324_v12  ;;  %v1476_v56 = vmul.f32 %v1460_v38, %v1460_v38  ;;  %v1428_v31 = vmul.f32 %v1412_v59, %v1412_v59 }
 0x183   :  { %v1414_v38 = vsub.f32 %v3091_v0, %v3324_v12  ;;  %v1417_v59 = vsub.f32 %v3141_v46, %v3324_v12 }
 0x184   :  { %v1439_v37 = vadd.f32 %v1438_v10, %v1424_v54  ;;  %v1463_v54 = vsub.f32 %v3981_v41, %v3324_v12  ;;  %v1477_v10 = vmul.f32 %v1461_v33, %v1461_v33  ;;  %v1491_v28 = vadd.f32 %v1490_v49, %v1476_v56  ;;  %v3984_v41 = vld [vmem:[#allocation15_spill] sm:$0xff] }
 0x185   :  { %v1415_v33 = vsub.f32 %v3103_v9, %v3324_v12  ;;  %v1416_v49 = vsub.f32 %v3121_v7, %v3324_v12  ;;  %v1430_v25 = vmul.f32 %v1414_v38, %v1414_v38  ;;  %v1466_v63 = vsub.f32 %v3984_v41, %v3324_v12 }
 0x186   :  { %v1440_v19 = vadd.f32 %v1439_v37, %v1425_v34  ;;  %v1513_v34 = vsub.f32 %v3144_v55, %v3324_v12  ;;  %v1492_v42 = vadd.f32 %v1491_v28, %v1477_v10  ;;  %v1514_v28 = vsub.f32 %v3163_v2, %v3324_v12 }
 0x187   :  { %v1468_v2 = vsub.f32 %v3098_v5, %v3324_v12 }
 0x188   :  { %v1441_v36 = vadd.f32 %v1440_v19, %v1426_v23  ;;  %v1478_v19 = vmul.f32 %v1462_v26, %v1462_v26  ;;  %v3983_v23 = vld [vmem:[#allocation13_spill] sm:$0xff]  ;;  %v1528_v26 = vmul.f32 %v1512_v58, %v1512_v58  ;;  %v1529_v10 = vmul.f32 %v1513_v34, %v1513_v34 }
 0x189   :  { %v1465_v56 = vsub.f32 %v3983_v23, %v3324_v12  ;;  %v3382_v23 = vsub.f32 %v3234_v44, %v3324_v12  ;;  %v1467_v58 = vsub.f32 %v3084_v11, %v3324_v12 }
 0x18a   :  { %v1442_v20 = vadd.f32 %v1441_v36, %v1427_v57  ;;  %v1429_v36 = vmul.f32 %v1413_v24, %v1413_v24  ;;  %v1479_v57 = vmul.f32 %v1463_v54, %v1463_v54  ;;  %v1493_v55 = vadd.f32 %v1492_v42, %v1478_v19 }
 0x18b   :  { %v1480_v24 = vmul.f32 %v1464_v30, %v1464_v30  ;;  %v1431_v54 = vmul.f32 %v1415_v33, %v1415_v33  ;;  %v1515_v19 = vsub.f32 %v3180_v17, %v3324_v12  ;;  %v1481_v34 = vmul.f32 %v1465_v56, %v1465_v56 }
 0x18c   :  { %v1443_v37 = vadd.f32 %v1442_v20, %v1428_v31  ;;  %v1494_v20 = vadd.f32 %v1493_v55, %v1479_v57  ;;  %v1418_v31 = vsub.f32 %v3217_v40, %v3324_v12  ;;  %v1516_v55 = vsub.f32 %v3196_v14, %v3324_v12 }
 0x18d   :  { %v1530_v30 = vmul.f32 %v1514_v28, %v1514_v28  ;;  %v1433_v57 = vmul.f32 %v1417_v59, %v1417_v59  ;;  %v1482_v33 = vmul.f32 %v1466_v63, %v1466_v63  ;;  %v1470_v59 = vsub.f32 %v3132_v50, %v3324_v12 }
 0x18e   :  { %v1444_v47 = vadd.f32 %v1443_v37, %v1429_v36  ;;  %v1495_v38 = vadd.f32 %v1494_v20, %v1480_v24  ;;  %v1432_v36 = vmul.f32 %v1416_v49, %v1416_v49  ;;  %v1544_v37 = vadd.f32 %v1529_v10, %v1528_v26 }
 0x18f   :  { %v1434_v44 = vmul.f32 %v1418_v31, %v1418_v31  ;;  %v1469_v49 = vsub.f32 %v3112_v51, %v3324_v12  ;;  %v1483_v24 = vmul.f32 %v1467_v58, %v1467_v58  ;;  %v1518_v28 = vsub.f32 %v3230_v39, %v3324_v12 }
 0x190   :  { %v1445_v42 = vadd.f32 %v1444_v47, %v1430_v25  ;;  %v1496_v41 = vadd.f32 %v1495_v38, %v1481_v34  ;;  %v1517_v47 = vsub.f32 %v3212_v27, %v3324_v12  ;;  %v1531_v25 = vmul.f32 %v1515_v19, %v1515_v19 }
 0x191   :  { %v1545_v17 = vadd.f32 %v1544_v37, %v1530_v30  ;;  %v1532_v63 = vmul.f32 %v1516_v55, %v1516_v55  ;;  %v1484_v10 = vmul.f32 %v1468_v2, %v1468_v2  ;;  %v1566_v19 = vsub.f32 %v3169_v1, %v3324_v12 }
 0x192   :  { %v1446_v56 = vadd.f32 %v1445_v42, %v1431_v54  ;;  %v1497_v20 = vadd.f32 %v1496_v41, %v1482_v33  ;;  %v1567_v54 = vsub.f32 %v3154_v48, %v3324_v12  ;;  %v3985_v42 = vld [vmem:[#allocation17_spill] sm:$0xff]  ;;  %v1519_v41 = vsub.f32 %v3246_v62, %v3324_v12 }
 0x193   :  { %v1546_v26 = vadd.f32 %v1545_v17, %v1531_v25  ;;  %v1471_v58 = vsub.f32 %v3985_v42, %v3324_v12  ;;  %v1533_v34 = vmul.f32 %v1517_v47, %v1517_v47  ;;  %v1472_v17 = vsub.f32 %v3226_v35, %v3324_v12 }
 0x194   :  { %v1498_v31 = vadd.f32 %v1497_v20, %v1483_v24  ;;  %v1447_v30 = vadd.f32 %v1446_v56, %v1432_v36  ;;  %v1485_v2 = vmul.f32 %v1469_v49, %v1469_v49  ;;  %v1486_v37 = vmul.f32 %v1470_v59, %v1470_v59 }
 0x195   :  { %v1547_v38 = vadd.f32 %v1546_v26, %v1532_v63  ;;  %v1520_v33 = vsub.f32 %v3256_v15, %v3324_v12  ;;  %v1534_v25 = vmul.f32 %v1518_v28, %v1518_v28  ;;  %v1568_v48 = vsub.f32 %v3172_v8, %v3324_v12 }
 0x196   :  { %v1499_v55 = vadd.f32 %v1498_v31, %v1484_v10  ;;  %v1582_v1 = vmul.f32 %v1566_v19, %v1566_v19  ;;  %v1583_v62 = vmul.f32 %v1567_v54, %v1567_v54  ;;  %v1473_v36 = vsub.f32 %v3242_v32, %v3324_v12 }
 0x197   :  { %v1548_v24 = vadd.f32 %v1547_v38, %v1533_v34  ;;  %v1521_v47 = vsub.f32 %v3266_v43, %v3324_v12  ;;  %v1535_v56 = vmul.f32 %v1519_v41, %v1519_v41  ;;  %v1448_v59 = vadd.f32 %v1447_v30, %v1433_v57 }
 0x198   :  { %v1500_v20 = vadd.f32 %v1499_v55, %v1485_v2  ;;  %v1487_v63 = vmul.f32 %v1471_v58, %v1471_v58  ;;  %v1569_v28 = vsub.f32 %v3188_v22, %v3324_v12  ;;  %v1488_v10 = vmul.f32 %v1472_v17, %v1472_v17 }
 0x199   :  { %v1549_v49 = vadd.f32 %v1548_v24, %v1534_v25  ;;  %v1522_v31 = vsub.f32 %v3274_v53, %v3324_v12  ;;  %v1536_v19 = vmul.f32 %v1520_v33, %v1520_v33  ;;  %v1570_v38 = vsub.f32 %v3204_v18, %v3324_v12 }
 0x19a   :  { %v1501_v26 = vadd.f32 %v1500_v20, %v1486_v37  ;;  %v1584_v2 = vmul.f32 %v1568_v48, %v1568_v48  ;;  %v1598_v55 = vadd.f32 %v1583_v62, %v1582_v1  ;;  %v1523_v57 = vsub.f32 %v3282_v45, %v3324_v12 }
 0x19b   :  { %v1550_v54 = vadd.f32 %v1549_v49, %v1535_v56  ;;  %v1537_v58 = vmul.f32 %v1521_v47, %v1521_v47  ;;  %v1571_v30 = vsub.f32 %v3221_v29, %v3324_v12  ;;  %v1449_v17 = vadd.f32 %v1448_v59, %v1434_v44 }
 0x19c   :  { %v1502_v34 = vadd.f32 %v1501_v26, %v1487_v63  ;;  %v1585_v25 = vmul.f32 %v1569_v28, %v1569_v28  ;;  %v1599_v24 = vadd.f32 %v1598_v55, %v1584_v2  ;;  %v1435_v33 = vmul.f32 %v3382_v23, %v3382_v23  ;;  %v3986_v63 = vld [vmem:[#allocation32_spill] sm:$0xff]  ;;  %v3987_v28 = vld [vmem:[#allocation26_spill] sm:$0xff] }
 0x19d   :  { %v1551_v41 = vadd.f32 %v1550_v54, %v1536_v19  ;;  %v1524_v20 = vsub.f32 %v3290_v52, %v3324_v12  ;;  %v1538_v48 = vmul.f32 %v1522_v31, %v1522_v31  ;;  %v1489_v62 = vmul.f32 %v1473_v36, %v1473_v36  ;;  %v3988_v31 = vld [vmem:[#allocation34_spill] sm:$0xff] }
 0x19e   :  { %v1503_v37 = vadd.f32 %v1502_v34, %v1488_v10  ;;  %v1572_v47 = vsub.f32 %v3238_v16, %v3324_v12  ;;  %v1586_v56 = vmul.f32 %v1570_v38, %v1570_v38  ;;  %v1600_v49 = vadd.f32 %v1599_v24, %v1585_v25  ;;  %v3989_v38 = vld [vmem:[#allocation27_spill] sm:$0xff] }
 0x19f   :  { %v1552_v1 = vadd.f32 %v1551_v41, %v1537_v58  ;;  %v1525_v44 = vsub.f32 %v3986_v63, %v3324_v12  ;;  %v1539_v59 = vmul.f32 %v1523_v57, %v1523_v57  ;;  %v1573_v10 = vsub.f32 %v3987_v28, %v3324_v12 }
 0x1a0   :  { %v1450_v23 = vadd.f32 %v1449_v17, %v1435_v33  ;;  %v1504_v19 = vadd.f32 %v1503_v37, %v1489_v62  ;;  %v1587_v54 = vmul.f32 %v1571_v30, %v1571_v30  ;;  %v1601_v34 = vadd.f32 %v1600_v49, %v1586_v56  ;;  %v3990_v17 = vld [vmem:[#allocation28_spill] sm:$0xff]  ;;  %v3991_v49 = vld [vmem:[#allocation29_spill] sm:$0xff] }
 0x1a1   :  { %v1553_v26 = vadd.f32 %v1552_v1, %v1538_v48  ;;  %v1526_v36 = vsub.f32 %v3988_v31, %v3324_v12  ;;  %v1540_v2 = vmul.f32 %v1524_v20, %v1524_v20  ;;  %v1574_v58 = vsub.f32 %v3989_v38, %v3324_v12  ;;  %v3992_v38 = vld [vmem:[#allocation30_spill] sm:$0xff] }
 0x1a2   :  { %v1588_v41 = vmul.f32 %v1572_v47, %v1572_v47  ;;  %v1602_v25 = vadd.f32 %v1601_v34, %v1587_v54  ;;  %v1527_v57 = vsub.f32 %v3316_v60, %v3324_v12  ;;  %v1541_v24 = vmul.f32 %v1525_v44, %v1525_v44 }
 0x1a3   :  { %v1554_v55 = vadd.f32 %v1553_v26, %v1539_v59  ;;  %v1575_v37 = vsub.f32 %v3990_v17, %v3324_v12  ;;  %v1451_v30 = vrot.slane %v1450_v23, 4  ;;  %v1505_v33 = vrot.slane %v1504_v19, 4 }
 0x1a4   :  { %v1589_v1 = vmul.f32 %v1573_v10, %v1573_v10  ;;  %v1603_v62 = vadd.f32 %v1602_v25, %v1588_v41  ;;  %v1542_v56 = vmul.f32 %v1526_v36, %v1526_v36  ;;  %v1576_v59 = vsub.f32 %v3991_v49, %v3324_v12  ;;  %v3993_v10 = vld [vmem:[#allocation31_spill] sm:$0xff] }
 0x1a5   :  { %v1555_v48 = vadd.f32 %v1554_v55, %v1540_v2  ;;  %v1590_v26 = vmul.f32 %v1574_v58, %v1574_v58  ;;  %v1543_v54 = vmul.f32 %v1527_v57, %v1527_v57  ;;  %v1577_v44 = vsub.f32 %v3992_v38, %v3324_v12 }
 0x1a6   :  { %v1604_v47 = vadd.f32 %v1603_v62, %v1589_v1  ;;  %v1452_v2 = vadd.f32 %v1451_v30, %v1450_v23  ;;  %v1506_v55 = vadd.f32 %v1505_v33, %v1504_v19  ;;  %v1591_v28 = vmul.f32 %v1575_v37, %v1575_v37  ;;  %v3995_v23 = vld [vmem:[#allocation35_spill] sm:$0xff]  ;;  %v3996_v33 = vld [vmem:[#allocation36_spill] sm:$0xff] }
 0x1a7   :  { %v1556_v20 = vadd.f32 %v1555_v48, %v1541_v24  ;;  %v1578_v41 = vsub.f32 %v3993_v10, %v3324_v12  ;;  %v1592_v36 = vmul.f32 %v1576_v59, %v1576_v59  ;;  %v3994_v48 = vld [vmem:[#allocation33_spill] sm:$0xff]  ;;  %v1593_v62 = vmul.f32 %v1577_v44, %v1577_v44 }
 0x1a8   :  { %v1605_v17 = vadd.f32 %v1604_v47, %v1590_v26  ;;  %v1579_v58 = vsub.f32 %v3994_v48, %v3324_v12  ;;  %v1453_v1 = vrot.slane %v1452_v2, 2  ;;  %v1507_v57 = vrot.slane %v1506_v55, 2 }
 0x1a9   :  { %v1557_v34 = vadd.f32 %v1556_v20, %v1542_v56  ;;  %v1580_v19 = vsub.f32 %v3995_v23, %v3324_v12  ;;  %v1594_v37 = vmul.f32 %v1578_v41, %v1578_v41  ;;  %v1581_v26 = vsub.f32 %v3996_v33, %v3324_v12 }
 0x1aa   :  { %v1606_v25 = vadd.f32 %v1605_v17, %v1591_v28  ;;  %v1454_v47 = vadd.f32 %v1453_v1, %v1452_v2  ;;  %v1508_v59 = vadd.f32 %v1507_v57, %v1506_v55  ;;  %v1595_v28 = vmul.f32 %v1579_v58, %v1579_v58 }
 0x1ab   :  { %v1558_v16 = vadd.f32 %v1557_v34, %v1543_v54  ;;  %v1596_v34 = vmul.f32 %v1580_v19, %v1580_v19  ;;  %v1597_v44 = vmul.f32 %v1581_v26, %v1581_v26  ;;  %v1628_v26 = vlaneseq }
 0x1ac   :  { %v1607_v56 = vadd.f32 %v1606_v25, %v1592_v36  ;;  %v1455_v10 = vrot.slane %v1454_v47, 1  ;;  %v1509_v38 = vrot.slane %v1508_v59, 1 }
 0x1ad   :  { %v1559_v24 = vrot.slane %v1558_v16, 4 }
 0x1ae   :  { %v1608_v30 = vadd.f32 %v1607_v56, %v1593_v62  ;;  %v1510_v23 = vadd.f32 %v1509_v38, %v1508_v59  ;;  %v1623_v38 = vld [vmem:[%s3874_s3] sm:$0x1] }
 0x1af   :  { %v1560_v20 = vadd.f32 %v1559_v24, %v1558_v16  ;;  %v1456_v24 = vadd.f32 %v1455_v10, %v1454_v47 }
 0x1b0   :  { %v1609_v17 = vadd.f32 %v1608_v30, %v1594_v37 }
 0x1b1   :  { %v1561_v54 = vrot.slane %v1560_v20, 2  ;;  %v1511_v49 = vadd.f32 %v1510_v23, %v1456_v24  ;;  %v1625_v23 = vld [vmem:[%s3875_s4] sm:$0x1] }
 0x1b2   :  { %v1610_v48 = vadd.f32 %v1609_v17, %v1595_v28 }
 0x1b3   :  { %v1562_v16 = vadd.f32 %v1561_v54, %v1560_v20 }
 0x1b4   :  { %v1611_v36 = vadd.f32 %v1610_v48, %v1596_v34  ;;  %v1629_v48 = vshrl.u32 %v1628_v26, 7  ;;  %v4007_v26 = vld [vmem:[#allocation9_spill] sm:$0xff] }
 0x1b5   :  { %v1563_v62 = vrot.slane %v1562_v16, 1 }
 0x1b6   :  { %v1612_v25 = vadd.f32 %v1611_v36, %v1597_v44  ;;  %v1630_v10 = vsub.s32 0, %v1629_v48  ;;  %v3997_v44 = vld [vmem:[#allocation6_spill] sm:$0xff] }
 0x1b7   :  { %v1564_v2 = vadd.f32 %v1563_v62, %v1562_v16  ;;  %v3998_v16 = vld [vmem:[#allocation8_spill] sm:$0xff] }
 0x1b8   :  { %v1613_v41 = vrot.slane %v1612_v25, 4 }
 0x1b9   :  { %v1565_v58 = vadd.f32 %v1564_v2, %v1511_v49 }
 0x1ba   :  { %v1614_v56 = vadd.f32 %v1613_v41, %v1612_v25  ;;  %v3999_v25 = vld [vmem:[#allocation10_spill] sm:$0xff]  ;;  %v4000_v41 = vld [vmem:[#allocation12_spill] sm:$0xff] }
 0x1bc   :  { %v1615_v33 = vrot.slane %v1614_v56, 2 }
 0x1be   :  { %v1616_v55 = vadd.f32 %v1615_v33, %v1614_v56 }
 0x1c0   :  { %v1617_v1 = vrot.slane %v1616_v55, 1 }
 0x1c2   :  { %v1618_v57 = vadd.f32 %v1617_v1, %v1616_v55 }
 0x1c4   :  { %v1619_v19 = vadd.f32 %v1618_v57, %v1565_v58  ;;  %v4001_v58 = vld [vmem:[#allocation23_spill] sm:$0xff]  ;;  %v4003_v57 = vld [vmem:[#allocation2_spill] sm:$0xff] }
 0x1c6   :  { %v1620_v37 = vmul.f32 0.001953125, %v1619_v19 }
 0x1c8   :  { %v1621_v30 = vadd.f32 1e-05, %v1620_v37  ;;  %v4006_v37 = vld [vmem:[#allocation7_spill] sm:$0xff] }
 0x1ca   :  { %2443 = vrsqrt.f32 %v1621_v30 }
 0x1d7   :  { %v2444_v20 = vpop.eup %2443 }
 0x1d8   :  { %v1624_v47 = vmul.f32 %v2444_v20, %v1623_v38 }
 0x1da   :  { %v1626_v49 = vmul.f32 %v1624_v47, %v3324_v12  ;;  %v3465_v33 = vrot.slane %v1624_v47, %v1630_v10 }
 0x1dc   :  { %v1627_v59 = vsub.f32 %v1625_v23, %v1626_v49  ;;  %v1632_v28 = vmul.f32 %v3465_v33, %v2970_v4  ;;  %v1633_v17 = vmul.f32 %v3465_v33, %v2958_v61  ;;  %v1634_v54 = vmul.f32 %v3465_v33, %v2974_v6 }
 0x1dd   :  { %v1635_v34 = vmul.f32 %v3465_v33, %v2992_v13  ;;  %v1636_v36 = vmul.f32 %v3465_v33, %v3997_v44  ;;  %v1637_v12 = vmul.f32 %v3465_v33, %v3998_v16  ;;  %v1638_v24 = vmul.f32 %v3465_v33, %v3999_v25 }
 0x1de   :  { %v1639_v4 = vmul.f32 %v3465_v33, %v4000_v41  ;;  %v1640_v61 = vmul.f32 %v3465_v33, %v3979_v21  ;;  %v1641_v6 = vmul.f32 %v3465_v33, %v3077_v3  ;;  %v1642_v13 = vmul.f32 %v3465_v33, %v3091_v0  ;;  %v4002_v3 = vld [vmem:[#allocation3_spill] sm:$0xff] }
 0x1df   :  { %v1643_v62 = vmul.f32 %v3465_v33, %v3103_v9  ;;  %v1644_v56 = vmul.f32 %v3465_v33, %v3121_v7  ;;  %v1645_v2 = vmul.f32 %v3465_v33, %v3141_v46  ;;  %v1646_v55 = vmul.f32 %v3465_v33, %v3217_v40  ;;  %v4004_v7 = vld [vmem:[#allocation4_spill] sm:$0xff]  ;;  %v4005_v46 = vld [vmem:[#allocation5_spill] sm:$0xff] }
 0x1e0   :  { %v1647_v21 = vmul.f32 %v3465_v33, %v4001_v58  ;;  %v3499_v1 = vrot.slane %v1627_v59, %v1630_v10  ;;  %v3503_v0 = vmul.f32 %v3465_v33, %v4002_v3  ;;  %v3507_v9 = vmul.f32 %v3465_v33, %v4003_v57 }
 0x1e1   :  { %v3511_v19 = vmul.f32 %v3465_v33, %v4004_v7  ;;  %v3515_v40 = vmul.f32 %v3465_v33, %v4005_v46  ;;  %v3519_v30 = vmul.f32 %v3465_v33, %v4006_v37  ;;  %v3523_v48 = vmul.f32 %v3465_v33, %v4007_v26  ;;  %v4008_v37 = vld [vmem:[#allocation11_spill] sm:$0xff] }
 0x1e2   :  { %v1654_v38 = vadd.f32 %v3499_v1, %v1632_v28  ;;  %v1655_v10 = vadd.f32 %v3499_v1, %v1633_v17  ;;  %v1656_v20 = vadd.f32 %v3499_v1, %v1634_v54  ;;  %v1657_v47 = vadd.f32 %v3499_v1, %v1635_v34 }
 0x1e3   :  { %v1658_v23 = vadd.f32 %v3499_v1, %v1636_v36  ;;  %v1659_v49 = vadd.f32 %v3499_v1, %v1637_v12  ;;  %v1660_v59 = vadd.f32 %v3499_v1, %v1638_v24  ;;  %v1661_v44 = vadd.f32 %v3499_v1, %v1639_v4 }
 0x1e4   :  { %v1662_v16 = vadd.f32 %v3499_v1, %v1640_v61  ;;  %v1663_v25 = vadd.f32 %v3499_v1, %v1641_v6  ;;  %v1664_v28 = vadd.f32 %v3499_v1, %v1642_v13  ;;  %v1665_v17 = vadd.f32 %v3499_v1, %v1643_v62 }
 0x1e5   :  { %v1666_v54 = vadd.f32 %v3499_v1, %v1644_v56  ;;  %v1667_v34 = vadd.f32 %v3499_v1, %v1645_v2  ;;  %v1668_v36 = vadd.f32 %v3499_v1, %v1646_v55  ;;  %v1669_v12 = vadd.f32 %v3499_v1, %v1647_v21 }
 0x1e6   :  { %v1670_v41 = vmax.f32 %v1654_v38, 0.0  ;;  %v1671_v24 = vmax.f32 %v1655_v10, 0.0  ;;  %v1672_v58 = vmax.f32 %v1656_v20, 0.0  ;;  %v1673_v4 = vmax.f32 %v1657_v47, 0.0  ;;  %v4009_v38 = vld [vmem:[#allocation13_spill] sm:$0xff]  ;;  %v4010_v20 = vld [vmem:[#allocation15_spill] sm:$0xff] }
 0x1e7   :  { %v1674_v3 = vmax.f32 %v1658_v23, 0.0  ;;  %v1675_v61 = vmax.f32 %v1659_v49, 0.0  ;;  %v1676_v57 = vmax.f32 %v1660_v59, 0.0  ;;  %v1677_v6 = vmax.f32 %v1661_v44, 0.0 }
 0x1e8   :  { %v1678_v7 = vmax.f32 %v1662_v16, 0.0  ;;  %v1679_v13 = vmax.f32 %v1663_v25, 0.0  ;;  %v1680_v46 = vmax.f32 %v1664_v28, 0.0  ;;  %v1681_v62 = vmax.f32 %v1665_v17, 0.0  ;;  %1686 = vst [vmem:[%s3876_s5] sm:$0xff] %v1670_v41  ;;  %1687 = vst [vmem:[%s3876_s5 + $0x20] sm:$0xff] %v1671_v24 }
 0x1e9   :  { %1688 = vst [vmem:[%s3876_s5 + $0x40] sm:$0xff] %v1672_v58  ;;  %1689 = vst [vmem:[%s3876_s5 + $0x60] sm:$0xff] %v1673_v4  ;;  %v1682_v56 = vmax.f32 %v1666_v54, 0.0  ;;  %v1683_v2 = vmax.f32 %v1667_v34, 0.0  ;;  %v1684_v55 = vmax.f32 %v1668_v36, 0.0  ;;  %v1685_v21 = vmax.f32 %v1669_v12, 0.0 }
 0x1ea   :  { %1690 = vst [vmem:[%s3876_s5 + $0x80] sm:$0xff] %v1674_v3  ;;  %1691 = vst [vmem:[%s3876_s5 + $0xa0] sm:$0xff] %v1675_v61  ;;  %v1708_v26 = vmul.f32 %v3465_v33, %v4008_v37  ;;  %v1709_v10 = vmul.f32 %v3465_v33, %v4009_v38  ;;  %v1710_v47 = vmul.f32 %v3465_v33, %v4010_v20  ;;  %v4012_v37 = vld [vmem:[#allocation16_spill] sm:$0xff]  ;;  %v4014_v20 = vld [vmem:[#allocation22_spill] sm:$0xff] }
 0x1eb   :  { %1692 = vst [vmem:[%s3876_s5 + $0xc0] sm:$0xff] %v1676_v57  ;;  %1693 = vst [vmem:[%s3876_s5 + $0xe0] sm:$0xff] %v1677_v6  ;;  %v1711_v23 = vmul.f32 %v3465_v33, %v3084_v11  ;;  %v1712_v49 = vmul.f32 %v3465_v33, %v3098_v5  ;;  %v1713_v11 = vmul.f32 %v3465_v33, %v3112_v51  ;;  %v4013_v38 = vld [vmem:[#allocation20_spill] sm:$0xff] }
 0x1ec   :  { %1694 = vst [vmem:[%s3876_s5 + $0x100] sm:$0xff] %v1678_v7  ;;  %1695 = vst [vmem:[%s3876_s5 + $0x120] sm:$0xff] %v1679_v13  ;;  %v1714_v59 = vmul.f32 %v3465_v33, %v3132_v50  ;;  %v1715_v44 = vmul.f32 %v3465_v33, %v3985_v42  ;;  %v1716_v16 = vmul.f32 %v3465_v33, %v3226_v35 }
 0x1ed   :  { %1696 = vst [vmem:[%s3876_s5 + $0x140] sm:$0xff] %v1680_v46  ;;  %1697 = vst [vmem:[%s3876_s5 + $0x160] sm:$0xff] %v1681_v62  ;;  %v1717_v25 = vmul.f32 %v3465_v33, %v3242_v32  ;;  %v1718_v28 = vadd.f32 %v3503_v0, %v3499_v1  ;;  %v1719_v5 = vadd.f32 %v3507_v9, %v3499_v1 }
 0x1ee   :  { %1698 = vst [vmem:[%s3876_s5 + $0x180] sm:$0xff] %v1682_v56  ;;  %1699 = vst [vmem:[%s3876_s5 + $0x1a0] sm:$0xff] %v1683_v2  ;;  %v1720_v51 = vadd.f32 %v3511_v19, %v3499_v1  ;;  %v1721_v50 = vadd.f32 %v3515_v40, %v3499_v1  ;;  %v1722_v42 = vadd.f32 %v3519_v30, %v3499_v1 }
 0x1ef   :  { %1700 = vst [vmem:[%s3876_s5 + $0x1c0] sm:$0xff] %v1684_v55  ;;  %1701 = vst [vmem:[%s3876_s5 + $0x1e0] sm:$0xff] %v1685_v21  ;;  %v1723_v35 = vadd.f32 %v3523_v48, %v3499_v1  ;;  %v1724_v32 = vadd.f32 %v1708_v26, %v3499_v1  ;;  %v1725_v17 = vadd.f32 %v1709_v10, %v3499_v1  ;;  %v1734_v36 = vmax.f32 %v1718_v28, 0.0  ;;  %v4011_v55 = vld [vmem:[#allocation19_spill] sm:$0xff] }
 0x1f0   :  { %v1726_v0 = vadd.f32 %v1710_v47, %v3499_v1  ;;  %v1727_v9 = vadd.f32 %v1711_v23, %v3499_v1  ;;  %v1728_v54 = vadd.f32 %v1712_v49, %v3499_v1  ;;  %v1729_v19 = vadd.f32 %v1713_v11, %v3499_v1 }
 0x1f1   :  { %v1730_v40 = vadd.f32 %v1714_v59, %v3499_v1  ;;  %v1731_v34 = vadd.f32 %v1715_v44, %v3499_v1  ;;  %v1732_v30 = vadd.f32 %v1716_v16, %v3499_v1  ;;  %v1733_v48 = vadd.f32 %v1717_v25, %v3499_v1  ;;  %1750 = vst [vmem:[%s3876_s5 + $0x8] sm:$0xff] %v1734_v36  ;;  %v4015_v59 = vld [vmem:[#allocation25_spill] sm:$0xff] }
 0x1f2   :  { %v1735_v12 = vmax.f32 %v1719_v5, 0.0  ;;  %v1736_v41 = vmax.f32 %v1720_v51, 0.0  ;;  %v1737_v24 = vmax.f32 %v1721_v50, 0.0  ;;  %v1738_v58 = vmax.f32 %v1722_v42, 0.0 }
 0x1f3   :  { %v1739_v4 = vmax.f32 %v1723_v35, 0.0  ;;  %v1740_v3 = vmax.f32 %v1724_v32, 0.0  ;;  %v1741_v61 = vmax.f32 %v1725_v17, 0.0  ;;  %v1742_v57 = vmax.f32 %v1726_v0, 0.0 }
 0x1f4   :  { %v1743_v6 = vmax.f32 %v1727_v9, 0.0  ;;  %1751 = vst [vmem:[%s3876_s5 + $0x28] sm:$0xff] %v1735_v12  ;;  %v1744_v7 = vmax.f32 %v1728_v54, 0.0  ;;  %v1745_v13 = vmax.f32 %v1729_v19, 0.0  ;;  %v1746_v46 = vmax.f32 %v1730_v40, 0.0  ;;  %1752 = vst [vmem:[%s3876_s5 + $0x48] sm:$0xff] %v1736_v41 }
 0x1f5   :  { %v1747_v62 = vmax.f32 %v1731_v34, 0.0  ;;  %1753 = vst [vmem:[%s3876_s5 + $0x68] sm:$0xff] %v1737_v24  ;;  %1754 = vst [vmem:[%s3876_s5 + $0x88] sm:$0xff] %v1738_v58  ;;  %v1748_v56 = vmax.f32 %v1732_v30, 0.0  ;;  %v1749_v2 = vmax.f32 %v1733_v48, 0.0  ;;  %v1766_v21 = vmul.f32 %v3465_v33, %v4011_v55 }
 0x1f6   :  { %1755 = vst [vmem:[%s3876_s5 + $0xa8] sm:$0xff] %v1739_v4  ;;  %1756 = vst [vmem:[%s3876_s5 + $0xc8] sm:$0xff] %v1740_v3  ;;  %v1767_v26 = vmul.f32 %v3465_v33, %v4012_v37  ;;  %v1768_v10 = vmul.f32 %v3465_v33, %v4013_v38  ;;  %v1769_v47 = vmul.f32 %v3465_v33, %v4014_v20  ;;  %v4019_v38 = vld [vmem:[#allocation26_spill] sm:$0xff]  ;;  %v4021_v20 = vld [vmem:[#allocation28_spill] sm:$0xff] }
 0x1f7   :  { %1757 = vst [vmem:[%s3876_s5 + $0xe8] sm:$0xff] %v1741_v61  ;;  %1758 = vst [vmem:[%s3876_s5 + $0x108] sm:$0xff] %v1742_v57  ;;  %v1770_v23 = vmul.f32 %v3465_v33, %v3196_v14  ;;  %v1771_v49 = vmul.f32 %v3465_v33, %v3212_v27  ;;  %v1772_v11 = vmul.f32 %v3465_v33, %v3230_v39 }
 0x1f8   :  { %1759 = vst [vmem:[%s3876_s5 + $0x128] sm:$0xff] %v1743_v6  ;;  %1760 = vst [vmem:[%s3876_s5 + $0x148] sm:$0xff] %v1744_v7  ;;  %v1773_v44 = vmul.f32 %v3465_v33, %v4015_v59  ;;  %v1774_v14 = vmul.f32 %v3465_v33, %v3256_v15  ;;  %v1775_v27 = vmul.f32 %v3465_v33, %v3266_v43  ;;  %v4024_v59 = vld [vmem:[#allocation31_spill] sm:$0xff] }
 0x1f9   :  { %1761 = vst [vmem:[%s3876_s5 + $0x168] sm:$0xff] %v1745_v13  ;;  %1762 = vst [vmem:[%s3876_s5 + $0x188] sm:$0xff] %v1746_v46  ;;  %v1776_v16 = vmul.f32 %v3465_v33, %v3274_v53  ;;  %v1777_v25 = vmul.f32 %v3465_v33, %v3282_v45  ;;  %v1778_v28 = vmul.f32 %v3465_v33, %v3290_v52  ;;  %v4016_v13 = vld [vmem:[#allocation21_spill] sm:$0xff] }
 0x1fa   :  { %1763 = vst [vmem:[%s3876_s5 + $0x1a8] sm:$0xff] %v1747_v62  ;;  %1764 = vst [vmem:[%s3876_s5 + $0x1c8] sm:$0xff] %v1748_v56  ;;  %v1779_v39 = vmul.f32 %v3465_v33, %v3986_v63  ;;  %v1780_v5 = vmul.f32 %v3465_v33, %v3988_v31  ;;  %v1781_v15 = vmul.f32 %v3465_v33, %v3316_v60  ;;  %v4017_v62 = vld [vmem:[#allocation18_spill] sm:$0xff] }
 0x1fb   :  { %1765 = vst [vmem:[%s3876_s5 + $0x1e8] sm:$0xff] %v1749_v2  ;;  %v1782_v43 = vadd.f32 %v1766_v21, %v3499_v1  ;;  %v1783_v51 = vadd.f32 %v1767_v26, %v3499_v1  ;;  %v1784_v53 = vadd.f32 %v1768_v10, %v3499_v1  ;;  %v1785_v45 = vadd.f32 %v1769_v47, %v3499_v1  ;;  %v4018_v26 = vld [vmem:[#allocation24_spill] sm:$0xff]  ;;  %v4020_v10 = vld [vmem:[#allocation27_spill] sm:$0xff]  ;;  %v4022_v47 = vld [vmem:[#allocation29_spill] sm:$0xff] }
 0x1fc   :  { %v1786_v50 = vadd.f32 %v1770_v23, %v3499_v1  ;;  %v1787_v52 = vadd.f32 %v1771_v49, %v3499_v1  ;;  %v1788_v63 = vadd.f32 %v1772_v11, %v3499_v1  ;;  %v1789_v42 = vadd.f32 %v1773_v44, %v3499_v1  ;;  %v4023_v49 = vld [vmem:[#allocation30_spill] sm:$0xff] }
 0x1fd   :  { %v1790_v31 = vadd.f32 %v1774_v14, %v3499_v1  ;;  %v1791_v60 = vadd.f32 %v1775_v27, %v3499_v1  ;;  %v1792_v35 = vadd.f32 %v1776_v16, %v3499_v1  ;;  %v1793_v32 = vadd.f32 %v1777_v25, %v3499_v1  ;;  %v4025_v14 = vld [vmem:[#allocation33_spill] sm:$0xff]  ;;  %v4026_v16 = vld [vmem:[#allocation35_spill] sm:$0xff] }
 0x1fe   :  { %v1794_v17 = vadd.f32 %v1778_v28, %v3499_v1  ;;  %v1795_v0 = vadd.f32 %v1779_v39, %v3499_v1  ;;  %v1796_v9 = vadd.f32 %v1780_v5, %v3499_v1  ;;  %v1797_v54 = vadd.f32 %v1781_v15, %v3499_v1  ;;  %v4027_v28 = vld [vmem:[#allocation36_spill] sm:$0xff] }
 0x1ff   :  { %v1798_v19 = vmax.f32 %v1782_v43, 0.0  ;;  %v1799_v40 = vmax.f32 %v1783_v51, 0.0  ;;  %v1800_v34 = vmax.f32 %v1784_v53, 0.0  ;;  %v1801_v30 = vmax.f32 %v1785_v45, 0.0 }
 0x200   :  { %v1802_v48 = vmax.f32 %v1786_v50, 0.0  ;;  %v1803_v36 = vmax.f32 %v1787_v52, 0.0  ;;  %v1804_v12 = vmax.f32 %v1788_v63, 0.0  ;;  %v1805_v41 = vmax.f32 %v1789_v42, 0.0 }
 0x201   :  { %v1806_v24 = vmax.f32 %v1790_v31, 0.0  ;;  %v1807_v58 = vmax.f32 %v1791_v60, 0.0  ;;  %1814 = vst [vmem:[%s3876_s5 + $0x10] sm:$0xff] %v1798_v19  ;;  %1815 = vst [vmem:[%s3876_s5 + $0x30] sm:$0xff] %v1799_v40  ;;  %v1808_v4 = vmax.f32 %v1792_v35, 0.0  ;;  %v1809_v3 = vmax.f32 %v1793_v32, 0.0 }
 0x202   :  { %v1810_v61 = vmax.f32 %v1794_v17, 0.0  ;;  %v1811_v57 = vmax.f32 %v1795_v0, 0.0  ;;  %1816 = vst [vmem:[%s3876_s5 + $0x50] sm:$0xff] %v1800_v34  ;;  %1817 = vst [vmem:[%s3876_s5 + $0x70] sm:$0xff] %v1801_v30  ;;  %v1812_v6 = vmax.f32 %v1796_v9, 0.0  ;;  %v1813_v7 = vmax.f32 %v1797_v54, 0.0 }
 0x203   :  { %1818 = vst [vmem:[%s3876_s5 + $0x90] sm:$0xff] %v1802_v48  ;;  %1819 = vst [vmem:[%s3876_s5 + $0xb0] sm:$0xff] %v1803_v36  ;;  %v1830_v46 = vmul.f32 %v3465_v33, %v4016_v13  ;;  %v1831_v56 = vmul.f32 %v3465_v33, %v4017_v62  ;;  %v1832_v2 = vmul.f32 %v3465_v33, %v3172_v8 }
 0x204   :  { %1820 = vst [vmem:[%s3876_s5 + $0xd0] sm:$0xff] %v1804_v12  ;;  %1821 = vst [vmem:[%s3876_s5 + $0xf0] sm:$0xff] %v1805_v41  ;;  %v1833_v55 = vmul.f32 %v3465_v33, %v3188_v22  ;;  %v1834_v21 = vmul.f32 %v3465_v33, %v3204_v18  ;;  %v1835_v37 = vmul.f32 %v3465_v33, %v3221_v29 }
 0x205   :  { %1822 = vst [vmem:[%s3876_s5 + $0x110] sm:$0xff] %v1806_v24  ;;  %1823 = vst [vmem:[%s3876_s5 + $0x130] sm:$0xff] %v1807_v58  ;;  %v1836_v8 = vmul.f32 %v3465_v33, %v4018_v26  ;;  %v1837_v22 = vmul.f32 %v3465_v33, %v4019_v38  ;;  %v1838_v18 = vmul.f32 %v3465_v33, %v4020_v10 }
 0x206   :  { %1824 = vst [vmem:[%s3876_s5 + $0x150] sm:$0xff] %v1808_v4  ;;  %1825 = vst [vmem:[%s3876_s5 + $0x170] sm:$0xff] %v1809_v3  ;;  %v1839_v29 = vmul.f32 %v3465_v33, %v4021_v20  ;;  %v1840_v23 = vmul.f32 %v3465_v33, %v4022_v47  ;;  %v1841_v11 = vmul.f32 %v3465_v33, %v4023_v49 }
 0x207   :  { %1826 = vst [vmem:[%s3876_s5 + $0x190] sm:$0xff] %v1810_v61  ;;  %1827 = vst [vmem:[%s3876_s5 + $0x1b0] sm:$0xff] %v1811_v57  ;;  %v1842_v44 = vmul.f32 %v3465_v33, %v4024_v59  ;;  %v1843_v27 = vmul.f32 %v3465_v33, %v4025_v14  ;;  %v1844_v25 = vmul.f32 %v3465_v33, %v4026_v16 }
 0x208   :  { %1828 = vst [vmem:[%s3876_s5 + $0x1d0] sm:$0xff] %v1812_v6  ;;  %1829 = vst [vmem:[%s3876_s5 + $0x1f0] sm:$0xff] %v1813_v7  ;;  %v1845_v39 = vmul.f32 %v3465_v33, %v4027_v28  ;;  %v1846_v5 = vadd.f32 %v1830_v46, %v3499_v1  ;;  %v1847_v15 = vadd.f32 %v1831_v56, %v3499_v1 }
 0x209   :  { %v1848_v43 = vadd.f32 %v1832_v2, %v3499_v1  ;;  %v1849_v51 = vadd.f32 %v1833_v55, %v3499_v1  ;;  %v1850_v53 = vadd.f32 %v1834_v21, %v3499_v1  ;;  %v1851_v45 = vadd.f32 %v1835_v37, %v3499_v1 }
 0x20a   :  { %v1852_v50 = vadd.f32 %v1836_v8, %v3499_v1  ;;  %v1853_v52 = vadd.f32 %v1837_v22, %v3499_v1  ;;  %v1854_v63 = vadd.f32 %v1838_v18, %v3499_v1  ;;  %v1855_v33 = vadd.f32 %v1839_v29, %v3499_v1 }
 0x20b   :  { %v1856_v42 = vadd.f32 %v1840_v23, %v3499_v1  ;;  %v1857_v31 = vadd.f32 %v1841_v11, %v3499_v1  ;;  %v1858_v60 = vadd.f32 %v1842_v44, %v3499_v1  ;;  %v1859_v35 = vadd.f32 %v1843_v27, %v3499_v1 }
 0x20c   :  { %v1860_v32 = vadd.f32 %v1844_v25, %v3499_v1  ;;  %v1861_v17 = vadd.f32 %v1845_v39, %v3499_v1  ;;  %v1862_v0 = vmax.f32 %v1846_v5, 0.0  ;;  %v1863_v9 = vmax.f32 %v1847_v15, 0.0 }
 0x20d   :  { %v1864_v54 = vmax.f32 %v1848_v43, 0.0  ;;  %v1865_v19 = vmax.f32 %v1849_v51, 0.0  ;;  %v1866_v40 = vmax.f32 %v1850_v53, 0.0  ;;  %v1867_v34 = vmax.f32 %v1851_v45, 0.0 }
 0x20e   :  { %v1868_v30 = vmax.f32 %v1852_v50, 0.0  ;;  %v1869_v48 = vmax.f32 %v1853_v52, 0.0  ;;  %v1870_v36 = vmax.f32 %v1854_v63, 0.0  ;;  %v1871_v12 = vmax.f32 %v1855_v33, 0.0  ;;  %1878 = vst [vmem:[%s3876_s5 + $0x18] sm:$0xff] %v1862_v0  ;;  %1879 = vst [vmem:[%s3876_s5 + $0x38] sm:$0xff] %v1863_v9 }
 0x20f   :  { %v1872_v41 = vmax.f32 %v1856_v42, 0.0  ;;  %v1873_v1 = vmax.f32 %v1857_v31, 0.0  ;;  %v1874_v24 = vmax.f32 %v1858_v60, 0.0  ;;  %v1875_v58 = vmax.f32 %v1859_v35, 0.0  ;;  %1880 = vst [vmem:[%s3876_s5 + $0x58] sm:$0xff] %v1864_v54  ;;  %1881 = vst [vmem:[%s3876_s5 + $0x78] sm:$0xff] %v1865_v19 }
 0x210   :  { %1882 = vst [vmem:[%s3876_s5 + $0x98] sm:$0xff] %v1866_v40  ;;  %1883 = vst [vmem:[%s3876_s5 + $0xb8] sm:$0xff] %v1867_v34  ;;  %v1876_v4 = vmax.f32 %v1860_v32, 0.0  ;;  %v1877_v3 = vmax.f32 %v1861_v17, 0.0 }
 0x211   :  { %1884 = vst [vmem:[%s3876_s5 + $0xd8] sm:$0xff] %v1868_v30  ;;  %1885 = vst [vmem:[%s3876_s5 + $0xf8] sm:$0xff] %v1869_v48 }
 0x212   :  { %1886 = vst [vmem:[%s3876_s5 + $0x118] sm:$0xff] %v1870_v36  ;;  %1887 = vst [vmem:[%s3876_s5 + $0x138] sm:$0xff] %v1871_v12 }
 0x213   :  { %1888 = vst [vmem:[%s3876_s5 + $0x158] sm:$0xff] %v1872_v41  ;;  %1889 = vst [vmem:[%s3876_s5 + $0x178] sm:$0xff] %v1873_v1 }
 0x214   :  { %1890 = vst [vmem:[%s3876_s5 + $0x198] sm:$0xff] %v1874_v24  ;;  %1891 = vst [vmem:[%s3876_s5 + $0x1b8] sm:$0xff] %v1875_v58 }
 0x215   :  { %1892 = vst [vmem:[%s3876_s5 + $0x1d8] sm:$0xff] %v1876_v4  ;;  %1893 = vst [vmem:[%s3876_s5 + $0x1f8] sm:$0xff] %v1877_v3 }

</bundles_post_ra>
